<compile_context>
chip_gen: v7x
topology: tpu7x:2x2x1
jax: 0.10.0
libtpu: 0.0.40
codegen_flags: <defaults>
</compile_context>

<pallas_src>
import jax
import jax.numpy as jnp
from jax import lax
from jax.experimental import pallas as pl
from jax.experimental.pallas import tpu as pltpu


# ---------------------------------------------------------------------------
# Fused Pallas kernel: conv1 -> pool -> conv2 -> pool -> fc1 -> fc2 -> fc3
# ---------------------------------------------------------------------------

def _siamese_fused_kernel(p1_ref, w1_ref, b1_ref, w2_ref, b2_ref,
                          wf1_ref, bf1_ref, wf2_ref, bf2_ref, wf3_ref, bf3_ref,
                          o_ref, h1_scr):
    f32 = jnp.float32

    # ---- conv1 (1->64, k=5) + 2x2 max-pool: one stacked im2col matmul over all 4 pool
    #      offsets (input rows ordered d*144 + p, d = pool-window offset, p = pooled pos).
    y1 = jnp.dot(p1_ref[0], w1_ref[...], preferred_element_type=f32)      # (576, 64)
    y1 = jnp.maximum(jnp.maximum(y1[0:144], y1[144:288]),
                     jnp.maximum(y1[288:432], y1[432:576]))               # pool max -> (144, 64)
    h1 = jnp.maximum(y1 + b1_ref[...], 0.0)                               # bias + ReLU once

    # Stash h1 as a (12, 12, 64) spatial map in VMEM scratch (row p = ph*12 + pw).
    for r in range(12):
        h1_scr[r] = h1[r * 12:(r + 1) * 12, :]

    # ---- conv2 (64->128, k=5): direct convolution on the VMEM-resident feature map as
    #      25 shifted (64,64)x(64,128) MXU matmuls (no im2col materialization at all).
    acc = jnp.zeros((64, 128), f32)                                       # rows = oh*8 + ow
    for kh in range(5):
        for kw in range(5):
            lhs = h1_scr[kh:kh + 8, kw:kw + 8, :].reshape(64, 64)
            acc = acc + jnp.dot(lhs, w2_ref[kh * 5 + kw],
                                preferred_element_type=f32)

    # ---- 2x2 max-pool of the (8,8,128) conv2 output, then bias+ReLU once after the max.
    a = jnp.max(acc.reshape(32, 2, 128), axis=1)                          # width pool  -> oh*4+pw
    a = jnp.max(a.reshape(4, 2, 4, 128), axis=1)                          # height pool -> (ph,pw,c)
    feats = jnp.maximum(a.reshape(16, 128) + b2_ref[...], 0.0)            # (H*W, C) features

    # ---- fc stack, fully VMEM-resident:
    #      Linear(2048,256)+ReLU -> Linear(256,256)+ReLU -> Linear(256,2) (2 padded to 128
    #      output lanes so the final store is a full-lane, unmasked vst).
    h = bf1_ref[...].astype(f32)                                          # (1, 256)
    for p in range(16):                                                   # (H,W,C)-order flatten
        h = h + jnp.dot(feats[p:p + 1, :], wf1_ref[p * 128:(p + 1) * 128, :],
                        preferred_element_type=f32)
    h = jnp.maximum(h, 0.0)
    h = jnp.maximum(jnp.dot(h, wf2_ref[...], preferred_element_type=f32) + bf2_ref[...], 0.0)
    out = jnp.dot(h, wf3_ref[...], preferred_element_type=f32) + bf3_ref[...]
    o_ref[0] = out.astype(o_ref.dtype)


# ---------------------------------------------------------------------------
# Wrapper (pure-layout conv1 patch extraction + one pallas_call for both branches)
# ---------------------------------------------------------------------------

def _conv1_pool_patches(x_nhwc):
    """(N,28,28,1) -> (N, 4*144, 25) pool-slab-major im2col for conv1 (layout only, no FLOPs).

    Row d*144 + (ph*12+pw) of image n holds the 5x5 patch of the conv1 output position that
    belongs to pooled position (ph,pw) with in-window offset d = 2*dh + dw.
    """
    N = x_nhwc.shape[0]
    cols = [x_nhwc[:, kh:kh + 24, kw:kw + 24, 0] for kh in range(5) for kw in range(5)]
    p = jnp.stack(cols, axis=-1)                                     # (N, 24, 24, 25)
    p = p.reshape(N, 12, 2, 12, 2, 25).transpose(0, 2, 4, 1, 3, 5)   # (N, dh, dw, ph, pw, 25)
    return p.reshape(N, 4 * 144, 25)


def siamese_forward(params, x1, x2):
    """Fused Siamese forward: both branches in ONE pallas_call. Returns (o1, o2), each (B, 2)."""
    B = x1.shape[0]
    x = jnp.concatenate([x1, x2], axis=0)                            # (2B, 1, 28, 28)
    x = jnp.transpose(x, (0, 2, 3, 1)).astype(jnp.float32)           # NHWC
    p1 = _conv1_pool_patches(x)                                      # (2B, 576, 25)

    w1 = params["w1"].reshape(25, 64)                                # rows = kh*5+kw
    w2 = params["w2"].reshape(25, 64, 128)                           # (kh*5+kw, cin, cout)
    wf3 = jnp.pad(params["wf3"], ((0, 0), (0, 126)))                 # lane-dense (256, 128)
    bf3 = jnp.pad(params["bf3"].reshape(1, 2), ((0, 0), (0, 126)))   # (1, 128)

    n = 2 * B
    c2 = lambda b: (0, 0)
    c3 = lambda b: (0, 0, 0)
    out = pl.pallas_call(
        _siamese_fused_kernel,
        out_shape=jax.ShapeDtypeStruct((n, 1, 128), jnp.float32),
        grid=(n,),                                                   # one image per grid step
        in_specs=[
            pl.BlockSpec((1, 4 * 144, 25), lambda b: (b, 0, 0)),     # streamed per-image patches
            pl.BlockSpec((25, 64), c2),                              # weights: constant index ->
            pl.BlockSpec((1, 64), c2),                               #   DMA'd once, VMEM-resident
            pl.BlockSpec((25, 64, 128), c3),
            pl.BlockSpec((1, 128), c2),
            pl.BlockSpec((2048, 256), c2),
            pl.BlockSpec((1, 256), c2),
            pl.BlockSpec((256, 256), c2),
            pl.BlockSpec((1, 256), c2),
            pl.BlockSpec((256, 128), c2),
            pl.BlockSpec((1, 128), c2),
        ],
        out_specs=pl.BlockSpec((1, 1, 128), lambda b: (b, 0, 0)),
        scratch_shapes=[pltpu.VMEM((12, 12, 64), jnp.float32)],
        compiler_params=pltpu.CompilerParams(
            dimension_semantics=("parallel",)),                      # megacore / v7x 2-TC sharding
    )(p1, w1, params["b1"].reshape(1, 64), w2, params["b2"].reshape(1, 128),
      params["wf1"], params["bf1"].reshape(1, 256),
      params["wf2"], params["bf2"].reshape(1, 256), wf3, bf3)

    logits = out.reshape(n, 128)[:, :2]
    return logits[:B], logits[B:]


# ---------------------------------------------------------------------------
# Pure-JAX reference (mirrors the PyTorch forward, f32 HIGHEST precision)
# ---------------------------------------------------------------------------

def _maxpool2x2(y):
    B, H, W, C = y.shape
    return jnp.max(y.reshape(B, H // 2, 2, W // 2, 2, C), axis=(2, 4))


def _reference_forward_one(params, x_nchw):
    x = jnp.transpose(x_nchw, (0, 2, 3, 1)).astype(jnp.float32)
    dn = ("NHWC", "HWIO", "NHWC")
    hi = lax.Precision.HIGHEST
    y = lax.conv_general_dilated(x, params["w1"], (1, 1), "VALID",
                                 dimension_numbers=dn, precision=hi)
    y = _maxpool2x2(jnp.maximum(y + params["b1"], 0.0))
    y = lax.conv_general_dilated(y, params["w2"], (1, 1), "VALID",
                                 dimension_numbers=dn, precision=hi)
    y = _maxpool2x2(jnp.maximum(y + params["b2"], 0.0))
    f = y.reshape(x.shape[0], -1)                                    # (H, W, C) flatten
    h = jnp.maximum(jnp.dot(f, params["wf1"], precision=hi) + params["bf1"], 0.0)
    h = jnp.maximum(jnp.dot(h, params["wf2"], precision=hi) + params["bf2"], 0.0)
    return jnp.dot(h, params["wf3"], precision=hi) + params["bf3"]


# ---------------------------------------------------------------------------
# Main
# ---------------------------------------------------------------------------

def init_params(key):
    # Weights are created in-script; fc1 is defined directly in (H, W, C)-flattened layout
    # (PyTorch flattens (C, H, W) -- the permutation is absorbed into wf1, semantics identical).
    ks = jax.random.split(key, 10)
    p = {}
    p["w1"] = jax.random.normal(ks[0], (5, 5, 1, 64), jnp.float32) * 0.2
    p["b1"] = jax.random.normal(ks[1], (64,), jnp.float32) * 0.1
    p["w2"] = jax.random.normal(ks[2], (5, 5, 64, 128), jnp.float32) * (1.0 / (5 * 5 * 64) ** 0.5)
    p["b2"] = jax.random.normal(ks[3], (128,), jnp.float32) * 0.1
    p["wf1"] = jax.random.normal(ks[4], (2048, 256), jnp.float32) * (1.0 / 2048 ** 0.5)
    p["bf1"] = jax.random.normal(ks[5], (256,), jnp.float32) * 0.1
    p["wf2"] = jax.random.normal(ks[6], (256, 256), jnp.float32) * (1.0 / 16.0)
    p["bf2"] = jax.random.normal(ks[7], (256,), jnp.float32) * 0.1
    p["wf3"] = jax.random.normal(ks[8], (256, 2), jnp.float32) * (1.0 / 16.0)
    p["bf3"] = jax.random.normal(ks[9], (2,), jnp.float32) * 0.1
    return p


if __name__ == "__main__":
    key = jax.random.PRNGKey(0)
    kp, kx1, kx2 = jax.random.split(key, 3)
    params = init_params(kp)

    B = 2  # small MNIST-style batch; each image is (1, 28, 28)
    x1 = jax.random.normal(kx1, (B, 1, 28, 28), jnp.float32)
    x2 = jax.random.normal(kx2, (B, 1, 28, 28), jnp.float32)

    fwd = jax.jit(siamese_forward)
    o1, o2 = fwd(params, x1, x2)
    o1, o2 = jax.block_until_ready((o1, o2))

    r1 = _reference_forward_one(params, x1)
    r2 = _reference_forward_one(params, x2)
    assert o1.shape == (B, 2) and o2.shape == (B, 2)
    assert jnp.allclose(o1, r1, rtol=2e-3, atol=2e-3), (o1, r1)
    assert jnp.allclose(o2, r2, rtol=2e-3, atol=2e-3), (o2, r2)

    print("KERNEL_OK")
</pallas_src>

<mosaic_0001>
module attributes {stable_mosaic.version = 11 : i64} {
  func.func @_siamese_fused_kernel(%arg0: i32, %arg1: memref<1x576x25xf32, #tpu.memory_space<vmem>>, %arg2: memref<25x64xf32, #tpu.memory_space<vmem>>, %arg3: memref<1x64xf32, #tpu.memory_space<vmem>>, %arg4: memref<25x64x128xf32, #tpu.memory_space<vmem>>, %arg5: memref<1x128xf32, #tpu.memory_space<vmem>>, %arg6: memref<2048x256xf32, #tpu.memory_space<vmem>>, %arg7: memref<1x256xf32, #tpu.memory_space<vmem>>, %arg8: memref<256x256xf32, #tpu.memory_space<vmem>>, %arg9: memref<1x256xf32, #tpu.memory_space<vmem>>, %arg10: memref<256x128xf32, #tpu.memory_space<vmem>>, %arg11: memref<1x128xf32, #tpu.memory_space<vmem>>, %arg12: memref<1x1x128xf32, #tpu.memory_space<vmem>>, %arg13: memref<12x12x64xf32, #tpu.memory_space<vmem>>) attributes {dimension_semantics = [#tpu.dimension_semantics<parallel>], iteration_bounds = array<i64: 4>, scalar_prefetch = 0 : i64, scratch_operands = 1 : i64, tpu.core_type = #tpu.core_type<tc>, window_params = [{transform_indices = @transform_0, window_bounds = array<i64: 1, 576, 25>}, {pipeline_mode = #tpu.pipeline_mode<synchronous>, transform_indices = @transform_1, window_bounds = array<i64: 25, 64>}, {pipeline_mode = #tpu.pipeline_mode<synchronous>, transform_indices = @transform_2, window_bounds = array<i64: 1, 64>}, {pipeline_mode = #tpu.pipeline_mode<synchronous>, transform_indices = @transform_3, window_bounds = array<i64: 25, 64, 128>}, {pipeline_mode = #tpu.pipeline_mode<synchronous>, transform_indices = @transform_4, window_bounds = array<i64: 1, 128>}, {pipeline_mode = #tpu.pipeline_mode<synchronous>, transform_indices = @transform_5, window_bounds = array<i64: 2048, 256>}, {pipeline_mode = #tpu.pipeline_mode<synchronous>, transform_indices = @transform_6, window_bounds = array<i64: 1, 256>}, {pipeline_mode = #tpu.pipeline_mode<synchronous>, transform_indices = @transform_7, window_bounds = array<i64: 256, 256>}, {pipeline_mode = #tpu.pipeline_mode<synchronous>, transform_indices = @transform_8, window_bounds = array<i64: 1, 256>}, {pipeline_mode = #tpu.pipeline_mode<synchronous>, transform_indices = @transform_9, window_bounds = array<i64: 256, 128>}, {pipeline_mode = #tpu.pipeline_mode<synchronous>, transform_indices = @transform_10, window_bounds = array<i64: 1, 128>}, {transform_indices = @transform_11, window_bounds = array<i64: 1, 1, 128>}]} {
    %c0 = arith.constant 0 : index
    %c0_0 = arith.constant 0 : index
    %c0_1 = arith.constant 0 : index
    %0 = vector.load %arg1[%c0, %c0_0, %c0_1] : memref<1x576x25xf32, #tpu.memory_space<vmem>>, vector<1x576x25xf32>
    %1 = vector.shape_cast %0 : vector<1x576x25xf32> to vector<576x25xf32>
    %c0_2 = arith.constant 0 : index
    %c0_3 = arith.constant 0 : index
    %2 = vector.load %arg2[%c0_2, %c0_3] : memref<25x64xf32, #tpu.memory_space<vmem>>, vector<25x64xf32>
    %cst = arith.constant dense<0.000000e+00> : vector<576x64xf32>
    %3 = tpu.matmul %1, %2, %cst {dimension_numbers = #tpu.dot_dimension_numbers<[1], [0], [0], [1], [0, 0, 1, 1], [], []>} : vector<576x25xf32>, vector<25x64xf32>, vector<576x64xf32> -> vector<576x64xf32>
    %4 = vector.extract_strided_slice %3 {offsets = [0, 0], sizes = [144, 64], strides = [1, 1]} : vector<576x64xf32> to vector<144x64xf32>
    %5 = vector.extract_strided_slice %3 {offsets = [144, 0], sizes = [144, 64], strides = [1, 1]} : vector<576x64xf32> to vector<144x64xf32>
    %6 = arith.maximumf %4, %5 : vector<144x64xf32>
    %7 = vector.extract_strided_slice %3 {offsets = [288, 0], sizes = [144, 64], strides = [1, 1]} : vector<576x64xf32> to vector<144x64xf32>
    %8 = vector.extract_strided_slice %3 {offsets = [432, 0], sizes = [144, 64], strides = [1, 1]} : vector<576x64xf32> to vector<144x64xf32>
    %9 = arith.maximumf %7, %8 : vector<144x64xf32>
    %10 = arith.maximumf %6, %9 : vector<144x64xf32>
    %c0_4 = arith.constant 0 : index
    %c0_5 = arith.constant 0 : index
    %11 = vector.load %arg3[%c0_4, %c0_5] : memref<1x64xf32, #tpu.memory_space<vmem>>, vector<1x64xf32>
    %12 = vector.broadcast %11 : vector<1x64xf32> to vector<144x64xf32>
    %13 = arith.addf %10, %12 : vector<144x64xf32>
    %cst_6 = arith.constant 0.000000e+00 : f32
    %14 = vector.broadcast %cst_6 : f32 to vector<144x64xf32>
    %15 = arith.maximumf %13, %14 : vector<144x64xf32>
    %16 = vector.extract_strided_slice %15 {offsets = [0, 0], sizes = [12, 64], strides = [1, 1]} : vector<144x64xf32> to vector<12x64xf32>
    %c0_7 = arith.constant 0 : index
    %c0_8 = arith.constant 0 : index
    %c0_9 = arith.constant 0 : index
    %17 = vector.load %arg13[%c0_7, %c0_8, %c0_9] : memref<12x12x64xf32, #tpu.memory_space<vmem>>, vector<1x12x64xf32>
    %18 = vector.shape_cast %17 : vector<1x12x64xf32> to vector<12x64xf32>
    %19 = vector.shape_cast %16 : vector<12x64xf32> to vector<1x12x64xf32>
    tpu.vector_store %arg13[%c0_7, %c0_8, %c0_9], %19 {strides = array<i32>} : memref<12x12x64xf32, #tpu.memory_space<vmem>>, vector<1x12x64xf32>,
    %20 = vector.extract_strided_slice %15 {offsets = [12, 0], sizes = [12, 64], strides = [1, 1]} : vector<144x64xf32> to vector<12x64xf32>
    %c1 = arith.constant 1 : index
    %c0_10 = arith.constant 0 : index
    %c0_11 = arith.constant 0 : index
    %21 = vector.load %arg13[%c1, %c0_10, %c0_11] : memref<12x12x64xf32, #tpu.memory_space<vmem>>, vector<1x12x64xf32>
    %22 = vector.shape_cast %21 : vector<1x12x64xf32> to vector<12x64xf32>
    %23 = vector.shape_cast %20 : vector<12x64xf32> to vector<1x12x64xf32>
    tpu.vector_store %arg13[%c1, %c0_10, %c0_11], %23 {strides = array<i32>} : memref<12x12x64xf32, #tpu.memory_space<vmem>>, vector<1x12x64xf32>,
    %24 = vector.extract_strided_slice %15 {offsets = [24, 0], sizes = [12, 64], strides = [1, 1]} : vector<144x64xf32> to vector<12x64xf32>
    %c2 = arith.constant 2 : index
    %c0_12 = arith.constant 0 : index
    %c0_13 = arith.constant 0 : index
    %25 = vector.load %arg13[%c2, %c0_12, %c0_13] : memref<12x12x64xf32, #tpu.memory_space<vmem>>, vector<1x12x64xf32>
    %26 = vector.shape_cast %25 : vector<1x12x64xf32> to vector<12x64xf32>
    %27 = vector.shape_cast %24 : vector<12x64xf32> to vector<1x12x64xf32>
    tpu.vector_store %arg13[%c2, %c0_12, %c0_13], %27 {strides = array<i32>} : memref<12x12x64xf32, #tpu.memory_space<vmem>>, vector<1x12x64xf32>,
    %28 = vector.extract_strided_slice %15 {offsets = [36, 0], sizes = [12, 64], strides = [1, 1]} : vector<144x64xf32> to vector<12x64xf32>
    %c3 = arith.constant 3 : index
    %c0_14 = arith.constant 0 : index
    %c0_15 = arith.constant 0 : index
    %29 = vector.load %arg13[%c3, %c0_14, %c0_15] : memref<12x12x64xf32, #tpu.memory_space<vmem>>, vector<1x12x64xf32>
    %30 = vector.shape_cast %29 : vector<1x12x64xf32> to vector<12x64xf32>
    %31 = vector.shape_cast %28 : vector<12x64xf32> to vector<1x12x64xf32>
    tpu.vector_store %arg13[%c3, %c0_14, %c0_15], %31 {strides = array<i32>} : memref<12x12x64xf32, #tpu.memory_space<vmem>>, vector<1x12x64xf32>,
    %32 = vector.extract_strided_slice %15 {offsets = [48, 0], sizes = [12, 64], strides = [1, 1]} : vector<144x64xf32> to vector<12x64xf32>
    %c4 = arith.constant 4 : index
    %c0_16 = arith.constant 0 : index
    %c0_17 = arith.constant 0 : index
    %33 = vector.load %arg13[%c4, %c0_16, %c0_17] : memref<12x12x64xf32, #tpu.memory_space<vmem>>, vector<1x12x64xf32>
    %34 = vector.shape_cast %33 : vector<1x12x64xf32> to vector<12x64xf32>
    %35 = vector.shape_cast %32 : vector<12x64xf32> to vector<1x12x64xf32>
    tpu.vector_store %arg13[%c4, %c0_16, %c0_17], %35 {strides = array<i32>} : memref<12x12x64xf32, #tpu.memory_space<vmem>>, vector<1x12x64xf32>,
    %36 = vector.extract_strided_slice %15 {offsets = [60, 0], sizes = [12, 64], strides = [1, 1]} : vector<144x64xf32> to vector<12x64xf32>
    %c5 = arith.constant 5 : index
    %c0_18 = arith.constant 0 : index
    %c0_19 = arith.constant 0 : index
    %37 = vector.load %arg13[%c5, %c0_18, %c0_19] : memref<12x12x64xf32, #tpu.memory_space<vmem>>, vector<1x12x64xf32>
    %38 = vector.shape_cast %37 : vector<1x12x64xf32> to vector<12x64xf32>
    %39 = vector.shape_cast %36 : vector<12x64xf32> to vector<1x12x64xf32>
    tpu.vector_store %arg13[%c5, %c0_18, %c0_19], %39 {strides = array<i32>} : memref<12x12x64xf32, #tpu.memory_space<vmem>>, vector<1x12x64xf32>,
    %40 = vector.extract_strided_slice %15 {offsets = [72, 0], sizes = [12, 64], strides = [1, 1]} : vector<144x64xf32> to vector<12x64xf32>
    %c6 = arith.constant 6 : index
    %c0_20 = arith.constant 0 : index
    %c0_21 = arith.constant 0 : index
    %41 = vector.load %arg13[%c6, %c0_20, %c0_21] : memref<12x12x64xf32, #tpu.memory_space<vmem>>, vector<1x12x64xf32>
    %42 = vector.shape_cast %41 : vector<1x12x64xf32> to vector<12x64xf32>
    %43 = vector.shape_cast %40 : vector<12x64xf32> to vector<1x12x64xf32>
    tpu.vector_store %arg13[%c6, %c0_20, %c0_21], %43 {strides = array<i32>} : memref<12x12x64xf32, #tpu.memory_space<vmem>>, vector<1x12x64xf32>,
    %44 = vector.extract_strided_slice %15 {offsets = [84, 0], sizes = [12, 64], strides = [1, 1]} : vector<144x64xf32> to vector<12x64xf32>
    %c7 = arith.constant 7 : index
    %c0_22 = arith.constant 0 : index
    %c0_23 = arith.constant 0 : index
    %45 = vector.load %arg13[%c7, %c0_22, %c0_23] : memref<12x12x64xf32, #tpu.memory_space<vmem>>, vector<1x12x64xf32>
    %46 = vector.shape_cast %45 : vector<1x12x64xf32> to vector<12x64xf32>
    %47 = vector.shape_cast %44 : vector<12x64xf32> to vector<1x12x64xf32>
    tpu.vector_store %arg13[%c7, %c0_22, %c0_23], %47 {strides = array<i32>} : memref<12x12x64xf32, #tpu.memory_space<vmem>>, vector<1x12x64xf32>,
    %48 = vector.extract_strided_slice %15 {offsets = [96, 0], sizes = [12, 64], strides = [1, 1]} : vector<144x64xf32> to vector<12x64xf32>
    %c8 = arith.constant 8 : index
    %c0_24 = arith.constant 0 : index
    %c0_25 = arith.constant 0 : index
    %49 = vector.load %arg13[%c8, %c0_24, %c0_25] : memref<12x12x64xf32, #tpu.memory_space<vmem>>, vector<1x12x64xf32>
    %50 = vector.shape_cast %49 : vector<1x12x64xf32> to vector<12x64xf32>
    %51 = vector.shape_cast %48 : vector<12x64xf32> to vector<1x12x64xf32>
    tpu.vector_store %arg13[%c8, %c0_24, %c0_25], %51 {strides = array<i32>} : memref<12x12x64xf32, #tpu.memory_space<vmem>>, vector<1x12x64xf32>,
    %52 = vector.extract_strided_slice %15 {offsets = [108, 0], sizes = [12, 64], strides = [1, 1]} : vector<144x64xf32> to vector<12x64xf32>
    %c9 = arith.constant 9 : index
    %c0_26 = arith.constant 0 : index
    %c0_27 = arith.constant 0 : index
    %53 = vector.load %arg13[%c9, %c0_26, %c0_27] : memref<12x12x64xf32, #tpu.memory_space<vmem>>, vector<1x12x64xf32>
    %54 = vector.shape_cast %53 : vector<1x12x64xf32> to vector<12x64xf32>
    %55 = vector.shape_cast %52 : vector<12x64xf32> to vector<1x12x64xf32>
    tpu.vector_store %arg13[%c9, %c0_26, %c0_27], %55 {strides = array<i32>} : memref<12x12x64xf32, #tpu.memory_space<vmem>>, vector<1x12x64xf32>,
    %56 = vector.extract_strided_slice %15 {offsets = [120, 0], sizes = [12, 64], strides = [1, 1]} : vector<144x64xf32> to vector<12x64xf32>
    %c10 = arith.constant 10 : index
    %c0_28 = arith.constant 0 : index
    %c0_29 = arith.constant 0 : index
    %57 = vector.load %arg13[%c10, %c0_28, %c0_29] : memref<12x12x64xf32, #tpu.memory_space<vmem>>, vector<1x12x64xf32>
    %58 = vector.shape_cast %57 : vector<1x12x64xf32> to vector<12x64xf32>
    %59 = vector.shape_cast %56 : vector<12x64xf32> to vector<1x12x64xf32>
    tpu.vector_store %arg13[%c10, %c0_28, %c0_29], %59 {strides = array<i32>} : memref<12x12x64xf32, #tpu.memory_space<vmem>>, vector<1x12x64xf32>,
    %60 = vector.extract_strided_slice %15 {offsets = [132, 0], sizes = [12, 64], strides = [1, 1]} : vector<144x64xf32> to vector<12x64xf32>
    %c11 = arith.constant 11 : index
    %c0_30 = arith.constant 0 : index
    %c0_31 = arith.constant 0 : index
    %61 = vector.load %arg13[%c11, %c0_30, %c0_31] : memref<12x12x64xf32, #tpu.memory_space<vmem>>, vector<1x12x64xf32>
    %62 = vector.shape_cast %61 : vector<1x12x64xf32> to vector<12x64xf32>
    %63 = vector.shape_cast %60 : vector<12x64xf32> to vector<1x12x64xf32>
    tpu.vector_store %arg13[%c11, %c0_30, %c0_31], %63 {strides = array<i32>} : memref<12x12x64xf32, #tpu.memory_space<vmem>>, vector<1x12x64xf32>,
    %cst_32 = arith.constant 0.000000e+00 : f32
    %64 = vector.broadcast %cst_32 : f32 to vector<64x128xf32>
    %c0_33 = arith.constant 0 : index
    %c0_34 = arith.constant 0 : index
    %c0_35 = arith.constant 0 : index
    %65 = vector.load %arg13[%c0_33, %c0_34, %c0_35] : memref<12x12x64xf32, #tpu.memory_space<vmem>>, vector<8x8x64xf32>
    %66 = vector.shape_cast %65 : vector<8x8x64xf32> to vector<64x64xf32>
    %c0_36 = arith.constant 0 : index
    %c0_37 = arith.constant 0 : index
    %c0_38 = arith.constant 0 : index
    %67 = vector.load %arg4[%c0_36, %c0_37, %c0_38] : memref<25x64x128xf32, #tpu.memory_space<vmem>>, vector<1x64x128xf32>
    %68 = vector.shape_cast %67 : vector<1x64x128xf32> to vector<64x128xf32>
    %cst_39 = arith.constant dense<0.000000e+00> : vector<64x128xf32>
    %69 = tpu.matmul %66, %68, %cst_39 {dimension_numbers = #tpu.dot_dimension_numbers<[1], [0], [0], [1], [0, 0, 1, 1], [], []>} : vector<64x64xf32>, vector<64x128xf32>, vector<64x128xf32> -> vector<64x128xf32>
    %70 = arith.addf %64, %69 : vector<64x128xf32>
    %c0_40 = arith.constant 0 : index
    %c1_41 = arith.constant 1 : index
    %c0_42 = arith.constant 0 : index
    %71 = vector.load %arg13[%c0_40, %c1_41, %c0_42] : memref<12x12x64xf32, #tpu.memory_space<vmem>>, vector<8x8x64xf32>
    %72 = vector.shape_cast %71 : vector<8x8x64xf32> to vector<64x64xf32>
    %c1_43 = arith.constant 1 : index
    %c0_44 = arith.constant 0 : index
    %c0_45 = arith.constant 0 : index
    %73 = vector.load %arg4[%c1_43, %c0_44, %c0_45] : memref<25x64x128xf32, #tpu.memory_space<vmem>>, vector<1x64x128xf32>
    %74 = vector.shape_cast %73 : vector<1x64x128xf32> to vector<64x128xf32>
    %cst_46 = arith.constant dense<0.000000e+00> : vector<64x128xf32>
    %75 = tpu.matmul %72, %74, %cst_46 {dimension_numbers = #tpu.dot_dimension_numbers<[1], [0], [0], [1], [0, 0, 1, 1], [], []>} : vector<64x64xf32>, vector<64x128xf32>, vector<64x128xf32> -> vector<64x128xf32>
    %76 = arith.addf %70, %75 : vector<64x128xf32>
    %c0_47 = arith.constant 0 : index
    %c2_48 = arith.constant 2 : index
    %c0_49 = arith.constant 0 : index
    %77 = vector.load %arg13[%c0_47, %c2_48, %c0_49] : memref<12x12x64xf32, #tpu.memory_space<vmem>>, vector<8x8x64xf32>
    %78 = vector.shape_cast %77 : vector<8x8x64xf32> to vector<64x64xf32>
    %c2_50 = arith.constant 2 : index
    %c0_51 = arith.constant 0 : index
    %c0_52 = arith.constant 0 : index
    %79 = vector.load %arg4[%c2_50, %c0_51, %c0_52] : memref<25x64x128xf32, #tpu.memory_space<vmem>>, vector<1x64x128xf32>
    %80 = vector.shape_cast %79 : vector<1x64x128xf32> to vector<64x128xf32>
    %cst_53 = arith.constant dense<0.000000e+00> : vector<64x128xf32>
    %81 = tpu.matmul %78, %80, %cst_53 {dimension_numbers = #tpu.dot_dimension_numbers<[1], [0], [0], [1], [0, 0, 1, 1], [], []>} : vector<64x64xf32>, vector<64x128xf32>, vector<64x128xf32> -> vector<64x128xf32>
    %82 = arith.addf %76, %81 : vector<64x128xf32>
    %c0_54 = arith.constant 0 : index
    %c3_55 = arith.constant 3 : index
    %c0_56 = arith.constant 0 : index
    %83 = vector.load %arg13[%c0_54, %c3_55, %c0_56] : memref<12x12x64xf32, #tpu.memory_space<vmem>>, vector<8x8x64xf32>
    %84 = vector.shape_cast %83 : vector<8x8x64xf32> to vector<64x64xf32>
    %c3_57 = arith.constant 3 : index
    %c0_58 = arith.constant 0 : index
    %c0_59 = arith.constant 0 : index
    %85 = vector.load %arg4[%c3_57, %c0_58, %c0_59] : memref<25x64x128xf32, #tpu.memory_space<vmem>>, vector<1x64x128xf32>
    %86 = vector.shape_cast %85 : vector<1x64x128xf32> to vector<64x128xf32>
    %cst_60 = arith.constant dense<0.000000e+00> : vector<64x128xf32>
    %87 = tpu.matmul %84, %86, %cst_60 {dimension_numbers = #tpu.dot_dimension_numbers<[1], [0], [0], [1], [0, 0, 1, 1], [], []>} : vector<64x64xf32>, vector<64x128xf32>, vector<64x128xf32> -> vector<64x128xf32>
    %88 = arith.addf %82, %87 : vector<64x128xf32>
    %c0_61 = arith.constant 0 : index
    %c4_62 = arith.constant 4 : index
    %c0_63 = arith.constant 0 : index
    %89 = vector.load %arg13[%c0_61, %c4_62, %c0_63] : memref<12x12x64xf32, #tpu.memory_space<vmem>>, vector<8x8x64xf32>
    %90 = vector.shape_cast %89 : vector<8x8x64xf32> to vector<64x64xf32>
    %c4_64 = arith.constant 4 : index
    %c0_65 = arith.constant 0 : index
    %c0_66 = arith.constant 0 : index
    %91 = vector.load %arg4[%c4_64, %c0_65, %c0_66] : memref<25x64x128xf32, #tpu.memory_space<vmem>>, vector<1x64x128xf32>
    %92 = vector.shape_cast %91 : vector<1x64x128xf32> to vector<64x128xf32>
    %cst_67 = arith.constant dense<0.000000e+00> : vector<64x128xf32>
    %93 = tpu.matmul %90, %92, %cst_67 {dimension_numbers = #tpu.dot_dimension_numbers<[1], [0], [0], [1], [0, 0, 1, 1], [], []>} : vector<64x64xf32>, vector<64x128xf32>, vector<64x128xf32> -> vector<64x128xf32>
    %94 = arith.addf %88, %93 : vector<64x128xf32>
    %c1_68 = arith.constant 1 : index
    %c0_69 = arith.constant 0 : index
    %c0_70 = arith.constant 0 : index
    %95 = vector.load %arg13[%c1_68, %c0_69, %c0_70] : memref<12x12x64xf32, #tpu.memory_space<vmem>>, vector<8x8x64xf32>
    %96 = vector.shape_cast %95 : vector<8x8x64xf32> to vector<64x64xf32>
    %c5_71 = arith.constant 5 : index
    %c0_72 = arith.constant 0 : index
    %c0_73 = arith.constant 0 : index
    %97 = vector.load %arg4[%c5_71, %c0_72, %c0_73] : memref<25x64x128xf32, #tpu.memory_space<vmem>>, vector<1x64x128xf32>
    %98 = vector.shape_cast %97 : vector<1x64x128xf32> to vector<64x128xf32>
    %cst_74 = arith.constant dense<0.000000e+00> : vector<64x128xf32>
    %99 = tpu.matmul %96, %98, %cst_74 {dimension_numbers = #tpu.dot_dimension_numbers<[1], [0], [0], [1], [0, 0, 1, 1], [], []>} : vector<64x64xf32>, vector<64x128xf32>, vector<64x128xf32> -> vector<64x128xf32>
    %100 = arith.addf %94, %99 : vector<64x128xf32>
    %c1_75 = arith.constant 1 : index
    %c1_76 = arith.constant 1 : index
    %c0_77 = arith.constant 0 : index
    %101 = vector.load %arg13[%c1_75, %c1_76, %c0_77] : memref<12x12x64xf32, #tpu.memory_space<vmem>>, vector<8x8x64xf32>
    %102 = vector.shape_cast %101 : vector<8x8x64xf32> to vector<64x64xf32>
    %c6_78 = arith.constant 6 : index
    %c0_79 = arith.constant 0 : index
    %c0_80 = arith.constant 0 : index
    %103 = vector.load %arg4[%c6_78, %c0_79, %c0_80] : memref<25x64x128xf32, #tpu.memory_space<vmem>>, vector<1x64x128xf32>
    %104 = vector.shape_cast %103 : vector<1x64x128xf32> to vector<64x128xf32>
    %cst_81 = arith.constant dense<0.000000e+00> : vector<64x128xf32>
    %105 = tpu.matmul %102, %104, %cst_81 {dimension_numbers = #tpu.dot_dimension_numbers<[1], [0], [0], [1], [0, 0, 1, 1], [], []>} : vector<64x64xf32>, vector<64x128xf32>, vector<64x128xf32> -> vector<64x128xf32>
    %106 = arith.addf %100, %105 : vector<64x128xf32>
    %c1_82 = arith.constant 1 : index
    %c2_83 = arith.constant 2 : index
    %c0_84 = arith.constant 0 : index
    %107 = vector.load %arg13[%c1_82, %c2_83, %c0_84] : memref<12x12x64xf32, #tpu.memory_space<vmem>>, vector<8x8x64xf32>
    %108 = vector.shape_cast %107 : vector<8x8x64xf32> to vector<64x64xf32>
    %c7_85 = arith.constant 7 : index
    %c0_86 = arith.constant 0 : index
    %c0_87 = arith.constant 0 : index
    %109 = vector.load %arg4[%c7_85, %c0_86, %c0_87] : memref<25x64x128xf32, #tpu.memory_space<vmem>>, vector<1x64x128xf32>
    %110 = vector.shape_cast %109 : vector<1x64x128xf32> to vector<64x128xf32>
    %cst_88 = arith.constant dense<0.000000e+00> : vector<64x128xf32>
    %111 = tpu.matmul %108, %110, %cst_88 {dimension_numbers = #tpu.dot_dimension_numbers<[1], [0], [0], [1], [0, 0, 1, 1], [], []>} : vector<64x64xf32>, vector<64x128xf32>, vector<64x128xf32> -> vector<64x128xf32>
    %112 = arith.addf %106, %111 : vector<64x128xf32>
    %c1_89 = arith.constant 1 : index
    %c3_90 = arith.constant 3 : index
    %c0_91 = arith.constant 0 : index
    %113 = vector.load %arg13[%c1_89, %c3_90, %c0_91] : memref<12x12x64xf32, #tpu.memory_space<vmem>>, vector<8x8x64xf32>
    %114 = vector.shape_cast %113 : vector<8x8x64xf32> to vector<64x64xf32>
    %c8_92 = arith.constant 8 : index
    %c0_93 = arith.constant 0 : index
    %c0_94 = arith.constant 0 : index
    %115 = vector.load %arg4[%c8_92, %c0_93, %c0_94] : memref<25x64x128xf32, #tpu.memory_space<vmem>>, vector<1x64x128xf32>
    %116 = vector.shape_cast %115 : vector<1x64x128xf32> to vector<64x128xf32>
    %cst_95 = arith.constant dense<0.000000e+00> : vector<64x128xf32>
    %117 = tpu.matmul %114, %116, %cst_95 {dimension_numbers = #tpu.dot_dimension_numbers<[1], [0], [0], [1], [0, 0, 1, 1], [], []>} : vector<64x64xf32>, vector<64x128xf32>, vector<64x128xf32> -> vector<64x128xf32>
    %118 = arith.addf %112, %117 : vector<64x128xf32>
    %c1_96 = arith.constant 1 : index
    %c4_97 = arith.constant 4 : index
    %c0_98 = arith.constant 0 : index
    %119 = vector.load %arg13[%c1_96, %c4_97, %c0_98] : memref<12x12x64xf32, #tpu.memory_space<vmem>>, vector<8x8x64xf32>
    %120 = vector.shape_cast %119 : vector<8x8x64xf32> to vector<64x64xf32>
    %c9_99 = arith.constant 9 : index
    %c0_100 = arith.constant 0 : index
    %c0_101 = arith.constant 0 : index
    %121 = vector.load %arg4[%c9_99, %c0_100, %c0_101] : memref<25x64x128xf32, #tpu.memory_space<vmem>>, vector<1x64x128xf32>
    %122 = vector.shape_cast %121 : vector<1x64x128xf32> to vector<64x128xf32>
    %cst_102 = arith.constant dense<0.000000e+00> : vector<64x128xf32>
    %123 = tpu.matmul %120, %122, %cst_102 {dimension_numbers = #tpu.dot_dimension_numbers<[1], [0], [0], [1], [0, 0, 1, 1], [], []>} : vector<64x64xf32>, vector<64x128xf32>, vector<64x128xf32> -> vector<64x128xf32>
    %124 = arith.addf %118, %123 : vector<64x128xf32>
    %c2_103 = arith.constant 2 : index
    %c0_104 = arith.constant 0 : index
    %c0_105 = arith.constant 0 : index
    %125 = vector.load %arg13[%c2_103, %c0_104, %c0_105] : memref<12x12x64xf32, #tpu.memory_space<vmem>>, vector<8x8x64xf32>
    %126 = vector.shape_cast %125 : vector<8x8x64xf32> to vector<64x64xf32>
    %c10_106 = arith.constant 10 : index
    %c0_107 = arith.constant 0 : index
    %c0_108 = arith.constant 0 : index
    %127 = vector.load %arg4[%c10_106, %c0_107, %c0_108] : memref<25x64x128xf32, #tpu.memory_space<vmem>>, vector<1x64x128xf32>
    %128 = vector.shape_cast %127 : vector<1x64x128xf32> to vector<64x128xf32>
    %cst_109 = arith.constant dense<0.000000e+00> : vector<64x128xf32>
    %129 = tpu.matmul %126, %128, %cst_109 {dimension_numbers = #tpu.dot_dimension_numbers<[1], [0], [0], [1], [0, 0, 1, 1], [], []>} : vector<64x64xf32>, vector<64x128xf32>, vector<64x128xf32> -> vector<64x128xf32>
    %130 = arith.addf %124, %129 : vector<64x128xf32>
    %c2_110 = arith.constant 2 : index
    %c1_111 = arith.constant 1 : index
    %c0_112 = arith.constant 0 : index
    %131 = vector.load %arg13[%c2_110, %c1_111, %c0_112] : memref<12x12x64xf32, #tpu.memory_space<vmem>>, vector<8x8x64xf32>
    %132 = vector.shape_cast %131 : vector<8x8x64xf32> to vector<64x64xf32>
    %c11_113 = arith.constant 11 : index
    %c0_114 = arith.constant 0 : index
    %c0_115 = arith.constant 0 : index
    %133 = vector.load %arg4[%c11_113, %c0_114, %c0_115] : memref<25x64x128xf32, #tpu.memory_space<vmem>>, vector<1x64x128xf32>
    %134 = vector.shape_cast %133 : vector<1x64x128xf32> to vector<64x128xf32>
    %cst_116 = arith.constant dense<0.000000e+00> : vector<64x128xf32>
    %135 = tpu.matmul %132, %134, %cst_116 {dimension_numbers = #tpu.dot_dimension_numbers<[1], [0], [0], [1], [0, 0, 1, 1], [], []>} : vector<64x64xf32>, vector<64x128xf32>, vector<64x128xf32> -> vector<64x128xf32>
    %136 = arith.addf %130, %135 : vector<64x128xf32>
    %c2_117 = arith.constant 2 : index
    %c2_118 = arith.constant 2 : index
    %c0_119 = arith.constant 0 : index
    %137 = vector.load %arg13[%c2_117, %c2_118, %c0_119] : memref<12x12x64xf32, #tpu.memory_space<vmem>>, vector<8x8x64xf32>
    %138 = vector.shape_cast %137 : vector<8x8x64xf32> to vector<64x64xf32>
    %c12 = arith.constant 12 : index
    %c0_120 = arith.constant 0 : index
    %c0_121 = arith.constant 0 : index
    %139 = vector.load %arg4[%c12, %c0_120, %c0_121] : memref<25x64x128xf32, #tpu.memory_space<vmem>>, vector<1x64x128xf32>
    %140 = vector.shape_cast %139 : vector<1x64x128xf32> to vector<64x128xf32>
    %cst_122 = arith.constant dense<0.000000e+00> : vector<64x128xf32>
    %141 = tpu.matmul %138, %140, %cst_122 {dimension_numbers = #tpu.dot_dimension_numbers<[1], [0], [0], [1], [0, 0, 1, 1], [], []>} : vector<64x64xf32>, vector<64x128xf32>, vector<64x128xf32> -> vector<64x128xf32>
    %142 = arith.addf %136, %141 : vector<64x128xf32>
    %c2_123 = arith.constant 2 : index
    %c3_124 = arith.constant 3 : index
    %c0_125 = arith.constant 0 : index
    %143 = vector.load %arg13[%c2_123, %c3_124, %c0_125] : memref<12x12x64xf32, #tpu.memory_space<vmem>>, vector<8x8x64xf32>
    %144 = vector.shape_cast %143 : vector<8x8x64xf32> to vector<64x64xf32>
    %c13 = arith.constant 13 : index
    %c0_126 = arith.constant 0 : index
    %c0_127 = arith.constant 0 : index
    %145 = vector.load %arg4[%c13, %c0_126, %c0_127] : memref<25x64x128xf32, #tpu.memory_space<vmem>>, vector<1x64x128xf32>
    %146 = vector.shape_cast %145 : vector<1x64x128xf32> to vector<64x128xf32>
    %cst_128 = arith.constant dense<0.000000e+00> : vector<64x128xf32>
    %147 = tpu.matmul %144, %146, %cst_128 {dimension_numbers = #tpu.dot_dimension_numbers<[1], [0], [0], [1], [0, 0, 1, 1], [], []>} : vector<64x64xf32>, vector<64x128xf32>, vector<64x128xf32> -> vector<64x128xf32>
    %148 = arith.addf %142, %147 : vector<64x128xf32>
    %c2_129 = arith.constant 2 : index
    %c4_130 = arith.constant 4 : index
    %c0_131 = arith.constant 0 : index
    %149 = vector.load %arg13[%c2_129, %c4_130, %c0_131] : memref<12x12x64xf32, #tpu.memory_space<vmem>>, vector<8x8x64xf32>
    %150 = vector.shape_cast %149 : vector<8x8x64xf32> to vector<64x64xf32>
    %c14 = arith.constant 14 : index
    %c0_132 = arith.constant 0 : index
    %c0_133 = arith.constant 0 : index
    %151 = vector.load %arg4[%c14, %c0_132, %c0_133] : memref<25x64x128xf32, #tpu.memory_space<vmem>>, vector<1x64x128xf32>
    %152 = vector.shape_cast %151 : vector<1x64x128xf32> to vector<64x128xf32>
    %cst_134 = arith.constant dense<0.000000e+00> : vector<64x128xf32>
    %153 = tpu.matmul %150, %152, %cst_134 {dimension_numbers = #tpu.dot_dimension_numbers<[1], [0], [0], [1], [0, 0, 1, 1], [], []>} : vector<64x64xf32>, vector<64x128xf32>, vector<64x128xf32> -> vector<64x128xf32>
    %154 = arith.addf %148, %153 : vector<64x128xf32>
    %c3_135 = arith.constant 3 : index
    %c0_136 = arith.constant 0 : index
    %c0_137 = arith.constant 0 : index
    %155 = vector.load %arg13[%c3_135, %c0_136, %c0_137] : memref<12x12x64xf32, #tpu.memory_space<vmem>>, vector<8x8x64xf32>
    %156 = vector.shape_cast %155 : vector<8x8x64xf32> to vector<64x64xf32>
    %c15 = arith.constant 15 : index
    %c0_138 = arith.constant 0 : index
    %c0_139 = arith.constant 0 : index
    %157 = vector.load %arg4[%c15, %c0_138, %c0_139] : memref<25x64x128xf32, #tpu.memory_space<vmem>>, vector<1x64x128xf32>
    %158 = vector.shape_cast %157 : vector<1x64x128xf32> to vector<64x128xf32>
    %cst_140 = arith.constant dense<0.000000e+00> : vector<64x128xf32>
    %159 = tpu.matmul %156, %158, %cst_140 {dimension_numbers = #tpu.dot_dimension_numbers<[1], [0], [0], [1], [0, 0, 1, 1], [], []>} : vector<64x64xf32>, vector<64x128xf32>, vector<64x128xf32> -> vector<64x128xf32>
    %160 = arith.addf %154, %159 : vector<64x128xf32>
    %c3_141 = arith.constant 3 : index
    %c1_142 = arith.constant 1 : index
    %c0_143 = arith.constant 0 : index
    %161 = vector.load %arg13[%c3_141, %c1_142, %c0_143] : memref<12x12x64xf32, #tpu.memory_space<vmem>>, vector<8x8x64xf32>
    %162 = vector.shape_cast %161 : vector<8x8x64xf32> to vector<64x64xf32>
    %c16 = arith.constant 16 : index
    %c0_144 = arith.constant 0 : index
    %c0_145 = arith.constant 0 : index
    %163 = vector.load %arg4[%c16, %c0_144, %c0_145] : memref<25x64x128xf32, #tpu.memory_space<vmem>>, vector<1x64x128xf32>
    %164 = vector.shape_cast %163 : vector<1x64x128xf32> to vector<64x128xf32>
    %cst_146 = arith.constant dense<0.000000e+00> : vector<64x128xf32>
    %165 = tpu.matmul %162, %164, %cst_146 {dimension_numbers = #tpu.dot_dimension_numbers<[1], [0], [0], [1], [0, 0, 1, 1], [], []>} : vector<64x64xf32>, vector<64x128xf32>, vector<64x128xf32> -> vector<64x128xf32>
    %166 = arith.addf %160, %165 : vector<64x128xf32>
    %c3_147 = arith.constant 3 : index
    %c2_148 = arith.constant 2 : index
    %c0_149 = arith.constant 0 : index
    %167 = vector.load %arg13[%c3_147, %c2_148, %c0_149] : memref<12x12x64xf32, #tpu.memory_space<vmem>>, vector<8x8x64xf32>
    %168 = vector.shape_cast %167 : vector<8x8x64xf32> to vector<64x64xf32>
    %c17 = arith.constant 17 : index
    %c0_150 = arith.constant 0 : index
    %c0_151 = arith.constant 0 : index
    %169 = vector.load %arg4[%c17, %c0_150, %c0_151] : memref<25x64x128xf32, #tpu.memory_space<vmem>>, vector<1x64x128xf32>
    %170 = vector.shape_cast %169 : vector<1x64x128xf32> to vector<64x128xf32>
    %cst_152 = arith.constant dense<0.000000e+00> : vector<64x128xf32>
    %171 = tpu.matmul %168, %170, %cst_152 {dimension_numbers = #tpu.dot_dimension_numbers<[1], [0], [0], [1], [0, 0, 1, 1], [], []>} : vector<64x64xf32>, vector<64x128xf32>, vector<64x128xf32> -> vector<64x128xf32>
    %172 = arith.addf %166, %171 : vector<64x128xf32>
    %c3_153 = arith.constant 3 : index
    %c3_154 = arith.constant 3 : index
    %c0_155 = arith.constant 0 : index
    %173 = vector.load %arg13[%c3_153, %c3_154, %c0_155] : memref<12x12x64xf32, #tpu.memory_space<vmem>>, vector<8x8x64xf32>
    %174 = vector.shape_cast %173 : vector<8x8x64xf32> to vector<64x64xf32>
    %c18 = arith.constant 18 : index
    %c0_156 = arith.constant 0 : index
    %c0_157 = arith.constant 0 : index
    %175 = vector.load %arg4[%c18, %c0_156, %c0_157] : memref<25x64x128xf32, #tpu.memory_space<vmem>>, vector<1x64x128xf32>
    %176 = vector.shape_cast %175 : vector<1x64x128xf32> to vector<64x128xf32>
    %cst_158 = arith.constant dense<0.000000e+00> : vector<64x128xf32>
    %177 = tpu.matmul %174, %176, %cst_158 {dimension_numbers = #tpu.dot_dimension_numbers<[1], [0], [0], [1], [0, 0, 1, 1], [], []>} : vector<64x64xf32>, vector<64x128xf32>, vector<64x128xf32> -> vector<64x128xf32>
    %178 = arith.addf %172, %177 : vector<64x128xf32>
    %c3_159 = arith.constant 3 : index
    %c4_160 = arith.constant 4 : index
    %c0_161 = arith.constant 0 : index
    %179 = vector.load %arg13[%c3_159, %c4_160, %c0_161] : memref<12x12x64xf32, #tpu.memory_space<vmem>>, vector<8x8x64xf32>
    %180 = vector.shape_cast %179 : vector<8x8x64xf32> to vector<64x64xf32>
    %c19 = arith.constant 19 : index
    %c0_162 = arith.constant 0 : index
    %c0_163 = arith.constant 0 : index
    %181 = vector.load %arg4[%c19, %c0_162, %c0_163] : memref<25x64x128xf32, #tpu.memory_space<vmem>>, vector<1x64x128xf32>
    %182 = vector.shape_cast %181 : vector<1x64x128xf32> to vector<64x128xf32>
    %cst_164 = arith.constant dense<0.000000e+00> : vector<64x128xf32>
    %183 = tpu.matmul %180, %182, %cst_164 {dimension_numbers = #tpu.dot_dimension_numbers<[1], [0], [0], [1], [0, 0, 1, 1], [], []>} : vector<64x64xf32>, vector<64x128xf32>, vector<64x128xf32> -> vector<64x128xf32>
    %184 = arith.addf %178, %183 : vector<64x128xf32>
    %c4_165 = arith.constant 4 : index
    %c0_166 = arith.constant 0 : index
    %c0_167 = arith.constant 0 : index
    %185 = vector.load %arg13[%c4_165, %c0_166, %c0_167] : memref<12x12x64xf32, #tpu.memory_space<vmem>>, vector<8x8x64xf32>
    %186 = vector.shape_cast %185 : vector<8x8x64xf32> to vector<64x64xf32>
    %c20 = arith.constant 20 : index
    %c0_168 = arith.constant 0 : index
    %c0_169 = arith.constant 0 : index
    %187 = vector.load %arg4[%c20, %c0_168, %c0_169] : memref<25x64x128xf32, #tpu.memory_space<vmem>>, vector<1x64x128xf32>
    %188 = vector.shape_cast %187 : vector<1x64x128xf32> to vector<64x128xf32>
    %cst_170 = arith.constant dense<0.000000e+00> : vector<64x128xf32>
    %189 = tpu.matmul %186, %188, %cst_170 {dimension_numbers = #tpu.dot_dimension_numbers<[1], [0], [0], [1], [0, 0, 1, 1], [], []>} : vector<64x64xf32>, vector<64x128xf32>, vector<64x128xf32> -> vector<64x128xf32>
    %190 = arith.addf %184, %189 : vector<64x128xf32>
    %c4_171 = arith.constant 4 : index
    %c1_172 = arith.constant 1 : index
    %c0_173 = arith.constant 0 : index
    %191 = vector.load %arg13[%c4_171, %c1_172, %c0_173] : memref<12x12x64xf32, #tpu.memory_space<vmem>>, vector<8x8x64xf32>
    %192 = vector.shape_cast %191 : vector<8x8x64xf32> to vector<64x64xf32>
    %c21 = arith.constant 21 : index
    %c0_174 = arith.constant 0 : index
    %c0_175 = arith.constant 0 : index
    %193 = vector.load %arg4[%c21, %c0_174, %c0_175] : memref<25x64x128xf32, #tpu.memory_space<vmem>>, vector<1x64x128xf32>
    %194 = vector.shape_cast %193 : vector<1x64x128xf32> to vector<64x128xf32>
    %cst_176 = arith.constant dense<0.000000e+00> : vector<64x128xf32>
    %195 = tpu.matmul %192, %194, %cst_176 {dimension_numbers = #tpu.dot_dimension_numbers<[1], [0], [0], [1], [0, 0, 1, 1], [], []>} : vector<64x64xf32>, vector<64x128xf32>, vector<64x128xf32> -> vector<64x128xf32>
    %196 = arith.addf %190, %195 : vector<64x128xf32>
    %c4_177 = arith.constant 4 : index
    %c2_178 = arith.constant 2 : index
    %c0_179 = arith.constant 0 : index
    %197 = vector.load %arg13[%c4_177, %c2_178, %c0_179] : memref<12x12x64xf32, #tpu.memory_space<vmem>>, vector<8x8x64xf32>
    %198 = vector.shape_cast %197 : vector<8x8x64xf32> to vector<64x64xf32>
    %c22 = arith.constant 22 : index
    %c0_180 = arith.constant 0 : index
    %c0_181 = arith.constant 0 : index
    %199 = vector.load %arg4[%c22, %c0_180, %c0_181] : memref<25x64x128xf32, #tpu.memory_space<vmem>>, vector<1x64x128xf32>
    %200 = vector.shape_cast %199 : vector<1x64x128xf32> to vector<64x128xf32>
    %cst_182 = arith.constant dense<0.000000e+00> : vector<64x128xf32>
    %201 = tpu.matmul %198, %200, %cst_182 {dimension_numbers = #tpu.dot_dimension_numbers<[1], [0], [0], [1], [0, 0, 1, 1], [], []>} : vector<64x64xf32>, vector<64x128xf32>, vector<64x128xf32> -> vector<64x128xf32>
    %202 = arith.addf %196, %201 : vector<64x128xf32>
    %c4_183 = arith.constant 4 : index
    %c3_184 = arith.constant 3 : index
    %c0_185 = arith.constant 0 : index
    %203 = vector.load %arg13[%c4_183, %c3_184, %c0_185] : memref<12x12x64xf32, #tpu.memory_space<vmem>>, vector<8x8x64xf32>
    %204 = vector.shape_cast %203 : vector<8x8x64xf32> to vector<64x64xf32>
    %c23 = arith.constant 23 : index
    %c0_186 = arith.constant 0 : index
    %c0_187 = arith.constant 0 : index
    %205 = vector.load %arg4[%c23, %c0_186, %c0_187] : memref<25x64x128xf32, #tpu.memory_space<vmem>>, vector<1x64x128xf32>
    %206 = vector.shape_cast %205 : vector<1x64x128xf32> to vector<64x128xf32>
    %cst_188 = arith.constant dense<0.000000e+00> : vector<64x128xf32>
    %207 = tpu.matmul %204, %206, %cst_188 {dimension_numbers = #tpu.dot_dimension_numbers<[1], [0], [0], [1], [0, 0, 1, 1], [], []>} : vector<64x64xf32>, vector<64x128xf32>, vector<64x128xf32> -> vector<64x128xf32>
    %208 = arith.addf %202, %207 : vector<64x128xf32>
    %c4_189 = arith.constant 4 : index
    %c4_190 = arith.constant 4 : index
    %c0_191 = arith.constant 0 : index
    %209 = vector.load %arg13[%c4_189, %c4_190, %c0_191] : memref<12x12x64xf32, #tpu.memory_space<vmem>>, vector<8x8x64xf32>
    %210 = vector.shape_cast %209 : vector<8x8x64xf32> to vector<64x64xf32>
    %c24 = arith.constant 24 : index
    %c0_192 = arith.constant 0 : index
    %c0_193 = arith.constant 0 : index
    %211 = vector.load %arg4[%c24, %c0_192, %c0_193] : memref<25x64x128xf32, #tpu.memory_space<vmem>>, vector<1x64x128xf32>
    %212 = vector.shape_cast %211 : vector<1x64x128xf32> to vector<64x128xf32>
    %cst_194 = arith.constant dense<0.000000e+00> : vector<64x128xf32>
    %213 = tpu.matmul %210, %212, %cst_194 {dimension_numbers = #tpu.dot_dimension_numbers<[1], [0], [0], [1], [0, 0, 1, 1], [], []>} : vector<64x64xf32>, vector<64x128xf32>, vector<64x128xf32> -> vector<64x128xf32>
    %214 = arith.addf %208, %213 : vector<64x128xf32>
    %215 = vector.shape_cast %214 : vector<64x128xf32> to vector<32x2x128xf32>
    %cst_195 = arith.constant dense<0xFF800000> : vector<32x128xf32>
    %216 = vector.multi_reduction <maximumf>, %215, %cst_195 [1] : vector<32x2x128xf32> to vector<32x128xf32>
    %217 = vector.shape_cast %216 : vector<32x128xf32> to vector<4x2x4x128xf32>
    %cst_196 = arith.constant dense<0xFF800000> : vector<4x4x128xf32>
    %218 = vector.multi_reduction <maximumf>, %217, %cst_196 [1] : vector<4x2x4x128xf32> to vector<4x4x128xf32>
    %219 = vector.shape_cast %218 : vector<4x4x128xf32> to vector<16x128xf32>
    %c0_197 = arith.constant 0 : index
    %c0_198 = arith.constant 0 : index
    %220 = vector.load %arg5[%c0_197, %c0_198] : memref<1x128xf32, #tpu.memory_space<vmem>>, vector<1x128xf32>
    %221 = vector.broadcast %220 : vector<1x128xf32> to vector<16x128xf32>
    %222 = arith.addf %219, %221 : vector<16x128xf32>
    %cst_199 = arith.constant 0.000000e+00 : f32
    %223 = vector.broadcast %cst_199 : f32 to vector<16x128xf32>
    %224 = arith.maximumf %222, %223 : vector<16x128xf32>
    %c0_200 = arith.constant 0 : index
    %c0_201 = arith.constant 0 : index
    %225 = vector.load %arg7[%c0_200, %c0_201] : memref<1x256xf32, #tpu.memory_space<vmem>>, vector<1x256xf32>
    %226 = vector.extract_strided_slice %224 {offsets = [0, 0], sizes = [1, 128], strides = [1, 1]} : vector<16x128xf32> to vector<1x128xf32>
    %c0_202 = arith.constant 0 : index
    %c0_203 = arith.constant 0 : index
    %227 = vector.load %arg6[%c0_202, %c0_203] : memref<2048x256xf32, #tpu.memory_space<vmem>>, vector<128x256xf32>
    %cst_204 = arith.constant dense<0.000000e+00> : vector<1x256xf32>
    %228 = tpu.matmul %226, %227, %cst_204 {dimension_numbers = #tpu.dot_dimension_numbers<[1], [0], [0], [1], [0, 0, 1, 1], [], []>} : vector<1x128xf32>, vector<128x256xf32>, vector<1x256xf32> -> vector<1x256xf32>
    %229 = arith.addf %225, %228 : vector<1x256xf32>
    %230 = vector.extract_strided_slice %224 {offsets = [1, 0], sizes = [1, 128], strides = [1, 1]} : vector<16x128xf32> to vector<1x128xf32>
    %c128 = arith.constant 128 : index
    %c0_205 = arith.constant 0 : index
    %231 = vector.load %arg6[%c128, %c0_205] : memref<2048x256xf32, #tpu.memory_space<vmem>>, vector<128x256xf32>
    %cst_206 = arith.constant dense<0.000000e+00> : vector<1x256xf32>
    %232 = tpu.matmul %230, %231, %cst_206 {dimension_numbers = #tpu.dot_dimension_numbers<[1], [0], [0], [1], [0, 0, 1, 1], [], []>} : vector<1x128xf32>, vector<128x256xf32>, vector<1x256xf32> -> vector<1x256xf32>
    %233 = arith.addf %229, %232 : vector<1x256xf32>
    %234 = vector.extract_strided_slice %224 {offsets = [2, 0], sizes = [1, 128], strides = [1, 1]} : vector<16x128xf32> to vector<1x128xf32>
    %c256 = arith.constant 256 : index
    %c0_207 = arith.constant 0 : index
    %235 = vector.load %arg6[%c256, %c0_207] : memref<2048x256xf32, #tpu.memory_space<vmem>>, vector<128x256xf32>
    %cst_208 = arith.constant dense<0.000000e+00> : vector<1x256xf32>
    %236 = tpu.matmul %234, %235, %cst_208 {dimension_numbers = #tpu.dot_dimension_numbers<[1], [0], [0], [1], [0, 0, 1, 1], [], []>} : vector<1x128xf32>, vector<128x256xf32>, vector<1x256xf32> -> vector<1x256xf32>
    %237 = arith.addf %233, %236 : vector<1x256xf32>
    %238 = vector.extract_strided_slice %224 {offsets = [3, 0], sizes = [1, 128], strides = [1, 1]} : vector<16x128xf32> to vector<1x128xf32>
    %c384 = arith.constant 384 : index
    %c0_209 = arith.constant 0 : index
    %239 = vector.load %arg6[%c384, %c0_209] : memref<2048x256xf32, #tpu.memory_space<vmem>>, vector<128x256xf32>
    %cst_210 = arith.constant dense<0.000000e+00> : vector<1x256xf32>
    %240 = tpu.matmul %238, %239, %cst_210 {dimension_numbers = #tpu.dot_dimension_numbers<[1], [0], [0], [1], [0, 0, 1, 1], [], []>} : vector<1x128xf32>, vector<128x256xf32>, vector<1x256xf32> -> vector<1x256xf32>
    %241 = arith.addf %237, %240 : vector<1x256xf32>
    %242 = vector.extract_strided_slice %224 {offsets = [4, 0], sizes = [1, 128], strides = [1, 1]} : vector<16x128xf32> to vector<1x128xf32>
    %c512 = arith.constant 512 : index
    %c0_211 = arith.constant 0 : index
    %243 = vector.load %arg6[%c512, %c0_211] : memref<2048x256xf32, #tpu.memory_space<vmem>>, vector<128x256xf32>
    %cst_212 = arith.constant dense<0.000000e+00> : vector<1x256xf32>
    %244 = tpu.matmul %242, %243, %cst_212 {dimension_numbers = #tpu.dot_dimension_numbers<[1], [0], [0], [1], [0, 0, 1, 1], [], []>} : vector<1x128xf32>, vector<128x256xf32>, vector<1x256xf32> -> vector<1x256xf32>
    %245 = arith.addf %241, %244 : vector<1x256xf32>
    %246 = vector.extract_strided_slice %224 {offsets = [5, 0], sizes = [1, 128], strides = [1, 1]} : vector<16x128xf32> to vector<1x128xf32>
    %c640 = arith.constant 640 : index
    %c0_213 = arith.constant 0 : index
    %247 = vector.load %arg6[%c640, %c0_213] : memref<2048x256xf32, #tpu.memory_space<vmem>>, vector<128x256xf32>
    %cst_214 = arith.constant dense<0.000000e+00> : vector<1x256xf32>
    %248 = tpu.matmul %246, %247, %cst_214 {dimension_numbers = #tpu.dot_dimension_numbers<[1], [0], [0], [1], [0, 0, 1, 1], [], []>} : vector<1x128xf32>, vector<128x256xf32>, vector<1x256xf32> -> vector<1x256xf32>
    %249 = arith.addf %245, %248 : vector<1x256xf32>
    %250 = vector.extract_strided_slice %224 {offsets = [6, 0], sizes = [1, 128], strides = [1, 1]} : vector<16x128xf32> to vector<1x128xf32>
    %c768 = arith.constant 768 : index
    %c0_215 = arith.constant 0 : index
    %251 = vector.load %arg6[%c768, %c0_215] : memref<2048x256xf32, #tpu.memory_space<vmem>>, vector<128x256xf32>
    %cst_216 = arith.constant dense<0.000000e+00> : vector<1x256xf32>
    %252 = tpu.matmul %250, %251, %cst_216 {dimension_numbers = #tpu.dot_dimension_numbers<[1], [0], [0], [1], [0, 0, 1, 1], [], []>} : vector<1x128xf32>, vector<128x256xf32>, vector<1x256xf32> -> vector<1x256xf32>
    %253 = arith.addf %249, %252 : vector<1x256xf32>
    %254 = vector.extract_strided_slice %224 {offsets = [7, 0], sizes = [1, 128], strides = [1, 1]} : vector<16x128xf32> to vector<1x128xf32>
    %c896 = arith.constant 896 : index
    %c0_217 = arith.constant 0 : index
    %255 = vector.load %arg6[%c896, %c0_217] : memref<2048x256xf32, #tpu.memory_space<vmem>>, vector<128x256xf32>
    %cst_218 = arith.constant dense<0.000000e+00> : vector<1x256xf32>
    %256 = tpu.matmul %254, %255, %cst_218 {dimension_numbers = #tpu.dot_dimension_numbers<[1], [0], [0], [1], [0, 0, 1, 1], [], []>} : vector<1x128xf32>, vector<128x256xf32>, vector<1x256xf32> -> vector<1x256xf32>
    %257 = arith.addf %253, %256 : vector<1x256xf32>
    %258 = vector.extract_strided_slice %224 {offsets = [8, 0], sizes = [1, 128], strides = [1, 1]} : vector<16x128xf32> to vector<1x128xf32>
    %c1024 = arith.constant 1024 : index
    %c0_219 = arith.constant 0 : index
    %259 = vector.load %arg6[%c1024, %c0_219] : memref<2048x256xf32, #tpu.memory_space<vmem>>, vector<128x256xf32>
    %cst_220 = arith.constant dense<0.000000e+00> : vector<1x256xf32>
    %260 = tpu.matmul %258, %259, %cst_220 {dimension_numbers = #tpu.dot_dimension_numbers<[1], [0], [0], [1], [0, 0, 1, 1], [], []>} : vector<1x128xf32>, vector<128x256xf32>, vector<1x256xf32> -> vector<1x256xf32>
    %261 = arith.addf %257, %260 : vector<1x256xf32>
    %262 = vector.extract_strided_slice %224 {offsets = [9, 0], sizes = [1, 128], strides = [1, 1]} : vector<16x128xf32> to vector<1x128xf32>
    %c1152 = arith.constant 1152 : index
    %c0_221 = arith.constant 0 : index
    %263 = vector.load %arg6[%c1152, %c0_221] : memref<2048x256xf32, #tpu.memory_space<vmem>>, vector<128x256xf32>
    %cst_222 = arith.constant dense<0.000000e+00> : vector<1x256xf32>
    %264 = tpu.matmul %262, %263, %cst_222 {dimension_numbers = #tpu.dot_dimension_numbers<[1], [0], [0], [1], [0, 0, 1, 1], [], []>} : vector<1x128xf32>, vector<128x256xf32>, vector<1x256xf32> -> vector<1x256xf32>
    %265 = arith.addf %261, %264 : vector<1x256xf32>
    %266 = vector.extract_strided_slice %224 {offsets = [10, 0], sizes = [1, 128], strides = [1, 1]} : vector<16x128xf32> to vector<1x128xf32>
    %c1280 = arith.constant 1280 : index
    %c0_223 = arith.constant 0 : index
    %267 = vector.load %arg6[%c1280, %c0_223] : memref<2048x256xf32, #tpu.memory_space<vmem>>, vector<128x256xf32>
    %cst_224 = arith.constant dense<0.000000e+00> : vector<1x256xf32>
    %268 = tpu.matmul %266, %267, %cst_224 {dimension_numbers = #tpu.dot_dimension_numbers<[1], [0], [0], [1], [0, 0, 1, 1], [], []>} : vector<1x128xf32>, vector<128x256xf32>, vector<1x256xf32> -> vector<1x256xf32>
    %269 = arith.addf %265, %268 : vector<1x256xf32>
    %270 = vector.extract_strided_slice %224 {offsets = [11, 0], sizes = [1, 128], strides = [1, 1]} : vector<16x128xf32> to vector<1x128xf32>
    %c1408 = arith.constant 1408 : index
    %c0_225 = arith.constant 0 : index
    %271 = vector.load %arg6[%c1408, %c0_225] : memref<2048x256xf32, #tpu.memory_space<vmem>>, vector<128x256xf32>
    %cst_226 = arith.constant dense<0.000000e+00> : vector<1x256xf32>
    %272 = tpu.matmul %270, %271, %cst_226 {dimension_numbers = #tpu.dot_dimension_numbers<[1], [0], [0], [1], [0, 0, 1, 1], [], []>} : vector<1x128xf32>, vector<128x256xf32>, vector<1x256xf32> -> vector<1x256xf32>
    %273 = arith.addf %269, %272 : vector<1x256xf32>
    %274 = vector.extract_strided_slice %224 {offsets = [12, 0], sizes = [1, 128], strides = [1, 1]} : vector<16x128xf32> to vector<1x128xf32>
    %c1536 = arith.constant 1536 : index
    %c0_227 = arith.constant 0 : index
    %275 = vector.load %arg6[%c1536, %c0_227] : memref<2048x256xf32, #tpu.memory_space<vmem>>, vector<128x256xf32>
    %cst_228 = arith.constant dense<0.000000e+00> : vector<1x256xf32>
    %276 = tpu.matmul %274, %275, %cst_228 {dimension_numbers = #tpu.dot_dimension_numbers<[1], [0], [0], [1], [0, 0, 1, 1], [], []>} : vector<1x128xf32>, vector<128x256xf32>, vector<1x256xf32> -> vector<1x256xf32>
    %277 = arith.addf %273, %276 : vector<1x256xf32>
    %278 = vector.extract_strided_slice %224 {offsets = [13, 0], sizes = [1, 128], strides = [1, 1]} : vector<16x128xf32> to vector<1x128xf32>
    %c1664 = arith.constant 1664 : index
    %c0_229 = arith.constant 0 : index
    %279 = vector.load %arg6[%c1664, %c0_229] : memref<2048x256xf32, #tpu.memory_space<vmem>>, vector<128x256xf32>
    %cst_230 = arith.constant dense<0.000000e+00> : vector<1x256xf32>
    %280 = tpu.matmul %278, %279, %cst_230 {dimension_numbers = #tpu.dot_dimension_numbers<[1], [0], [0], [1], [0, 0, 1, 1], [], []>} : vector<1x128xf32>, vector<128x256xf32>, vector<1x256xf32> -> vector<1x256xf32>
    %281 = arith.addf %277, %280 : vector<1x256xf32>
    %282 = vector.extract_strided_slice %224 {offsets = [14, 0], sizes = [1, 128], strides = [1, 1]} : vector<16x128xf32> to vector<1x128xf32>
    %c1792 = arith.constant 1792 : index
    %c0_231 = arith.constant 0 : index
    %283 = vector.load %arg6[%c1792, %c0_231] : memref<2048x256xf32, #tpu.memory_space<vmem>>, vector<128x256xf32>
    %cst_232 = arith.constant dense<0.000000e+00> : vector<1x256xf32>
    %284 = tpu.matmul %282, %283, %cst_232 {dimension_numbers = #tpu.dot_dimension_numbers<[1], [0], [0], [1], [0, 0, 1, 1], [], []>} : vector<1x128xf32>, vector<128x256xf32>, vector<1x256xf32> -> vector<1x256xf32>
    %285 = arith.addf %281, %284 : vector<1x256xf32>
    %286 = vector.extract_strided_slice %224 {offsets = [15, 0], sizes = [1, 128], strides = [1, 1]} : vector<16x128xf32> to vector<1x128xf32>
    %c1920 = arith.constant 1920 : index
    %c0_233 = arith.constant 0 : index
    %287 = vector.load %arg6[%c1920, %c0_233] : memref<2048x256xf32, #tpu.memory_space<vmem>>, vector<128x256xf32>
    %cst_234 = arith.constant dense<0.000000e+00> : vector<1x256xf32>
    %288 = tpu.matmul %286, %287, %cst_234 {dimension_numbers = #tpu.dot_dimension_numbers<[1], [0], [0], [1], [0, 0, 1, 1], [], []>} : vector<1x128xf32>, vector<128x256xf32>, vector<1x256xf32> -> vector<1x256xf32>
    %289 = arith.addf %285, %288 : vector<1x256xf32>
    %cst_235 = arith.constant 0.000000e+00 : f32
    %290 = vector.broadcast %cst_235 : f32 to vector<1x256xf32>
    %291 = arith.maximumf %289, %290 : vector<1x256xf32>
    %c0_236 = arith.constant 0 : index
    %c0_237 = arith.constant 0 : index
    %292 = vector.load %arg8[%c0_236, %c0_237] : memref<256x256xf32, #tpu.memory_space<vmem>>, vector<256x256xf32>
    %cst_238 = arith.constant dense<0.000000e+00> : vector<1x256xf32>
    %293 = tpu.matmul %291, %292, %cst_238 {dimension_numbers = #tpu.dot_dimension_numbers<[1], [0], [0], [1], [0, 0, 1, 1], [], []>} : vector<1x256xf32>, vector<256x256xf32>, vector<1x256xf32> -> vector<1x256xf32>
    %c0_239 = arith.constant 0 : index
    %c0_240 = arith.constant 0 : index
    %294 = vector.load %arg9[%c0_239, %c0_240] : memref<1x256xf32, #tpu.memory_space<vmem>>, vector<1x256xf32>
    %295 = arith.addf %293, %294 : vector<1x256xf32>
    %cst_241 = arith.constant 0.000000e+00 : f32
    %296 = vector.broadcast %cst_241 : f32 to vector<1x256xf32>
    %297 = arith.maximumf %295, %296 : vector<1x256xf32>
    %c0_242 = arith.constant 0 : index
    %c0_243 = arith.constant 0 : index
    %298 = vector.load %arg10[%c0_242, %c0_243] : memref<256x128xf32, #tpu.memory_space<vmem>>, vector<256x128xf32>
    %cst_244 = arith.constant dense<0.000000e+00> : vector<1x128xf32>
    %299 = tpu.matmul %297, %298, %cst_244 {dimension_numbers = #tpu.dot_dimension_numbers<[1], [0], [0], [1], [0, 0, 1, 1], [], []>} : vector<1x256xf32>, vector<256x128xf32>, vector<1x128xf32> -> vector<1x128xf32>
    %c0_245 = arith.constant 0 : index
    %c0_246 = arith.constant 0 : index
    %300 = vector.load %arg11[%c0_245, %c0_246] : memref<1x128xf32, #tpu.memory_space<vmem>>, vector<1x128xf32>
    %301 = arith.addf %299, %300 : vector<1x128xf32>
    %c0_247 = arith.constant 0 : index
    %c0_248 = arith.constant 0 : index
    %c0_249 = arith.constant 0 : index
    %302 = vector.load %arg12[%c0_247, %c0_248, %c0_249] : memref<1x1x128xf32, #tpu.memory_space<vmem>>, vector<1x1x128xf32>
    %303 = vector.shape_cast %302 : vector<1x1x128xf32> to vector<1x128xf32>
    %304 = vector.shape_cast %301 : vector<1x128xf32> to vector<1x1x128xf32>
    tpu.vector_store %arg12[%c0_247, %c0_248, %c0_249], %304 {strides = array<i32>} : memref<1x1x128xf32, #tpu.memory_space<vmem>>, vector<1x1x128xf32>,
    return
  }
  func.func @transform_0(%arg0: i32) -> (i32, i32, i32) {
    %c0_i32 = arith.constant 0 : i32
    %c0_i32_0 = arith.constant 0 : i32
    %c0_i32_1 = arith.constant 0 : i32
    return %arg0, %c0_i32, %c0_i32_0 : i32, i32, i32
  }
  func.func @transform_1(%arg0: i32) -> (i32, i32) {
    %c0_i32 = arith.constant 0 : i32
    %c0_i32_0 = arith.constant 0 : i32
    %c0_i32_1 = arith.constant 0 : i32
    return %c0_i32, %c0_i32_0 : i32, i32
  }
  func.func @transform_2(%arg0: i32) -> (i32, i32) {
    %c0_i32 = arith.constant 0 : i32
    %c0_i32_0 = arith.constant 0 : i32
    %c0_i32_1 = arith.constant 0 : i32
    return %c0_i32, %c0_i32_0 : i32, i32
  }
  func.func @transform_3(%arg0: i32) -> (i32, i32, i32) {
    %c0_i32 = arith.constant 0 : i32
    %c0_i32_0 = arith.constant 0 : i32
    %c0_i32_1 = arith.constant 0 : i32
    %c0_i32_2 = arith.constant 0 : i32
    return %c0_i32, %c0_i32_0, %c0_i32_1 : i32, i32, i32
  }
  func.func @transform_4(%arg0: i32) -> (i32, i32) {
    %c0_i32 = arith.constant 0 : i32
    %c0_i32_0 = arith.constant 0 : i32
    %c0_i32_1 = arith.constant 0 : i32
    return %c0_i32, %c0_i32_0 : i32, i32
  }
  func.func @transform_5(%arg0: i32) -> (i32, i32) {
    %c0_i32 = arith.constant 0 : i32
    %c0_i32_0 = arith.constant 0 : i32
    %c0_i32_1 = arith.constant 0 : i32
    return %c0_i32, %c0_i32_0 : i32, i32
  }
  func.func @transform_6(%arg0: i32) -> (i32, i32) {
    %c0_i32 = arith.constant 0 : i32
    %c0_i32_0 = arith.constant 0 : i32
    %c0_i32_1 = arith.constant 0 : i32
    return %c0_i32, %c0_i32_0 : i32, i32
  }
  func.func @transform_7(%arg0: i32) -> (i32, i32) {
    %c0_i32 = arith.constant 0 : i32
    %c0_i32_0 = arith.constant 0 : i32
    %c0_i32_1 = arith.constant 0 : i32
    return %c0_i32, %c0_i32_0 : i32, i32
  }
  func.func @transform_8(%arg0: i32) -> (i32, i32) {
    %c0_i32 = arith.constant 0 : i32
    %c0_i32_0 = arith.constant 0 : i32
    %c0_i32_1 = arith.constant 0 : i32
    return %c0_i32, %c0_i32_0 : i32, i32
  }
  func.func @transform_9(%arg0: i32) -> (i32, i32) {
    %c0_i32 = arith.constant 0 : i32
    %c0_i32_0 = arith.constant 0 : i32
    %c0_i32_1 = arith.constant 0 : i32
    return %c0_i32, %c0_i32_0 : i32, i32
  }
  func.func @transform_10(%arg0: i32) -> (i32, i32) {
    %c0_i32 = arith.constant 0 : i32
    %c0_i32_0 = arith.constant 0 : i32
    %c0_i32_1 = arith.constant 0 : i32
    return %c0_i32, %c0_i32_0 : i32, i32
  }
  func.func @transform_11(%arg0: i32) -> (i32, i32, i32) {
    %c0_i32 = arith.constant 0 : i32
    %c0_i32_0 = arith.constant 0 : i32
    %c0_i32_1 = arith.constant 0 : i32
    return %arg0, %c0_i32, %c0_i32_0 : i32, i32, i32
  }
}

</mosaic_0001>

<bundles_post_ra>
// kernel: siamese_forward.1
= control target key start
LH: loop header
LB: loop body
LE: loop exit
PB: predicated region body
PF: predicated region fallthrough
CT: control target
= control target key end

     0   :  { %s10891_s17 = smov 0   ;;  %s14942_s0 = inlined_call_operand.vmem [shape: f32[4,576,25], index: 0, kind: input, shape index: {}]   ;;  %s14943_s1 = inlined_call_operand.vmem [shape: f32[25,64], index: 1, kind: input, shape index: {}]   ;;  %s14944_s2 = inlined_call_operand.vmem [shape: f32[1,64], index: 2, kind: input, shape index: {}]   ;;  %s14945_s3 = inlined_call_operand.vmem [shape: f32[25,64,128], index: 3, kind: input, shape index: {}]   ;;  %s14946_s4 = inlined_call_operand.vmem [shape: f32[1,128], index: 4, kind: input, shape index: {}]   ;;  %s14947_s5 = inlined_call_operand.vmem [shape: f32[2048,256], index: 5, kind: input, shape index: {}]   ;;  %s14948_s6 = inlined_call_operand.vmem [shape: f32[1,256], index: 6, kind: input, shape index: {}]   ;;  %s14949_s7 = inlined_call_operand.vmem [shape: f32[256,256], index: 7, kind: input, shape index: {}]   ;;  %s14950_s8 = inlined_call_operand.vmem [shape: f32[1,256], index: 8, kind: input, shape index: {}]   ;;  %s14951_s9 = inlined_call_operand.vmem [shape: f32[256,128], index: 9, kind: input, shape index: {}]   ;;  %s14952_s10 = inlined_call_operand.vmem [shape: f32[1,128], index: 10, kind: input, shape index: {}]   ;;  %s14953_s11 = inlined_call_operand.vmem [shape: f32[4,1,128], index: 11, kind: output, shape index: {}]  }
   0x1 LB: > { %s7794_s18 = sadd.s32 4294967295, %s10825_s17   ;;  %p7798_p0 = scmp.ge.s32.totalorder %s10825_s17, 1  ;;  %s10825_s17 = sphi %s10891_s17, %s21_s17  }
   0x2   : > { %p337_p1 = scmp.lt.s32.totalorder %s10825_s17, 5 }
   0x4   : > { %p338_p2 = pnand %p7798_p0, %p337_p1 }
   0x6   : > { %341 = sbr.rel (%p338_p2) target bundleno = 2038 (0x7f6), region = 64 }
   0xd   : > { %v455_v0 = vld [vmem:[%s14943_s1] sm:$0xff]  ;;  %v456_v1 = vld [vmem:[%s14943_s1 + $0x8] sm:$0xff]  ;;  %v457_v2 = vld [vmem:[%s14943_s1 + $0x10] sm:$0xff]  ;;  %vm676_vm0 = vcmask 1040384   ;;  %p375_p3 = scmp.lt.s32.totalorder %s7794_s18, 3  ;;  %vm10827_vm1 = vmmov 1  }
   0xe   : > { %v9596_v3 = vpack.c.bf16 %v456_v1, %v455_v0  ;;  %v458_v4 = vld [vmem:[%s14943_s1 + $0x18] sm:$0x1]  ;;  %vm9601_vm2 = vmpackc.low %vm676_vm0, %vm10827_vm1  ;;  %vm459_vm3 = vcmask 203776   ;;  %vm1204_vm4 = vcmask 519168   ;;  %vm1207_vm5 = vcmask 523268  }
   0xf   : > { %v9600_v5 = vpack.c.bf16 %v458_v4, %v457_v2  ;;  %s15179_s18 = smov (!%p375_p3, %s7794_s18), 3  ;;  %vm1202_vm6 = vcmask 523264   ;;  %vm5249_vm7 = vcmask 1041408  }
  0x10   : > { %9597 = vmatprep.subr.bf16.mxu0 %v9596_v3  ;;  %s10806_s27 = smul.u32 576, %s15179_s18 }
  0x11   : > { %9599 = vmatpush3.bf16.msra.mxu0 %v9596_v3 }
  0x12   : > { %9602 = vmatprep.subr.msk.bf16.mxu0 %vm9601_vm2, %v9600_v5  ;;  %s10917_s30 = scalar_lea.vmem %s14942_s0, %s10806_s27  ;;  %s382_s27 = scalar_lea.vmem %s14953_s11, %s15179_s18 }
  0x13   : > { %v383_v6 = vld [vmem:[%s10917_s30] sm:$0xff]  ;;  %v384_v7 = vld [vmem:[%s10917_s30 + $0x8] sm:$0xff]  ;;  %v385_v8 = vld [vmem:[%s10917_s30 + $0x10] sm:$0xff] }
  0x14   : > { %8788 = vmatprep.mubr.msk.f32.mxu0 %vm459_vm3, %v383_v6  ;;  %v386_v9 = vld [vmem:[%s10917_s30 + $0x18] sm:$0xff]  ;;  %v387_v10 = vld [vmem:[%s10917_s30 + $0x20] sm:$0xff]  ;;  %v388_v11 = vld [vmem:[%s10917_s30 + $0x28] sm:$0xff] }
  0x15   : > { %9605 = vmatpush3.bf16.msk.msra.mxu0 %vm9601_vm2, %v9600_v5  ;;  %v389_v12 = vld [vmem:[%s10917_s30 + $0x30] sm:$0xff]  ;;  %v390_v13 = vld [vmem:[%s10917_s30 + $0x38] sm:$0xff]  ;;  %v391_v14 = vld [vmem:[%s10917_s30 + $0x40] sm:$0xff] }
  0x16   : > { %v392_v15 = vld [vmem:[%s10917_s30 + $0x48] sm:$0xff]  ;;  %v393_v16 = vld [vmem:[%s10917_s30 + $0x50] sm:$0xff]  ;;  %v394_v17 = vld [vmem:[%s10917_s30 + $0x58] sm:$0xff] }
  0x17   : > { %v395_v18 = vld [vmem:[%s10917_s30 + $0x60] sm:$0xff]  ;;  %v396_v19 = vld [vmem:[%s10917_s30 + $0x68] sm:$0xff]  ;;  %v397_v20 = vld [vmem:[%s10917_s30 + $0x70] sm:$0xff] }
  0x18   : > { %8789 = vmatmul.mubr.msk.f32.vlgmr.msra.gmra.mrb[0].mxu0 %vm459_vm3, %v384_v7  ;;  %v398_v21 = vld [vmem:[%s10917_s30 + $0x78] sm:$0xff]  ;;  %v399_v22 = vld [vmem:[%s10917_s30 + $0x80] sm:$0xff]  ;;  %v400_v23 = vld [vmem:[%s10917_s30 + $0x88] sm:$0xff] }
  0x19   : > { %8791 = vmatprep.mubr.msk.f32.mxu0 %vm459_vm3, %v385_v8  ;;  %v401_v24 = vld [vmem:[%s10917_s30 + $0x90] sm:$0xff]  ;;  %v402_v25 = vld [vmem:[%s10917_s30 + $0x98] sm:$0xff]  ;;  %v403_v26 = vld [vmem:[%s10917_s30 + $0xa0] sm:$0xff] }
  0x1a   : > { %v404_v27 = vld [vmem:[%s10917_s30 + $0xa8] sm:$0xff]  ;;  %v405_v28 = vld [vmem:[%s10917_s30 + $0xb0] sm:$0xff]  ;;  %v406_v29 = vld [vmem:[%s10917_s30 + $0xb8] sm:$0xff] }
  0x1b   : > { %v407_v30 = vld [vmem:[%s10917_s30 + $0xc0] sm:$0xff]  ;;  %v408_v31 = vld [vmem:[%s10917_s30 + $0xc8] sm:$0xff]  ;;  %v409_v32 = vld [vmem:[%s10917_s30 + $0xd0] sm:$0xff] }
  0x1c   : > { %8792 = vmatmul.mubr.msk.f32.gmra.mrb[2].mxu0 %vm459_vm3, %v386_v9  ;;  %v410_v33 = vld [vmem:[%s10917_s30 + $0xd8] sm:$0xff]  ;;  %v411_v34 = vld [vmem:[%s10917_s30 + $0xe0] sm:$0xff]  ;;  %v412_v35 = vld [vmem:[%s10917_s30 + $0xe8] sm:$0xff] }
  0x1d   : > { %8794 = vmatprep.mubr.msk.f32.mxu0 %vm459_vm3, %v387_v10  ;;  %v413_v36 = vld [vmem:[%s10917_s30 + $0xf0] sm:$0xff]  ;;  %v414_v37 = vld [vmem:[%s10917_s30 + $0xf8] sm:$0xff]  ;;  %v415_v38 = vld [vmem:[%s10917_s30 + $0x100] sm:$0xff] }
  0x1e   : > { %v416_v39 = vld [vmem:[%s10917_s30 + $0x108] sm:$0xff]  ;;  %v417_v40 = vld [vmem:[%s10917_s30 + $0x110] sm:$0xff]  ;;  %v418_v41 = vld [vmem:[%s10917_s30 + $0x118] sm:$0xff] }
  0x1f   : > { %v419_v42 = vld [vmem:[%s10917_s30 + $0x120] sm:$0xff]  ;;  %v420_v43 = vld [vmem:[%s10917_s30 + $0x128] sm:$0xff]  ;;  %v421_v44 = vld [vmem:[%s10917_s30 + $0x130] sm:$0xff] }
  0x20   : > { %8795 = vmatmul.mubr.msk.f32.gmra.mrb[4].mxu0 %vm459_vm3, %v388_v11  ;;  %v422_v45 = vld [vmem:[%s10917_s30 + $0x138] sm:$0xff]  ;;  %v423_v46 = vld [vmem:[%s10917_s30 + $0x140] sm:$0xff]  ;;  %v424_v47 = vld [vmem:[%s10917_s30 + $0x148] sm:$0xff] }
  0x21   : > { %8797 = vmatprep.mubr.msk.f32.mxu0 %vm459_vm3, %v389_v12  ;;  %v425_v48 = vld [vmem:[%s10917_s30 + $0x150] sm:$0xff]  ;;  %v426_v49 = vld [vmem:[%s10917_s30 + $0x158] sm:$0xff]  ;;  %v427_v50 = vld [vmem:[%s10917_s30 + $0x160] sm:$0xff] }
  0x22   : > { %v428_v51 = vld [vmem:[%s10917_s30 + $0x168] sm:$0xff]  ;;  %v429_v52 = vld [vmem:[%s10917_s30 + $0x170] sm:$0xff]  ;;  %v430_v53 = vld [vmem:[%s10917_s30 + $0x178] sm:$0xff] }
  0x23   : > { %v431_v54 = vld [vmem:[%s10917_s30 + $0x180] sm:$0xff]  ;;  %v432_v55 = vld [vmem:[%s10917_s30 + $0x188] sm:$0xff]  ;;  %v433_v56 = vld [vmem:[%s10917_s30 + $0x190] sm:$0xff] }
  0x24   : > { %8798 = vmatmul.mubr.msk.f32.gmra.mrb[6].mxu0 %vm459_vm3, %v390_v13  ;;  %v434_v57 = vld [vmem:[%s10917_s30 + $0x198] sm:$0xff]  ;;  %v435_v58 = vld [vmem:[%s10917_s30 + $0x1a0] sm:$0xff]  ;;  %v436_v59 = vld [vmem:[%s10917_s30 + $0x1a8] sm:$0xff] }
  0x25   : > { %8800 = vmatprep.mubr.msk.f32.mxu0 %vm459_vm3, %v391_v14  ;;  %v437_v60 = vld [vmem:[%s10917_s30 + $0x1b0] sm:$0xff]  ;;  %v438_v61 = vld [vmem:[%s10917_s30 + $0x1b8] sm:$0xff]  ;;  %v439_v62 = vld [vmem:[%s10917_s30 + $0x1c0] sm:$0xff] }
  0x26   : > { %v440_v63 = vld [vmem:[%s10917_s30 + $0x1c8] sm:$0xff]  ;;  %v441_v0 = vld [vmem:[%s10917_s30 + $0x1d0] sm:$0xff]  ;;  %v442_v1 = vld [vmem:[%s10917_s30 + $0x1d8] sm:$0xff] }
  0x27   : > { %v443_v2 = vld [vmem:[%s10917_s30 + $0x1e0] sm:$0xff]  ;;  %v444_v3 = vld [vmem:[%s10917_s30 + $0x1e8] sm:$0xff]  ;;  %v445_v4 = vld [vmem:[%s10917_s30 + $0x1f0] sm:$0xff] }
  0x28   : > { %8801 = vmatmul.mubr.msk.f32.gmra.mrb[8].mxu0 %vm459_vm3, %v392_v15  ;;  %v446_v5 = vld [vmem:[%s10917_s30 + $0x1f8] sm:$0xff]  ;;  %v447_v6 = vld [vmem:[%s10917_s30 + $0x200] sm:$0xff]  ;;  %v448_v7 = vld [vmem:[%s10917_s30 + $0x208] sm:$0xff] }
  0x29   : > { %8803 = vmatprep.mubr.msk.f32.mxu0 %vm459_vm3, %v393_v16  ;;  %v449_v8 = vld [vmem:[%s10917_s30 + $0x210] sm:$0xff]  ;;  %v450_v9 = vld [vmem:[%s10917_s30 + $0x218] sm:$0xff]  ;;  %v451_v10 = vld [vmem:[%s10917_s30 + $0x220] sm:$0xff] }
  0x2a   : > { %v452_v11 = vld [vmem:[%s10917_s30 + $0x228] sm:$0xff]  ;;  %v453_v12 = vld [vmem:[%s10917_s30 + $0x230] sm:$0xff]  ;;  %v454_v13 = vld [vmem:[%s10917_s30 + $0x238] sm:$0xff] }
  0x2b   : > { %v7874_v14 = vld [vmem:[%s14945_s3 + $0x40] sm:$0xff]  ;;  %v7875_v15 = vld [vmem:[%s14945_s3 + $0x48] sm:$0xff] }
  0x2c   : > { %8804 = vmatmul.mubr.msk.f32.gmra.mrb[10].mxu0 %vm459_vm3, %v394_v17  ;;  %v9606_v16 = vpack.c.bf16 %v7875_v15, %v7874_v14  ;;  %v7876_v17 = vld [vmem:[%s14945_s3 + $0x50] sm:$0xff] }
  0x2d   : > { %8806 = vmatprep.mubr.msk.f32.mxu0 %vm459_vm3, %v395_v18  ;;  %v7877_v18 = vld [vmem:[%s14945_s3 + $0x58] sm:$0xff] }
  0x2e   : > { %9607 = vmatprep.subr.bf16.mxu1 %v9606_v16 }
  0x2f   : > { %9609 = vmatpush3.bf16.msra.mxu1 %v9606_v16 }
  0x30   : > { %8807 = vmatmul.mubr.msk.f32.gmra.mrb[12].mxu0 %vm459_vm3, %v396_v19  ;;  %v9610_v19 = vpack.c.bf16 %v7877_v18, %v7876_v17 }
  0x31   : > { %8809 = vmatprep.mubr.msk.f32.mxu0 %vm459_vm3, %v397_v20  ;;  %v7878_v20 = vld [vmem:[%s14945_s3 + $0x60] sm:$0xff] }
  0x32   : > { %9611 = vmatprep.subr.bf16.mxu1 %v9610_v19 }
  0x33   : > { %9613 = vmatpush3.bf16.msra.mxu1 %v9610_v19 }
  0x34   : > { %8810 = vmatmul.mubr.msk.f32.gmra.mrb[14].mxu0 %vm459_vm3, %v398_v21  ;;  %v7879_v21 = vld [vmem:[%s14945_s3 + $0x68] sm:$0xff] }
  0x35   : > { %8812 = vmatprep.mubr.msk.f32.mxu0 %vm459_vm3, %v399_v22  ;;  %v9614_v22 = vpack.c.bf16 %v7879_v21, %v7878_v20 }
  0x37   : > { %9615 = vmatprep.subr.bf16.mxu1 %v9614_v22 }
  0x38   : > { %8813 = vmatmul.mubr.msk.f32.gmra.mrb[16].mxu0 %vm459_vm3, %v400_v23  ;;  %9617 = vmatpush3.bf16.msra.mxu1 %v9614_v22  ;;  %v7880_v23 = vld [vmem:[%s14945_s3 + $0x70] sm:$0xff] }
  0x39   : > { %8815 = vmatprep.mubr.msk.f32.mxu0 %vm459_vm3, %v401_v24  ;;  %v7881_v24 = vld [vmem:[%s14945_s3 + $0x78] sm:$0xff] }
  0x3c   : > { %8816 = vmatmul.mubr.msk.f32.gmra.mrb[18].mxu0 %vm459_vm3, %v402_v25  ;;  %v9618_v25 = vpack.c.bf16 %v7881_v24, %v7880_v23 }
  0x3d   : > { %8818 = vmatprep.mubr.msk.f32.mxu0 %vm459_vm3, %v403_v26 }
  0x3e   : > { %9619 = vmatprep.subr.bf16.mxu1 %v9618_v25 }
  0x3f   : > { %9621 = vmatpush3.bf16.msra.mxu1 %v9618_v25 }
  0x40   : > { %8819 = vmatmul.mubr.msk.f32.gmra.mrb[20].mxu0 %vm459_vm3, %v404_v27 }
  0x41   : > { %8821 = vmatprep.mubr.msk.f32.mxu0 %vm459_vm3, %v405_v28 }
  0x44   : > { %8822 = vmatmul.mubr.msk.f32.gmra.mrb[22].mxu0 %vm459_vm3, %v406_v29  ;;  %v1248_v29 = vld [vmem:[%s14945_s3] sm:$0xff] }
  0x45   : > { %8824 = vmatprep.mubr.msk.f32.mxu0 %vm459_vm3, %v407_v30  ;;  %v1249_v30 = vld [vmem:[%s14945_s3 + $0x8] sm:$0xff] }
  0x48   : > { %8825 = vmatmul.mubr.msk.f32.gmra.mrb[24].mxu0 %vm459_vm3, %v408_v31 }
  0x49   : > { %8827 = vmatprep.mubr.msk.f32.mxu0 %vm459_vm3, %v409_v32  ;;  %v11101_v32 = vpack.c.bf16 %v1249_v30, %v1248_v29 }
  0x4b   : > { %9623 = vmatprep.subr.bf16.mxu1 %v11101_v32 }
  0x4c   : > { %8828 = vmatmul.mubr.msk.f32.gmra.mrb[26].mxu0 %vm459_vm3, %v410_v33 }
  0x4d   : > { %8830 = vmatprep.mubr.msk.f32.mxu0 %vm459_vm3, %v411_v34 }
  0x50   : > { %8831 = vmatmul.mubr.msk.f32.gmra.mrb[28].mxu0 %vm459_vm3, %v412_v35 }
  0x51   : > { %8833 = vmatprep.mubr.msk.f32.mxu0 %vm459_vm3, %v413_v36 }
  0x54   : > { %8834 = vmatmul.mubr.msk.f32.gmra.mrb[30].mxu0 %vm459_vm3, %v414_v37 }
  0x55   : > { %8836 = vmatprep.mubr.msk.f32.mxu0 %vm459_vm3, %v415_v38 }
  0x58   : > { %8837 = vmatmul.mubr.msk.f32.gmra.mrb[32].mxu0 %vm459_vm3, %v416_v39 }
  0x59   : > { %8839 = vmatprep.mubr.msk.f32.mxu0 %vm459_vm3, %v417_v40 }
  0x5c   : > { %8840 = vmatmul.mubr.msk.f32.gmra.mrb[34].mxu0 %vm459_vm3, %v418_v41 }
  0x5d   : > { %8842 = vmatprep.mubr.msk.f32.mxu0 %vm459_vm3, %v419_v42 }
  0x60   : > { %8843 = vmatmul.mubr.msk.f32.gmra.mrb[36].mxu0 %vm459_vm3, %v420_v43 }
  0x61   : > { %8845 = vmatprep.mubr.msk.f32.mxu0 %vm459_vm3, %v421_v44 }
  0x64   : > { %8846 = vmatmul.mubr.msk.f32.gmra.mrb[38].mxu0 %vm459_vm3, %v422_v45 }
  0x65   : > { %8848 = vmatprep.mubr.msk.f32.mxu0 %vm459_vm3, %v423_v46 }
  0x68   : > { %8849 = vmatmul.mubr.msk.f32.gmra.mrb[40].mxu0 %vm459_vm3, %v424_v47 }
  0x69   : > { %8851 = vmatprep.mubr.msk.f32.mxu0 %vm459_vm3, %v425_v48 }
  0x6c   : > { %8852 = vmatmul.mubr.msk.f32.gmra.mrb[42].mxu0 %vm459_vm3, %v426_v49 }
  0x6d   : > { %8854 = vmatprep.mubr.msk.f32.mxu0 %vm459_vm3, %v427_v50 }
  0x70   : > { %8855 = vmatmul.mubr.msk.f32.gmra.mrb[44].mxu0 %vm459_vm3, %v428_v51 }
  0x71   : > { %8857 = vmatprep.mubr.msk.f32.mxu0 %vm459_vm3, %v429_v52 }
  0x74   : > { %8858 = vmatmul.mubr.msk.f32.gmra.mrb[46].mxu0 %vm459_vm3, %v430_v53 }
  0x75   : > { %8860 = vmatprep.mubr.msk.f32.mxu0 %vm459_vm3, %v431_v54 }
  0x78   : > { %8861 = vmatmul.mubr.msk.f32.gmra.mrb[48].mxu0 %vm459_vm3, %v432_v55 }
  0x79   : > { %8863 = vmatprep.mubr.msk.f32.mxu0 %vm459_vm3, %v433_v56 }
  0x7c   : > { %8864 = vmatmul.mubr.msk.f32.gmra.mrb[50].mxu0 %vm459_vm3, %v434_v57 }
  0x7d   : > { %8866 = vmatprep.mubr.msk.f32.mxu0 %vm459_vm3, %v435_v58 }
  0x80   : > { %8867 = vmatmul.mubr.msk.f32.gmra.mrb[52].mxu0 %vm459_vm3, %v436_v59 }
  0x81   : > { %8869 = vmatprep.mubr.msk.f32.mxu0 %vm459_vm3, %v437_v60 }
  0x84   : > { %8870 = vmatmul.mubr.msk.f32.gmra.mrb[54].mxu0 %vm459_vm3, %v438_v61 }
  0x85   : > { %8872 = vmatprep.mubr.msk.f32.mxu0 %vm459_vm3, %v439_v62 }
  0x88   : > { %8873 = vmatmul.mubr.msk.f32.gmra.mrb[56].mxu0 %vm459_vm3, %v440_v63 }
  0x89   : > { %8875 = vmatprep.mubr.msk.f32.mxu0 %vm459_vm3, %v441_v0 }
  0x8c   : > { %8876 = vmatmul.mubr.msk.f32.gmra.mrb[58].mxu0 %vm459_vm3, %v442_v1 }
  0x8d   : > { %8878 = vmatprep.mubr.msk.f32.mxu0 %vm459_vm3, %v443_v2  ;;  %v11221_v2 = vld [vmem:[%s14944_s2] ss:$0 sm:$0xff] }
  0x90   : > { %8879 = vmatmul.mubr.msk.f32.gmra.mrb[60].mxu0 %vm459_vm3, %v444_v3 }
  0x91   : > { %8881 = vmatprep.mubr.msk.f32.mxu0 %vm459_vm3, %v445_v4 }
  0x94   : > { %8882 = vmatmul.mubr.msk.f32.gmra.mrb[62].mxu0 %vm459_vm3, %v446_v5 }
  0x95   : > { %8884 = vmatprep.mubr.msk.f32.mxu0 %vm459_vm3, %v447_v6 }
  0x98   : > { %8885 = vmatmul.mubr.msk.f32.gmra.mrb[64].mxu0 %vm459_vm3, %v448_v7 }
  0x99   : > { %8887 = vmatprep.mubr.msk.f32.mxu0 %vm459_vm3, %v449_v8 }
  0x9c   : > { %8888 = vmatmul.mubr.msk.f32.gmra.mrb[66].mxu0 %vm459_vm3, %v450_v9 }
  0x9d   : > { %8890 = vmatprep.mubr.msk.f32.mxu0 %vm459_vm3, %v451_v10 }
  0xa0   : > { %8891 = vmatmul.mubr.msk.f32.gmra.mrb[68].mxu0 %vm459_vm3, %v452_v11 }
  0xa1   : > { %8893 = vmatprep.mubr.msk.f32.mxu0 %vm459_vm3, %v453_v12 }
  0xa4   : > { %8894 = vmatmul.mubr.msk.f32.gmra.mrb[70].mxu0 %vm459_vm3, %v454_v13 }
  0xeb   : > { %v11087_v26 = vpop.f32.mrb[0].mxu0 }
  0xec   : > { %v11089_v27 = vpop.f32.mrb[1].mxu0 }
  0xef   : > { %v11091_v28 = vpop.f32.mrb[2].mxu0 }
  0xf0   : > { %v11099_v31 = vpop.f32.mrb[3].mxu0 }
  0xf3   : > { %v11104_v33 = vpop.f32.mrb[4].mxu0 }
  0xf4   : > { %v11106_v34 = vpop.f32.mrb[5].mxu0 }
  0xf7   : > { %v11108_v35 = vpop.f32.mrb[6].mxu0 }
  0xf8   : > { %v11110_v36 = vpop.f32.mrb[7].mxu0 }
  0xfb   : > { %v11112_v37 = vpop.f32.mrb[8].mxu0 }
  0xfc   : > { %v11114_v38 = vpop.f32.mrb[9].mxu0 }
  0xff   : > { %v11116_v39 = vpop.f32.mrb[10].mxu0 }
 0x100   : > { %v11118_v40 = vpop.f32.mrb[11].mxu0 }
 0x103   : > { %v11120_v41 = vpop.f32.mrb[12].mxu0 }
 0x104   : > { %v11122_v42 = vpop.f32.mrb[13].mxu0 }
 0x107   : > { %v11124_v43 = vpop.f32.mrb[14].mxu0 }
 0x108   : > { %v11126_v44 = vpop.f32.mrb[15].mxu0 }
 0x10b   : > { %v11128_v45 = vpop.f32.mrb[16].mxu0 }
 0x10c   : > { %15014 = vst [vmem:[#allocation3_spill] sm:$0xff] %v11128_v45  ;;  %v11130_v46 = vpop.f32.mrb[17].mxu0 }
 0x10d   : > { %15015 = vst [vmem:[#allocation4_spill] sm:$0xff] %v11130_v46 }
 0x10f   : > { %v8817_v47 = vpop.f32.mrb[18].mxu0 }
 0x110   : > { %v1106_v48 = vmax.f32 %v11087_v26, %v8817_v47  ;;  %v836_v49 = vpop.f32.mrb[19].mxu0 }
 0x111   : > { %v1105_v50 = vmax.f32 %v11089_v27, %v836_v49 }
 0x113   : > { %v11134_v51 = vpop.f32.mrb[20].mxu0 }
 0x114   : > { %v11138_v53 = vpop.f32.mrb[21].mxu0 }
 0x117   : > { %v11142_v55 = vpop.f32.mrb[22].mxu0 }
 0x118   : > { %v11146_v57 = vpop.f32.mrb[23].mxu0 }
 0x11b   : > { %v11150_v59 = vpop.f32.mrb[24].mxu0 }
 0x11c   : > { %v11154_v61 = vpop.f32.mrb[25].mxu0 }
 0x11f   : > { %v11158_v63 = vpop.f32.mrb[26].mxu0 }
 0x120   : > { %v11162_v1 = vpop.f32.mrb[27].mxu0 }
 0x123   : > { %v11166_v3 = vpop.f32.mrb[28].mxu0 }
 0x124   : > { %v11170_v5 = vpop.f32.mrb[29].mxu0 }
 0x127   : > { %v11174_v7 = vpop.f32.mrb[30].mxu0 }
 0x128   : > { %v11178_v9 = vpop.f32.mrb[31].mxu0 }
 0x12b   : > { %v11182_v11 = vpop.f32.mrb[32].mxu0 }
 0x12c   : > { %v11186_v13 = vpop.f32.mrb[33].mxu0 }
 0x12f   : > { %v11190_v15 = vpop.f32.mrb[34].mxu0 }
 0x130   : > { %15016 = vst [vmem:[#allocation5_spill] sm:$0xff] %v11190_v15  ;;  %v11194_v17 = vpop.f32.mrb[35].mxu0 }
 0x131   : > { %15017 = vst [vmem:[#allocation6_spill] sm:$0xff] %v11194_v17 }
 0x133   : > { %v8844_v19 = vpop.f32.mrb[36].mxu0 }
 0x134   : > { %v926_v20 = vpop.f32.mrb[37].mxu0 }
 0x137   : > { %v8847_v21 = vpop.f32.mrb[38].mxu0 }
 0x138   : > { %v936_v22 = vpop.f32.mrb[39].mxu0 }
 0x13b   : > { %v8850_v23 = vpop.f32.mrb[40].mxu0 }
 0x13c   : > { %v946_v24 = vpop.f32.mrb[41].mxu0 }
 0x13f   : > { %v8853_v25 = vpop.f32.mrb[42].mxu0 }
 0x140   : > { %v956_v26 = vpop.f32.mrb[43].mxu0 }
 0x143   : > { %v11198_v27 = vpop.f32.mrb[44].mxu0 }
 0x144   : > { %v11200_v29 = vpop.f32.mrb[45].mxu0 }
 0x147   : > { %v11202_v30 = vpop.f32.mrb[46].mxu0 }
 0x148   : > { %v11204_v47 = vpop.f32.mrb[47].mxu0 }
 0x14b   : > { %v11206_v49 = vpop.f32.mrb[48].mxu0 }
 0x14c   : > { %v11208_v16 = vpop.f32.mrb[49].mxu0 }
 0x14f   : > { %v11210_v18 = vpop.f32.mrb[50].mxu0 }
 0x150   : > { %v11212_v14 = vpop.f32.mrb[51].mxu0 }
 0x153   : > { %v11214_v12 = vpop.f32.mrb[52].mxu0 }
 0x154   : > { %v11216_v10 = vpop.f32.mrb[53].mxu0 }
 0x157   : > { %v8871_v8 = vpop.f32.mrb[54].mxu0 }
 0x158   : > { %v1124_v6 = vmax.f32 %v8844_v19, %v8871_v8  ;;  %v1016_v4 = vpop.f32.mrb[55].mxu0  ;;  %v15018_v19 = vmax.f32 %v11091_v28, %v11134_v51 }
 0x159   : > { %v1123_v0 = vmax.f32 %v926_v20, %v1016_v4 }
 0x15a   : > { %v1142_v62 = vmax.f32 %v1106_v48, %v1124_v6  ;;  %v15019_v48 = vmax.f32 %v11099_v31, %v11138_v53  ;;  %v15021_v53 = vmax.f32 %v11106_v34, %v11146_v57  ;;  %v15023_v34 = vmax.f32 %v11110_v36, %v11154_v61 }
 0x15b   : > { %v1141_v60 = vmax.f32 %v1105_v50, %v1123_v0  ;;  %v8874_v58 = vpop.f32.mrb[56].mxu0 }
 0x15c   : > { %v1167_v56 = vadd.f32 %v11221_v2, %v1142_v62  ;;  %v1126_v54 = vmax.f32 %v8847_v21, %v8874_v58  ;;  %v1026_v52 = vpop.f32.mrb[57].mxu0 }
 0x15d   : > { %v1166_v17 = vadd.f32 %v11221_v2, %v1141_v60  ;;  %v1125_v46 = vmax.f32 %v936_v22, %v1026_v52 }
 0x15e   : > { %v1185_v8 = vmax.f32 %v1167_v56, 0.0  ;;  %v1144_v15 = vmax.f32 %v15018_v19, %v1126_v54  ;;  %v15020_v54 = vmax.f32 %v11104_v33, %v11142_v55  ;;  %v15022_v33 = vmax.f32 %v11108_v35, %v11150_v59  ;;  %v1251_v35 = vld [vmem:[%s14945_s3 + $0x18] sm:$0xff] }
 0x15f   : > { %v1184_v45 = vmax.f32 %v1166_v17, 0.0  ;;  %v1143_v50 = vmax.f32 %v15019_v48, %v1125_v46  ;;  %v8877_v0 = vpop.f32.mrb[58].mxu0 }
 0x160   : > { %1205 = vst.msk [vmem:[#allocation2 + $0x8] sm:$0xf] %vm1204_vm4, %v1185_v8  ;;  %v1169_v58 = vadd.f32 %v11221_v2, %v1144_v15  ;;  %v1128_v60 = vmax.f32 %v8850_v23, %v8877_v0  ;;  %v1036_v52 = vpop.f32.mrb[59].mxu0  ;;  %v15025_v0 = vmax.f32 %v11114_v38, %v11162_v1  ;;  %v1253_v1 = vld [vmem:[%s14945_s3 + $0x28] sm:$0xff] }
 0x161   : > { %1208 = vst.msk [vmem:[#allocation2 + $0xc] sm:$0xf0] %vm1207_vm5, %v1185_v8  ;;  %v1168_v56 = vadd.f32 %v11221_v2, %v1143_v50  ;;  %v1127_v28 = vmax.f32 %v946_v24, %v1036_v52 }
 0x162   : > { %1203 = vst.msk [vmem:[#allocation2] sm:$0xff] %vm1202_vm6, %v1184_v45  ;;  %v1187_v51 = vmax.f32 %v1169_v58, 0.0  ;;  %v1146_v31 = vmax.f32 %v15020_v54, %v1128_v60  ;;  %v15026_v54 = vmax.f32 %v11116_v39, %v11166_v3 }
 0x163   : > { %v1186_v46 = vmax.f32 %v1168_v56, 0.0  ;;  %v1145_v62 = vmax.f32 %v15021_v53, %v1127_v28  ;;  %v8880_v4 = vpop.f32.mrb[60].mxu0 }
 0x164   : > { %1211 = vst.msk [vmem:[#allocation2 + $0x20] sm:$0xff] %vm1202_vm6, %v1187_v51  ;;  %v1171_v6 = vadd.f32 %v11221_v2, %v1146_v31  ;;  %v1130_v15 = vmax.f32 %v8853_v25, %v8880_v4  ;;  %v1046_v45 = vpop.f32.mrb[61].mxu0 }
 0x165   : > { %1209 = vst.msk [vmem:[#allocation2 + $0x14] sm:$0xff] %vm1202_vm6, %v1186_v46  ;;  %v1170_v17 = vadd.f32 %v11221_v2, %v1145_v62  ;;  %v1129_v20 = vmax.f32 %v956_v26, %v1046_v45  ;;  %v1250_v26 = vld [vmem:[%s14945_s3 + $0x10] sm:$0xff] }
 0x166   : > { %v1189_v21 = vmax.f32 %v1171_v6, 0.0  ;;  %v1148_v55 = vmax.f32 %v15022_v33, %v1130_v15  ;;  %v9626_v52 = vpack.c.bf16 %v1251_v35, %v1250_v26  ;;  %v15029_v33 = vmax.f32 %v11122_v42, %v11178_v9  ;;  %v7898_v9 = vld [vmem:[%s14945_s3 + $0x80] sm:$0xff] }
 0x167   : > { %v1188_v22 = vmax.f32 %v1170_v17, 0.0  ;;  %v1147_v57 = vmax.f32 %v15023_v34, %v1129_v20  ;;  %v8883_v23 = vpop.f32.mrb[62].mxu0  ;;  %v15028_v20 = vmax.f32 %v11120_v41, %v11174_v7 }
 0x168   : > { %1215 = vst.msk [vmem:[#allocation2 + $0x34] sm:$0xff] %vm1202_vm6, %v1189_v21  ;;  %v1173_v24 = vadd.f32 %v11221_v2, %v1148_v55  ;;  %v1132_v25 = vmax.f32 %v11198_v27, %v8883_v23  ;;  %v1056_v8 = vpop.f32.mrb[63].mxu0  ;;  %v15024_v27 = vmax.f32 %v11112_v37, %v11158_v63  ;;  %v1252_v63 = vld [vmem:[%s14945_s3 + $0x20] sm:$0xff] }
 0x169   : > { %v1256_v19 = vld [vmem:[#allocation2 + $0x1] sm:$0xff]  ;;  %1212 = vst.msk [vmem:[#allocation2 + $0x28] sm:$0xf] %vm1204_vm4, %v1188_v22  ;;  %v1172_v36 = vadd.f32 %v11221_v2, %v1147_v57  ;;  %v1131_v59 = vmax.f32 %v11200_v29, %v1056_v8  ;;  %v9630_v3 = vpack.c.bf16 %v1253_v1, %v1252_v63  ;;  %v15030_v8 = vmax.f32 %v11124_v43, %v11182_v11  ;;  %v7900_v1 = vld [vmem:[%s14945_s3 + $0x90] sm:$0xff] }
 0x16a   : > { %1214 = vst.msk [vmem:[#allocation2 + $0x2c] sm:$0xf0] %vm1207_vm5, %v1188_v22  ;;  %8912 = vmatprep.mubr.msk.f32.mxu1 %vm1202_vm6, %v1256_v19  ;;  %v1191_v61 = vmax.f32 %v1173_v24, 0.0  ;;  %v1150_v48 = vmax.f32 %v15024_v27, %v1132_v25 }
 0x16b   : > { %v1190_v50 = vmax.f32 %v1172_v36, 0.0  ;;  %v1149_v58 = vmax.f32 %v15025_v0, %v1131_v59  ;;  %v8886_v60 = vpop.f32.mrb[64].mxu0  ;;  %v15033_v0 = vld [vmem:[#allocation5_spill] sm:$0xff] }
 0x16c   : > { %1218 = vst.msk [vmem:[#allocation2 + $0x48] sm:$0xf] %vm1204_vm4, %v1191_v61  ;;  %v1175_v29 = vadd.f32 %v11221_v2, %v1150_v48  ;;  %v1134_v56 = vmax.f32 %v11202_v30, %v8886_v60  ;;  %v1066_v28 = vpop.f32.mrb[65].mxu0  ;;  %v11276_v51 = vld [vmem:[#allocation2 + $0x11] sm:$0xff] }
 0x16d   : > { %1220 = vst.msk [vmem:[#allocation2 + $0x4c] sm:$0xf0] %vm1207_vm5, %v1191_v61  ;;  %v1174_v37 = vadd.f32 %v11221_v2, %v1149_v58  ;;  %v1133_v38 = vmax.f32 %v11204_v47, %v1066_v28  ;;  %8913 = vmatmul.mubr.msk.f32.vlgmr.msra.gmra.mrb[0].mxu1 %vm1202_vm6, %v11276_v51  ;;  %v15027_v47 = vmax.f32 %v11118_v40, %v11170_v5  ;;  %v1254_v5 = vld [vmem:[%s14945_s3 + $0x30] sm:$0xff] }
 0x16e   : > { %1217 = vst.msk [vmem:[#allocation2 + $0x40] sm:$0xff] %vm1202_vm6, %v1190_v50  ;;  %v1193_v30 = vmax.f32 %v1175_v29, 0.0  ;;  %v1152_v31 = vmax.f32 %v15026_v54, %v1134_v56  ;;  %9625 = vmatpush3.bf16.msra.mxu1 %v11101_v32  ;;  %v15032_v50 = vld [vmem:[#allocation3_spill] sm:$0xff]  ;;  %v15036_v29 = vld [vmem:[#allocation6_spill] sm:$0xff] }
 0x16f   : > { %v1192_v46 = vmax.f32 %v1174_v37, 0.0  ;;  %v1151_v53 = vmax.f32 %v15027_v47, %v1133_v38  ;;  %v8889_v62 = vpop.f32.mrb[66].mxu0  ;;  %9627 = vmatprep.subr.bf16.mxu1 %v9626_v52  ;;  %v15034_v58 = vmax.f32 %v15032_v50, %v15033_v0  ;;  %v11384_v47 = vld [vmem:[#allocation2 + $0x10] sm:$0xff]  ;;  %v7934_v0 = vld [vmem:[%s14945_s3 + $0x120] sm:$0xff] }
 0x170   : > { %1223 = vst.msk [vmem:[#allocation2 + $0x60] sm:$0xff] %vm1202_vm6, %v1193_v30  ;;  %v1177_v4 = vadd.f32 %v11221_v2, %v1152_v31  ;;  %v1136_v6 = vmax.f32 %v11206_v49, %v8889_v62  ;;  %v1076_v15 = vpop.f32.mrb[67].mxu0  ;;  %v11299_v45 = vld [vmem:[#allocation2 + $0x21] sm:$0xff]  ;;  %v1255_v49 = vld [vmem:[%s14945_s3 + $0x38] sm:$0xff] }
 0x171   : > { %v11301_v39 = vld [vmem:[#allocation2 + $0x31] sm:$0xff]  ;;  %1221 = vst.msk [vmem:[#allocation2 + $0x54] sm:$0xff] %vm1202_vm6, %v1192_v46  ;;  %v1176_v32 = vadd.f32 %v11221_v2, %v1151_v53  ;;  %v1135_v40 = vmax.f32 %v11208_v16, %v1076_v15  ;;  %8915 = vmatprep.mubr.msk.f32.mxu1 %vm1202_vm6, %v11299_v45  ;;  %v9634_v41 = vpack.c.bf16 %v1255_v49, %v1254_v5  ;;  %v1240_v31 = vld [vmem:[#allocation2] sm:$0xff]  ;;  %v7903_v62 = vld [vmem:[%s14945_s3 + $0xa8] sm:$0xff] }
 0x172   : > { %v1195_v17 = vmax.f32 %v1177_v4, 0.0  ;;  %v1154_v21 = vmax.f32 %v15028_v20, %v1136_v6  ;;  %8916 = vmatmul.mubr.msk.f32.gmra.mrb[2].mxu1 %vm1202_vm6, %v11301_v39  ;;  %v7901_v30 = vld [vmem:[%s14945_s3 + $0x98] sm:$0xff]  ;;  %v7902_v53 = vld [vmem:[%s14945_s3 + $0xa0] sm:$0xff]  ;;  %v11398_v15 = vld [vmem:[#allocation2 + $0x30] sm:$0xff] }
 0x173   : > { %v1194_v16 = vmax.f32 %v1176_v32, 0.0  ;;  %v1153_v55 = vmax.f32 %v15029_v33, %v1135_v40  ;;  %v8892_v22 = vpop.f32.mrb[68].mxu0  ;;  %9629 = vmatpush3.bf16.msra.mxu1 %v9626_v52  ;;  %v15035_v52 = vld [vmem:[#allocation4_spill] sm:$0xff]  ;;  %v11394_v4 = vld [vmem:[#allocation2 + $0x20] sm:$0xff]  ;;  %v9646_v6 = vpack.c.bf16 %v7903_v62, %v7902_v53  ;;  %v7905_v32 = vld [vmem:[%s14945_s3 + $0xb8] sm:$0xff] }
 0x174   : > { %1227 = vst.msk [vmem:[#allocation2 + $0x74] sm:$0xff] %vm1202_vm6, %v1195_v17  ;;  %v1179_v34 = vadd.f32 %v11221_v2, %v1154_v21  ;;  %v1138_v57 = vmax.f32 %v11210_v18, %v8892_v22  ;;  %v1086_v23 = vpop.f32.mrb[69].mxu0  ;;  %9631 = vmatprep.subr.bf16.mxu1 %v9630_v3  ;;  %v7899_v18 = vld [vmem:[%s14945_s3 + $0x88] sm:$0xff]  ;;  %v15037_v56 = vmax.f32 %v15035_v52, %v15036_v29  ;;  %v7914_v17 = vld [vmem:[%s14945_s3 + $0xc0] sm:$0xff]  ;;  %v7917_v22 = vld [vmem:[%s14945_s3 + $0xd8] sm:$0xff] }
 0x175   : > { %v11325_v24 = vld [vmem:[#allocation2 + $0x41] sm:$0xff]  ;;  %1224 = vst.msk [vmem:[#allocation2 + $0x68] sm:$0xf] %vm1204_vm4, %v1194_v16  ;;  %v1178_v42 = vadd.f32 %v11221_v2, %v1153_v55  ;;  %v1137_v7 = vmax.f32 %v11212_v14, %v1086_v23  ;;  %v15031_v14 = vmax.f32 %v11126_v44, %v11186_v13  ;;  %v9638_v43 = vpack.c.bf16 %v7899_v18, %v7898_v9  ;;  %v7916_v55 = vld [vmem:[%s14945_s3 + $0xd0] sm:$0xff]  ;;  %v7949_v53 = vld [vmem:[%s14945_s3 + $0x158] sm:$0xff] }
 0x176   : > { %1226 = vst.msk [vmem:[#allocation2 + $0x6c] sm:$0xf0] %vm1207_vm5, %v1194_v16  ;;  %8918 = vmatprep.mubr.msk.f32.mxu1 %vm1202_vm6, %v11325_v24  ;;  %v1197_v25 = vmax.f32 %v1179_v34, 0.0  ;;  %v1156_v19 = vmax.f32 %v15030_v8, %v1138_v57  ;;  %v11408_v40 = vld [vmem:[#allocation2 + $0x40] sm:$0xff]  ;;  %v7915_v20 = vld [vmem:[%s14945_s3 + $0xc8] sm:$0xff]  ;;  %v9658_v57 = vpack.c.bf16 %v7917_v22, %v7916_v55  ;;  %v11437_v23 = vld [vmem:[#allocation2 + $0x12] sm:$0xff] }
 0x177   : > { %v1196_v26 = vmax.f32 %v1178_v42, 0.0  ;;  %v1155_v35 = vmax.f32 %v15031_v14, %v1137_v7  ;;  %v8895_v36 = vpop.f32.mrb[70].mxu0  ;;  %9633 = vmatpush3.bf16.msra.mxu1 %v9630_v3  ;;  %v7904_v3 = vld [vmem:[%s14945_s3 + $0xb0] sm:$0xff]  ;;  %v11422_v21 = vld [vmem:[#allocation2 + $0x60] sm:$0xff]  ;;  %v9654_v16 = vpack.c.bf16 %v7915_v20, %v7914_v17  ;;  %v7919_v42 = vld [vmem:[%s14945_s3 + $0xe8] sm:$0xff] }
 0x178   : > { %1230 = vst.msk [vmem:[#allocation2 + $0x88] sm:$0xf] %vm1204_vm4, %v1197_v25  ;;  %v1181_v59 = vadd.f32 %v11221_v2, %v1156_v19  ;;  %v1140_v61 = vmax.f32 %v11214_v12, %v8895_v36  ;;  %v1096_v27 = vpop.f32.mrb[71].mxu0  ;;  %v11349_v48 = vld [vmem:[#allocation2 + $0x51] sm:$0xff]  ;;  %9635 = vmatprep.subr.bf16.mxu1 %v9634_v41  ;;  %v9650_v5 = vpack.c.bf16 %v7905_v32, %v7904_v3  ;;  %v1531_v34 = vld [vmem:[#allocation2 + $0x2] sm:$0xff] }
 0x179   : > { %1232 = vst.msk [vmem:[#allocation2 + $0x8c] sm:$0xf0] %vm1207_vm5, %v1197_v25  ;;  %v1180_v44 = vadd.f32 %v11221_v2, %v1155_v35  ;;  %v1139_v11 = vmax.f32 %v11216_v10, %v1096_v27  ;;  %8919 = vmatmul.mubr.msk.f32.gmra.mrb[4].mxu1 %vm1202_vm6, %v11349_v48  ;;  %v11412_v49 = vld [vmem:[#allocation2 + $0x50] sm:$0xff]  ;;  %v11447_v7 = vld [vmem:[#allocation2 + $0x22] sm:$0xff]  ;;  %v7921_v8 = vld [vmem:[%s14945_s3 + $0xf8] sm:$0xff] }
 0x17a   : > { %1229 = vst.msk [vmem:[#allocation2 + $0x80] sm:$0xff] %vm1202_vm6, %v1196_v26  ;;  %v1199_v13 = vmax.f32 %v1181_v59, 0.0  ;;  %v1158_v60 = vmax.f32 %v15034_v58, %v1140_v61  ;;  %v11451_v18 = vld [vmem:[#allocation2 + $0x32] sm:$0xff]  ;;  %v11461_v19 = vld [vmem:[#allocation2 + $0x42] sm:$0xff] }
 0x17b   : > { %v1198_v12 = vmax.f32 %v1180_v44, 0.0  ;;  %v1157_v28 = vmax.f32 %v15037_v56, %v1139_v11  ;;  %9637 = vmatpush3.bf16.msra.mxu1 %v9634_v41  ;;  %v7918_v41 = vld [vmem:[%s14945_s3 + $0xe0] sm:$0xff]  ;;  %v7920_v25 = vld [vmem:[%s14945_s3 + $0xf0] sm:$0xff]  ;;  %v7931_v36 = vld [vmem:[%s14945_s3 + $0x108] sm:$0xff] }
 0x17c   : > { %1235 = vst.msk [vmem:[#allocation2 + $0xa0] sm:$0xff] %vm1202_vm6, %v1199_v13  ;;  %v1183_v37 = vadd.f32 %v11221_v2, %v1158_v60  ;;  %v11364_v38 = vld [vmem:[#allocation2 + $0x61] sm:$0xff]  ;;  %9639 = vmatprep.subr.bf16.mxu1 %v9638_v43  ;;  %v9662_v9 = vpack.c.bf16 %v7919_v42, %v7918_v41  ;;  %v9666_v26 = vpack.c.bf16 %v7921_v8, %v7920_v25  ;;  %v11465_v14 = vld [vmem:[#allocation2 + $0x52] sm:$0xff] }
 0x17d   : > { %v11366_v10 = vld [vmem:[#allocation2 + $0x71] sm:$0xff]  ;;  %1233 = vst.msk [vmem:[#allocation2 + $0x94] sm:$0xff] %vm1202_vm6, %v1198_v12  ;;  %v1182_v63 = vadd.f32 %v11221_v2, %v1157_v28  ;;  %8921 = vmatprep.mubr.msk.f32.mxu1 %vm1202_vm6, %v11364_v38  ;;  %v9642_v2 = vpack.c.bf16 %v7901_v30, %v7900_v1  ;;  %v7930_v35 = vld [vmem:[%s14945_s3 + $0x100] sm:$0xff]  ;;  %v7935_v58 = vld [vmem:[%s14945_s3 + $0x128] sm:$0xff] }
 0x17e   : > { %v1201_v54 = vmax.f32 %v1183_v37, 0.0  ;;  %8922 = vmatmul.mubr.msk.f32.gmra.mrb[6].mxu1 %vm1202_vm6, %v11366_v10  ;;  %v11426_v33 = vld [vmem:[#allocation2 + $0x70] sm:$0xff]  ;;  %v11475_v59 = vld [vmem:[#allocation2 + $0x62] sm:$0xff]  ;;  %v9670_v61 = vpack.c.bf16 %v7931_v36, %v7930_v35  ;;  %v7933_v44 = vld [vmem:[%s14945_s3 + $0x118] sm:$0xff]  ;;  %v9678_v12 = vpack.c.bf16 %v7935_v58, %v7934_v0 }
 0x17f   : > { %v1200_v46 = vmax.f32 %v1182_v63, 0.0  ;;  %8940 = vmatprep.mubr.msk.f32.mxu1 %vm1202_vm6, %v1240_v31  ;;  %v11479_v27 = vld [vmem:[#allocation2 + $0x72] sm:$0xff]  ;;  %v1685_v11 = vld [vmem:[#allocation2 + $0x3] sm:$0xff] }
 0x180   : > { %1239 = vst.msk [vmem:[#allocation2 + $0xb4] sm:$0xff] %vm1202_vm6, %v1201_v54  ;;  %v11490_v50 = vld [vmem:[#allocation2 + $0x13] sm:$0xff]  ;;  %v11500_v60 = vld [vmem:[#allocation2 + $0x23] sm:$0xff] }
 0x181   : > { %1236 = vst.msk [vmem:[#allocation2 + $0xa8] sm:$0xf] %vm1204_vm4, %v1200_v46  ;;  %v11504_v52 = vld [vmem:[#allocation2 + $0x33] sm:$0xff]  ;;  %v11514_v28 = vld [vmem:[#allocation2 + $0x43] sm:$0xff] }
 0x182   : > { %1238 = vst.msk [vmem:[#allocation2 + $0xac] sm:$0xf0] %vm1207_vm5, %v1200_v46  ;;  %8941 = vmatmul.mubr.msk.f32.vlgmr.msra.gmra.mrb[0].mxu1 %vm1202_vm6, %v11384_v47  ;;  %v7936_v29 = vld [vmem:[%s14945_s3 + $0x130] sm:$0xff]  ;;  %v7937_v56 = vld [vmem:[%s14945_s3 + $0x138] sm:$0xff]  ;;  %v7946_v1 = vld [vmem:[%s14945_s3 + $0x140] sm:$0xff] }
 0x183   : > { %9641 = vmatpush3.bf16.msra.mxu1 %v9638_v43  ;;  %8943 = vmatprep.mubr.msk.f32.mxu1 %vm1202_vm6, %v11394_v4  ;;  %v7932_v43 = vld [vmem:[%s14945_s3 + $0x110] sm:$0xff]  ;;  %v9682_v37 = vpack.c.bf16 %v7937_v56, %v7936_v29  ;;  %v7947_v30 = vld [vmem:[%s14945_s3 + $0x148] sm:$0xff]  ;;  %v7950_v32 = vld [vmem:[%s14945_s3 + $0x160] sm:$0xff] }
 0x184   : > { %9643 = vmatprep.subr.bf16.mxu1 %v9642_v2  ;;  %v9674_v13 = vpack.c.bf16 %v7933_v44, %v7932_v43  ;;  %v11518_v63 = vld [vmem:[#allocation2 + $0x53] sm:$0xff]  ;;  %v11528_v54 = vld [vmem:[#allocation2 + $0x63] sm:$0xff]  ;;  %v9686_v31 = vpack.c.bf16 %v7947_v30, %v7946_v1 }
 0x185   : > { %v11532_v46 = vld [vmem:[#allocation2 + $0x73] sm:$0xff]  ;;  %v1839_v62 = vld [vmem:[#allocation2 + $0x4] sm:$0xff] }
 0x186   : > { %8944 = vmatmul.mubr.msk.f32.gmra.mrb[2].mxu1 %vm1202_vm6, %v11398_v15  ;;  %v11543_v3 = vld [vmem:[#allocation2 + $0x14] sm:$0xff]  ;;  %v11553_v17 = vld [vmem:[#allocation2 + $0x24] sm:$0xff] }
 0x187   : > { %9645 = vmatpush3.bf16.msra.mxu1 %v9642_v2  ;;  %8946 = vmatprep.mubr.msk.f32.mxu1 %vm1202_vm6, %v11408_v40  ;;  %v7948_v2 = vld [vmem:[%s14945_s3 + $0x150] sm:$0xff]  ;;  %v7953_v22 = vld [vmem:[%s14945_s3 + $0x178] sm:$0xff]  ;;  %v7962_v42 = vld [vmem:[%s14945_s3 + $0x180] sm:$0xff] }
 0x188   : > { %9647 = vmatprep.subr.bf16.mxu1 %v9646_v6  ;;  %v7952_v55 = vld [vmem:[%s14945_s3 + $0x170] sm:$0xff]  ;;  %v11581_v25 = vld [vmem:[#allocation2 + $0x64] sm:$0xff]  ;;  %v7965_v36 = vld [vmem:[%s14945_s3 + $0x198] sm:$0xff] }
 0x189   : > { %v11571_v41 = vld [vmem:[#allocation2 + $0x54] sm:$0xff]  ;;  %v7966_v43 = vld [vmem:[%s14945_s3 + $0x1a0] sm:$0xff]  ;;  %v7967_v44 = vld [vmem:[%s14945_s3 + $0x1a8] sm:$0xff] }
 0x18a   : > { %8947 = vmatmul.mubr.msk.f32.gmra.mrb[4].mxu1 %vm1202_vm6, %v11412_v49  ;;  %v7964_v35 = vld [vmem:[%s14945_s3 + $0x190] sm:$0xff]  ;;  %v7978_v58 = vld [vmem:[%s14945_s3 + $0x1c0] sm:$0xff]  ;;  %v7981_v1 = vld [vmem:[%s14945_s3 + $0x1d8] sm:$0xff] }
 0x18b   : > { %9649 = vmatpush3.bf16.msra.mxu1 %v9646_v6  ;;  %8949 = vmatprep.mubr.msk.f32.mxu1 %vm1202_vm6, %v11422_v21  ;;  %v9690_v6 = vpack.c.bf16 %v7949_v53, %v7948_v2  ;;  %v11627_v56 = vld [vmem:[#allocation2 + $0x80] sm:$0xff]  ;;  %v7983_v2 = vld [vmem:[%s14945_s3 + $0x1e8] sm:$0xff] }
 0x18c   : > { %9651 = vmatprep.subr.bf16.mxu1 %v9650_v5 }
 0x18e   : > { %8950 = vmatmul.mubr.msk.f32.gmra.mrb[6].mxu1 %vm1202_vm6, %v11426_v33 }
 0x18f   : > { %9653 = vmatpush3.bf16.msra.mxu1 %v9650_v5  ;;  %8968 = vmatprep.mubr.msk.f32.mxu1 %vm1202_vm6, %v1531_v34  ;;  %v7951_v5 = vld [vmem:[%s14945_s3 + $0x168] sm:$0xff] }
 0x190   : > { %9655 = vmatprep.subr.bf16.mxu1 %v9654_v16  ;;  %v9694_v20 = vpack.c.bf16 %v7951_v5, %v7950_v32  ;;  %v11567_v34 = vld [vmem:[#allocation2 + $0x44] sm:$0xff] }
 0x191   : > { %v7994_v32 = vld [vmem:[%s14945_s3 + $0x200] sm:$0xff]  ;;  %v7995_v5 = vld [vmem:[%s14945_s3 + $0x208] sm:$0xff] }
 0x192   : > { %8969 = vmatmul.mubr.msk.f32.vlgmr.msra.gmra.mrb[0].mxu1 %vm1202_vm6, %v11437_v23 }
 0x193   : > { %9657 = vmatpush3.bf16.msra.mxu1 %v9654_v16  ;;  %8971 = vmatprep.mubr.msk.f32.mxu1 %vm1202_vm6, %v11447_v7  ;;  %v11557_v16 = vld [vmem:[#allocation2 + $0x34] sm:$0xff] }
 0x194   : > { %9659 = vmatprep.subr.bf16.mxu1 %v9658_v57 }
 0x196   : > { %8972 = vmatmul.mubr.msk.f32.gmra.mrb[2].mxu1 %vm1202_vm6, %v11451_v18 }
 0x197   : > { %9661 = vmatpush3.bf16.msra.mxu1 %v9658_v57  ;;  %8974 = vmatprep.mubr.msk.f32.mxu1 %vm1202_vm6, %v11461_v19  ;;  %v9698_v57 = vpack.c.bf16 %v7953_v22, %v7952_v55  ;;  %v11669_v55 = vld [vmem:[#allocation2 + $0x81] sm:$0xff]  ;;  %v7996_v22 = vld [vmem:[%s14945_s3 + $0x210] sm:$0xff] }
 0x198   : > { %9663 = vmatprep.subr.bf16.mxu1 %v9662_v9 }
 0x19a   : > { %8975 = vmatmul.mubr.msk.f32.gmra.mrb[4].mxu1 %vm1202_vm6, %v11465_v14 }
 0x19b   : > { %9665 = vmatpush3.bf16.msra.mxu1 %v9662_v9  ;;  %8977 = vmatprep.mubr.msk.f32.mxu1 %vm1202_vm6, %v11475_v59  ;;  %v7963_v9 = vld [vmem:[%s14945_s3 + $0x188] sm:$0xff] }
 0x19c   : > { %9667 = vmatprep.subr.bf16.mxu1 %v9666_v26  ;;  %v9702_v8 = vpack.c.bf16 %v7963_v9, %v7962_v42  ;;  %v7998_v9 = vld [vmem:[%s14945_s3 + $0x220] sm:$0xff] }
 0x19e   : > { %8978 = vmatmul.mubr.msk.f32.gmra.mrb[6].mxu1 %vm1202_vm6, %v11479_v27 }
 0x19f   : > { %9669 = vmatpush3.bf16.msra.mxu1 %v9666_v26  ;;  %8996 = vmatprep.mubr.msk.f32.mxu1 %vm1202_vm6, %v1685_v11  ;;  %v11585_v26 = vld [vmem:[#allocation2 + $0x74] sm:$0xff]  ;;  %v9710_v11 = vpack.c.bf16 %v7967_v44, %v7966_v43  ;;  %v8010_v43 = vld [vmem:[%s14945_s3 + $0x240] sm:$0xff]  ;;  %v8011_v44 = vld [vmem:[%s14945_s3 + $0x248] sm:$0xff] }
 0x1a0   : > { %9671 = vmatprep.subr.bf16.mxu1 %v9670_v61 }
 0x1a2   : > { %8997 = vmatmul.mubr.msk.f32.vlgmr.msra.gmra.mrb[0].mxu1 %vm1202_vm6, %v11490_v50 }
 0x1a3   : > { %9673 = vmatpush3.bf16.msra.mxu1 %v9670_v61  ;;  %8999 = vmatprep.mubr.msk.f32.mxu1 %vm1202_vm6, %v11500_v60  ;;  %v9706_v61 = vpack.c.bf16 %v7965_v36, %v7964_v35  ;;  %v8001_v36 = vld [vmem:[%s14945_s3 + $0x238] sm:$0xff] }
 0x1a4   : > { %9675 = vmatprep.subr.bf16.mxu1 %v9674_v13 }
 0x1a6   : > { %9000 = vmatmul.mubr.msk.f32.gmra.mrb[2].mxu1 %vm1202_vm6, %v11504_v52 }
 0x1a7   : > { %9677 = vmatpush3.bf16.msra.mxu1 %v9674_v13  ;;  %9002 = vmatprep.mubr.msk.f32.mxu1 %vm1202_vm6, %v11514_v28  ;;  %v7969_v13 = vld [vmem:[%s14945_s3 + $0x1b8] sm:$0xff] }
 0x1a8   : > { %9679 = vmatprep.subr.bf16.mxu1 %v9678_v12 }
 0x1aa   : > { %9003 = vmatmul.mubr.msk.f32.gmra.mrb[4].mxu1 %vm1202_vm6, %v11518_v63 }
 0x1ab   : > { %9681 = vmatpush3.bf16.msra.mxu1 %v9678_v12  ;;  %9005 = vmatprep.mubr.msk.f32.mxu1 %vm1202_vm6, %v11528_v54  ;;  %v7979_v12 = vld [vmem:[%s14945_s3 + $0x1c8] sm:$0xff] }
 0x1ac   : > { %9683 = vmatprep.subr.bf16.mxu1 %v9682_v37  ;;  %v9718_v29 = vpack.c.bf16 %v7979_v12, %v7978_v58  ;;  %v8014_v12 = vld [vmem:[%s14945_s3 + $0x260] sm:$0xff] }
 0x1ae   : > { %9006 = vmatmul.mubr.msk.f32.gmra.mrb[6].mxu1 %vm1202_vm6, %v11532_v46 }
 0x1af   : > { %9685 = vmatpush3.bf16.msra.mxu1 %v9682_v37  ;;  %9024 = vmatprep.mubr.msk.f32.mxu1 %vm1202_vm6, %v1839_v62  ;;  %v7980_v37 = vld [vmem:[%s14945_s3 + $0x1d0] sm:$0xff]  ;;  %v7985_v62 = vld [vmem:[%s14945_s3 + $0x1f8] sm:$0xff] }
 0x1b0   : > { %9687 = vmatprep.subr.bf16.mxu1 %v9686_v31  ;;  %v9722_v30 = vpack.c.bf16 %v7981_v1, %v7980_v37  ;;  %v8017_v1 = vld [vmem:[%s14945_s3 + $0x278] sm:$0xff] }
 0x1b2   : > { %9025 = vmatmul.mubr.msk.f32.vlgmr.msra.gmra.mrb[0].mxu1 %vm1202_vm6, %v11543_v3 }
 0x1b3   : > { %9689 = vmatpush3.bf16.msra.mxu1 %v9686_v31  ;;  %9027 = vmatprep.mubr.msk.f32.mxu1 %vm1202_vm6, %v11553_v17  ;;  %v7982_v31 = vld [vmem:[%s14945_s3 + $0x1e0] sm:$0xff] }
 0x1b4   : > { %9691 = vmatprep.subr.bf16.mxu1 %v9690_v6  ;;  %v9726_v53 = vpack.c.bf16 %v7983_v2, %v7982_v31  ;;  %v8026_v31 = vld [vmem:[%s14945_s3 + $0x280] sm:$0xff]  ;;  %v8027_v2 = vld [vmem:[%s14945_s3 + $0x288] sm:$0xff] }
 0x1b6   : > { %9028 = vmatmul.mubr.msk.f32.gmra.mrb[2].mxu1 %vm1202_vm6, %v11557_v16 }
 0x1b7   : > { %9693 = vmatpush3.bf16.msra.mxu1 %v9690_v6  ;;  %9030 = vmatprep.mubr.msk.f32.mxu1 %vm1202_vm6, %v11567_v34 }
 0x1b8   : > { %9695 = vmatprep.subr.bf16.mxu1 %v9694_v20 }
 0x1ba   : > { %9031 = vmatmul.mubr.msk.f32.gmra.mrb[4].mxu1 %vm1202_vm6, %v11571_v41 }
 0x1bb   : > { %9697 = vmatpush3.bf16.msra.mxu1 %v9694_v20  ;;  %9033 = vmatprep.mubr.msk.f32.mxu1 %vm1202_vm6, %v11581_v25  ;;  %v9734_v20 = vpack.c.bf16 %v7995_v5, %v7994_v32  ;;  %v8030_v5 = vld [vmem:[%s14945_s3 + $0x2a0] sm:$0xff] }
 0x1bc   : > { %9699 = vmatprep.subr.bf16.mxu1 %v9698_v57 }
 0x1be   : > { %9034 = vmatmul.mubr.msk.f32.gmra.mrb[6].mxu1 %vm1202_vm6, %v11585_v26 }
 0x1bf   : > { %9701 = vmatpush3.bf16.msra.mxu1 %v9698_v57  ;;  %9052 = vmatprep.mubr.msk.f32.mxu1 %vm1202_vm6, %v11384_v47  ;;  %v7968_v47 = vld [vmem:[%s14945_s3 + $0x1b0] sm:$0xff]  ;;  %v7997_v57 = vld [vmem:[%s14945_s3 + $0x218] sm:$0xff] }
 0x1c0   : > { %9703 = vmatprep.subr.bf16.mxu1 %v9702_v8  ;;  %v9714_v0 = vpack.c.bf16 %v7969_v13, %v7968_v47  ;;  %v9738_v42 = vpack.c.bf16 %v7997_v57, %v7996_v22  ;;  %v11711_v47 = vld [vmem:[#allocation2 + $0x82] sm:$0xff]  ;;  %v8012_v13 = vld [vmem:[%s14945_s3 + $0x250] sm:$0xff]  ;;  %v8033_v57 = vld [vmem:[%s14945_s3 + $0x2b8] sm:$0xff] }
 0x1c2   : > { %9053 = vmatmul.mubr.msk.f32.vlgmr.msra.gmra.mrb[0].mxu1 %vm1202_vm6, %v11394_v4 }
 0x1c3   : > { %9705 = vmatpush3.bf16.msra.mxu1 %v9702_v8  ;;  %9055 = vmatprep.mubr.msk.f32.mxu1 %vm1202_vm6, %v11398_v15  ;;  %v7999_v8 = vld [vmem:[%s14945_s3 + $0x228] sm:$0xff] }
 0x1c4   : > { %9707 = vmatprep.subr.bf16.mxu1 %v9706_v61  ;;  %v9742_v35 = vpack.c.bf16 %v7999_v8, %v7998_v9  ;;  %v8042_v9 = vld [vmem:[%s14945_s3 + $0x2c0] sm:$0xff]  ;;  %v8043_v8 = vld [vmem:[%s14945_s3 + $0x2c8] sm:$0xff] }
 0x1c6   : > { %9056 = vmatmul.mubr.msk.f32.gmra.mrb[2].mxu1 %vm1202_vm6, %v11408_v40 }
 0x1c7   : > { %9709 = vmatpush3.bf16.msra.mxu1 %v9706_v61  ;;  %9058 = vmatprep.mubr.msk.f32.mxu1 %vm1202_vm6, %v11412_v49 }
 0x1c8   : > { %9711 = vmatprep.subr.bf16.mxu1 %v9710_v11 }
 0x1ca   : > { %9059 = vmatmul.mubr.msk.f32.gmra.mrb[4].mxu1 %vm1202_vm6, %v11422_v21 }
 0x1cb   : > { %9713 = vmatpush3.bf16.msra.mxu1 %v9710_v11  ;;  %9061 = vmatprep.mubr.msk.f32.mxu1 %vm1202_vm6, %v11426_v33  ;;  %v9750_v11 = vpack.c.bf16 %v8011_v44, %v8010_v43  ;;  %v8046_v44 = vld [vmem:[%s14945_s3 + $0x2e0] sm:$0xff] }
 0x1cc   : > { %9715 = vmatprep.subr.bf16.mxu1 %v9714_v0 }
 0x1ce   : > { %9062 = vmatmul.mubr.msk.f32.gmra.mrb[6].mxu1 %vm1202_vm6, %v11627_v56 }
 0x1cf   : > { %9717 = vmatpush3.bf16.msra.mxu1 %v9714_v0  ;;  %9080 = vmatprep.mubr.msk.f32.mxu1 %vm1202_vm6, %v11276_v51  ;;  %v7984_v51 = vld [vmem:[%s14945_s3 + $0x1f0] sm:$0xff]  ;;  %v8013_v0 = vld [vmem:[%s14945_s3 + $0x258] sm:$0xff] }
 0x1d0   : > { %9719 = vmatprep.subr.bf16.mxu1 %v9718_v29  ;;  %v9730_v6 = vpack.c.bf16 %v7985_v62, %v7984_v51  ;;  %v9754_v58 = vpack.c.bf16 %v8013_v0, %v8012_v13  ;;  %v11753_v51 = vld [vmem:[#allocation2 + $0x83] sm:$0xff]  ;;  %v8028_v62 = vld [vmem:[%s14945_s3 + $0x290] sm:$0xff]  ;;  %v8049_v0 = vld [vmem:[%s14945_s3 + $0x2f8] sm:$0xff] }
 0x1d2   : > { %9081 = vmatmul.mubr.msk.f32.vlgmr.msra.gmra.mrb[0].mxu1 %vm1202_vm6, %v11299_v45 }
 0x1d3   : > { %9721 = vmatpush3.bf16.msra.mxu1 %v9718_v29  ;;  %9083 = vmatprep.mubr.msk.f32.mxu1 %vm1202_vm6, %v11301_v39  ;;  %v8015_v29 = vld [vmem:[%s14945_s3 + $0x268] sm:$0xff] }
 0x1d4   : > { %9723 = vmatprep.subr.bf16.mxu1 %v9722_v30  ;;  %v9758_v37 = vpack.c.bf16 %v8015_v29, %v8014_v12  ;;  %v8058_v12 = vld [vmem:[%s14945_s3 + $0x300] sm:$0xff]  ;;  %v8059_v29 = vld [vmem:[%s14945_s3 + $0x308] sm:$0xff] }
 0x1d6   : > { %9084 = vmatmul.mubr.msk.f32.gmra.mrb[2].mxu1 %vm1202_vm6, %v11325_v24 }
 0x1d7   : > { %9725 = vmatpush3.bf16.msra.mxu1 %v9722_v30  ;;  %9086 = vmatprep.mubr.msk.f32.mxu1 %vm1202_vm6, %v11349_v48 }
 0x1d8   : > { %9727 = vmatprep.subr.bf16.mxu1 %v9726_v53 }
 0x1da   : > { %9087 = vmatmul.mubr.msk.f32.gmra.mrb[4].mxu1 %vm1202_vm6, %v11364_v38 }
 0x1db   : > { %9729 = vmatpush3.bf16.msra.mxu1 %v9726_v53  ;;  %9089 = vmatprep.mubr.msk.f32.mxu1 %vm1202_vm6, %v11366_v10  ;;  %v9766_v53 = vpack.c.bf16 %v8027_v2, %v8026_v31  ;;  %v8062_v2 = vld [vmem:[%s14945_s3 + $0x320] sm:$0xff] }
 0x1dc   : > { %9731 = vmatprep.subr.bf16.mxu1 %v9730_v6 }
 0x1de   : > { %9090 = vmatmul.mubr.msk.f32.gmra.mrb[6].mxu1 %vm1202_vm6, %v11669_v55 }
 0x1df   : > { %9733 = vmatpush3.bf16.msra.mxu1 %v9730_v6  ;;  %9108 = vmatprep.mubr.msk.f32.mxu1 %vm1202_vm6, %v11437_v23  ;;  %v8000_v23 = vld [vmem:[%s14945_s3 + $0x230] sm:$0xff]  ;;  %v8029_v6 = vld [vmem:[%s14945_s3 + $0x298] sm:$0xff] }
 0x1e0   : > { %9735 = vmatprep.subr.bf16.mxu1 %v9734_v20  ;;  %v9746_v61 = vpack.c.bf16 %v8001_v36, %v8000_v23  ;;  %v9770_v32 = vpack.c.bf16 %v8029_v6, %v8028_v62  ;;  %v11795_v23 = vld [vmem:[#allocation2 + $0x84] sm:$0xff]  ;;  %v8044_v36 = vld [vmem:[%s14945_s3 + $0x2d0] sm:$0xff]  ;;  %v8065_v6 = vld [vmem:[%s14945_s3 + $0x338] sm:$0xff] }
 0x1e2   : > { %9109 = vmatmul.mubr.msk.f32.vlgmr.msra.gmra.mrb[0].mxu1 %vm1202_vm6, %v11447_v7 }
 0x1e3   : > { %9737 = vmatpush3.bf16.msra.mxu1 %v9734_v20  ;;  %9111 = vmatprep.mubr.msk.f32.mxu1 %vm1202_vm6, %v11451_v18  ;;  %v8031_v20 = vld [vmem:[%s14945_s3 + $0x2a8] sm:$0xff] }
 0x1e4   : > { %9739 = vmatprep.subr.bf16.mxu1 %v9738_v42  ;;  %v9774_v22 = vpack.c.bf16 %v8031_v20, %v8030_v5  ;;  %v8076_v5 = vld [vmem:[%s14945_s3 + $0x350] sm:$0xff]  ;;  %v8077_v20 = vld [vmem:[%s14945_s3 + $0x358] sm:$0xff] }
 0x1e6   : > { %9112 = vmatmul.mubr.msk.f32.gmra.mrb[2].mxu1 %vm1202_vm6, %v11461_v19 }
 0x1e7   : > { %9741 = vmatpush3.bf16.msra.mxu1 %v9738_v42  ;;  %9114 = vmatprep.mubr.msk.f32.mxu1 %vm1202_vm6, %v11465_v14 }
 0x1e8   : > { %9743 = vmatprep.subr.bf16.mxu1 %v9742_v35 }
 0x1ea   : > { %9115 = vmatmul.mubr.msk.f32.gmra.mrb[4].mxu1 %vm1202_vm6, %v11475_v59 }
 0x1eb   : > { %9745 = vmatpush3.bf16.msra.mxu1 %v9742_v35  ;;  %9117 = vmatprep.mubr.msk.f32.mxu1 %vm1202_vm6, %v11479_v27  ;;  %v9782_v35 = vpack.c.bf16 %v8043_v8, %v8042_v9  ;;  %v8091_v9 = vld [vmem:[%s14945_s3 + $0x388] sm:$0xff]  ;;  %v8092_v8 = vld [vmem:[%s14945_s3 + $0x390] sm:$0xff] }
 0x1ec   : > { %9747 = vmatprep.subr.bf16.mxu1 %v9746_v61 }
 0x1ee   : > { %9118 = vmatmul.mubr.msk.f32.gmra.mrb[6].mxu1 %vm1202_vm6, %v11711_v47 }
 0x1ef   : > { %9749 = vmatpush3.bf16.msra.mxu1 %v9746_v61  ;;  %9136 = vmatprep.mubr.msk.f32.mxu1 %vm1202_vm6, %v11490_v50  ;;  %v8016_v50 = vld [vmem:[%s14945_s3 + $0x270] sm:$0xff]  ;;  %v8045_v61 = vld [vmem:[%s14945_s3 + $0x2d8] sm:$0xff] }
 0x1f0   : > { %9751 = vmatprep.subr.bf16.mxu1 %v9750_v11  ;;  %v9762_v30 = vpack.c.bf16 %v8017_v1, %v8016_v50  ;;  %v9786_v43 = vpack.c.bf16 %v8045_v61, %v8044_v36  ;;  %v11837_v50 = vld [vmem:[#allocation2 + $0x90] sm:$0xff]  ;;  %v8094_v36 = vld [vmem:[%s14945_s3 + $0x3a0] sm:$0xff]  ;;  %v8095_v61 = vld [vmem:[%s14945_s3 + $0x3a8] sm:$0xff] }
 0x1f1   : > { %v8060_v1 = vld [vmem:[%s14945_s3 + $0x310] sm:$0xff] }
 0x1f2   : > { %9137 = vmatmul.mubr.msk.f32.vlgmr.msra.gmra.mrb[0].mxu1 %vm1202_vm6, %v11500_v60 }
 0x1f3   : > { %9753 = vmatpush3.bf16.msra.mxu1 %v9750_v11  ;;  %9139 = vmatprep.mubr.msk.f32.mxu1 %vm1202_vm6, %v11504_v52  ;;  %v8047_v11 = vld [vmem:[%s14945_s3 + $0x2e8] sm:$0xff] }
 0x1f4   : > { %9755 = vmatprep.subr.bf16.mxu1 %v9754_v58  ;;  %v9790_v13 = vpack.c.bf16 %v8047_v11, %v8046_v44  ;;  %v8097_v44 = vld [vmem:[%s14945_s3 + $0x3b8] sm:$0xff]  ;;  %v8107_v11 = vld [vmem:[%s14945_s3 + $0x3c8] sm:$0xff] }
 0x1f6   : > { %9140 = vmatmul.mubr.msk.f32.gmra.mrb[2].mxu1 %vm1202_vm6, %v11514_v28 }
 0x1f7   : > { %9757 = vmatpush3.bf16.msra.mxu1 %v9754_v58  ;;  %9142 = vmatprep.mubr.msk.f32.mxu1 %vm1202_vm6, %v11518_v63 }
 0x1f8   : > { %9759 = vmatprep.subr.bf16.mxu1 %v9758_v37 }
 0x1fa   : > { %9143 = vmatmul.mubr.msk.f32.gmra.mrb[4].mxu1 %vm1202_vm6, %v11528_v54 }
 0x1fb   : > { %9761 = vmatpush3.bf16.msra.mxu1 %v9758_v37  ;;  %9145 = vmatprep.mubr.msk.f32.mxu1 %vm1202_vm6, %v11532_v46  ;;  %v9798_v37 = vpack.c.bf16 %v8059_v29, %v8058_v12  ;;  %v8113_v29 = vld [vmem:[%s14945_s3 + $0x3f8] sm:$0xff] }
 0x1fc   : > { %9763 = vmatprep.subr.bf16.mxu1 %v9762_v30 }
 0x1fe   : > { %9146 = vmatmul.mubr.msk.f32.gmra.mrb[6].mxu1 %vm1202_vm6, %v11753_v51 }
 0x1ff   : > { %9765 = vmatpush3.bf16.msra.mxu1 %v9762_v30  ;;  %9164 = vmatprep.mubr.msk.f32.mxu1 %vm1202_vm6, %v11543_v3  ;;  %v8032_v3 = vld [vmem:[%s14945_s3 + $0x2b0] sm:$0xff]  ;;  %v8061_v30 = vld [vmem:[%s14945_s3 + $0x318] sm:$0xff] }
 0x200   : > { %9767 = vmatprep.subr.bf16.mxu1 %v9766_v53  ;;  %v9778_v42 = vpack.c.bf16 %v8033_v57, %v8032_v3  ;;  %v9802_v31 = vpack.c.bf16 %v8061_v30, %v8060_v1  ;;  %v8079_v3 = vld [vmem:[%s14945_s3 + $0x368] sm:$0xff]  ;;  %v8124_v1 = vld [vmem:[%s14945_s3 + $0x410] sm:$0xff]  ;;  %v8125_v30 = vld [vmem:[%s14945_s3 + $0x418] sm:$0xff] }
 0x202   : > { %9165 = vmatmul.mubr.msk.f32.vlgmr.msra.gmra.mrb[0].mxu1 %vm1202_vm6, %v11553_v17 }
 0x203   : > { %9769 = vmatpush3.bf16.msra.mxu1 %v9766_v53  ;;  %9167 = vmatprep.mubr.msk.f32.mxu1 %vm1202_vm6, %v11557_v16  ;;  %v8063_v53 = vld [vmem:[%s14945_s3 + $0x328] sm:$0xff] }
 0x204   : > { %9771 = vmatprep.subr.bf16.mxu1 %v9770_v32  ;;  %v9806_v62 = vpack.c.bf16 %v8063_v53, %v8062_v2  ;;  %v8127_v2 = vld [vmem:[%s14945_s3 + $0x428] sm:$0xff] }
 0x206   : > { %9168 = vmatmul.mubr.msk.f32.gmra.mrb[2].mxu1 %vm1202_vm6, %v11567_v34 }
 0x207   : > { %9773 = vmatpush3.bf16.msra.mxu1 %v9770_v32  ;;  %9170 = vmatprep.mubr.msk.f32.mxu1 %vm1202_vm6, %v11571_v41  ;;  %v8075_v32 = vld [vmem:[%s14945_s3 + $0x348] sm:$0xff] }
 0x208   : > { %9775 = vmatprep.subr.bf16.mxu1 %v9774_v22 }
 0x20a   : > { %9171 = vmatmul.mubr.msk.f32.gmra.mrb[4].mxu1 %vm1202_vm6, %v11581_v25 }
 0x20b   : > { %9777 = vmatpush3.bf16.msra.mxu1 %v9774_v22  ;;  %9173 = vmatprep.mubr.msk.f32.mxu1 %vm1202_vm6, %v11585_v26  ;;  %v8078_v22 = vld [vmem:[%s14945_s3 + $0x360] sm:$0xff] }
 0x20c   : > { %9779 = vmatprep.subr.bf16.mxu1 %v9778_v42  ;;  %v9822_v57 = vpack.c.bf16 %v8079_v3, %v8078_v22  ;;  %v12072_v22 = vld [vmem:[#allocation2 + $0x61] sm:$0xff]  ;;  %v8144_v3 = vld [vmem:[%s14945_s3 + $0x470] sm:$0xff] }
 0x20e   : > { %9174 = vmatmul.mubr.msk.f32.gmra.mrb[6].mxu1 %vm1202_vm6, %v11795_v23 }
 0x20f   : > { %9781 = vmatpush3.bf16.msra.mxu1 %v9778_v42  ;;  %9192 = vmatprep.mubr.msk.f32.mxu1 %vm1202_vm6, %v11394_v4  ;;  %v8048_v4 = vld [vmem:[%s14945_s3 + $0x2f0] sm:$0xff]  ;;  %v8081_v42 = vld [vmem:[%s14945_s3 + $0x378] sm:$0xff] }
 0x210   : > { %9783 = vmatprep.subr.bf16.mxu1 %v9782_v35  ;;  %v9794_v58 = vpack.c.bf16 %v8049_v0, %v8048_v4  ;;  %v8109_v4 = vld [vmem:[%s14945_s3 + $0x3d8] sm:$0xff]  ;;  %v8110_v0 = vld [vmem:[%s14945_s3 + $0x3e0] sm:$0xff] }
 0x212   : > { %9193 = vmatmul.mubr.msk.f32.vlgmr.msra.gmra.mrb[0].mxu1 %vm1202_vm6, %v11398_v15 }
 0x213   : > { %9785 = vmatpush3.bf16.msra.mxu1 %v9782_v35  ;;  %9195 = vmatprep.mubr.msk.f32.mxu1 %vm1202_vm6, %v11408_v40  ;;  %v8093_v35 = vld [vmem:[%s14945_s3 + $0x398] sm:$0xff] }
 0x214   : > { %9787 = vmatprep.subr.bf16.mxu1 %v9786_v43 }
 0x216   : > { %9196 = vmatmul.mubr.msk.f32.gmra.mrb[2].mxu1 %vm1202_vm6, %v11412_v49 }
 0x217   : > { %9789 = vmatpush3.bf16.msra.mxu1 %v9786_v43  ;;  %9198 = vmatprep.mubr.msk.f32.mxu1 %vm1202_vm6, %v11422_v21  ;;  %v9838_v43 = vpack.c.bf16 %v8095_v61, %v8094_v36  ;;  %v5533_v36 = vld [vmem:[%s14947_s5 + $0x18] sm:$0xff]  ;;  %v5530_v61 = vld [vmem:[%s14947_s5] sm:$0xff] }
 0x218   : > { %9791 = vmatprep.subr.bf16.mxu1 %v9790_v13 }
 0x21a   : > { %9199 = vmatmul.mubr.msk.f32.gmra.mrb[4].mxu1 %vm1202_vm6, %v11426_v33 }
 0x21b   : > { %9793 = vmatpush3.bf16.msra.mxu1 %v9790_v13  ;;  %9201 = vmatprep.mubr.msk.f32.mxu1 %vm1202_vm6, %v11627_v56  ;;  %v8108_v13 = vld [vmem:[%s14945_s3 + $0x3d0] sm:$0xff] }
 0x21c   : > { %9795 = vmatprep.subr.bf16.mxu1 %v9794_v58 }
 0x21e   : > { %9202 = vmatmul.mubr.msk.f32.gmra.mrb[6].mxu1 %vm1202_vm6, %v11837_v50 }
 0x21f   : > { %9797 = vmatpush3.bf16.msra.mxu1 %v9794_v58  ;;  %9220 = vmatprep.mubr.msk.f32.mxu1 %vm1202_vm6, %v11299_v45  ;;  %v8064_v45 = vld [vmem:[%s14945_s3 + $0x330] sm:$0xff]  ;;  %v8111_v58 = vld [vmem:[%s14945_s3 + $0x3e8] sm:$0xff] }
 0x220   : > { %9799 = vmatprep.subr.bf16.mxu1 %v9798_v37  ;;  %v9854_v12 = vpack.c.bf16 %v8111_v58, %v8110_v0  ;;  %v5536_v0 = vld [vmem:[%s14947_s5 + $0x30] sm:$0xff]  ;;  %v8159_v58 = vld [vmem:[%s14945_s3 + $0x4a8] sm:$0xff] }
 0x222   : > { %9221 = vmatmul.mubr.msk.f32.vlgmr.msra.gmra.mrb[0].mxu1 %vm1202_vm6, %v11301_v39  ;;  %v9810_v39 = vpack.c.bf16 %v8065_v6, %v8064_v45  ;;  %v8139_v45 = vld [vmem:[%s14945_s3 + $0x448] sm:$0xff]  ;;  %v8140_v6 = vld [vmem:[%s14945_s3 + $0x450] sm:$0xff] }
 0x223   : > { %9801 = vmatpush3.bf16.msra.mxu1 %v9798_v37  ;;  %9223 = vmatprep.mubr.msk.f32.mxu1 %vm1202_vm6, %v11325_v24  ;;  %v8074_v24 = vld [vmem:[%s14945_s3 + $0x340] sm:$0xff]  ;;  %v8123_v37 = vld [vmem:[%s14945_s3 + $0x408] sm:$0xff] }
 0x224   : > { %9803 = vmatprep.subr.bf16.mxu1 %v9802_v31 }
 0x226   : > { %9224 = vmatmul.mubr.msk.f32.gmra.mrb[2].mxu1 %vm1202_vm6, %v11349_v48  ;;  %v9814_v48 = vpack.c.bf16 %v8075_v32, %v8074_v24  ;;  %v12058_v32 = vld [vmem:[#allocation2 + $0x41] sm:$0xff] }
 0x227   : > { %9805 = vmatpush3.bf16.msra.mxu1 %v9802_v31  ;;  %9226 = vmatprep.mubr.msk.f32.mxu1 %vm1202_vm6, %v11364_v38  ;;  %v11879_v38 = vld [vmem:[#allocation2 + $0x91] sm:$0xff]  ;;  %v8126_v31 = vld [vmem:[%s14945_s3 + $0x420] sm:$0xff] }
 0x228   : > { %9807 = vmatprep.subr.bf16.mxu1 %v9806_v62  ;;  %v9870_v53 = vpack.c.bf16 %v8127_v2, %v8126_v31  ;;  %v8161_v31 = vld [vmem:[%s14945_s3 + $0x4b8] sm:$0xff]  ;;  %v5543_v2 = vld [vmem:[%s14947_s5 + $0x68] sm:$0xff] }
 0x22a   : > { %9227 = vmatmul.mubr.msk.f32.gmra.mrb[4].mxu1 %vm1202_vm6, %v11366_v10  ;;  %v9818_v10 = vpack.c.bf16 %v8077_v20, %v8076_v5  ;;  %v8143_v5 = vld [vmem:[%s14945_s3 + $0x468] sm:$0xff]  ;;  %v12068_v20 = vld [vmem:[#allocation2 + $0x51] sm:$0xff] }
 0x22b   : > { %9809 = vmatpush3.bf16.msra.mxu1 %v9806_v62  ;;  %9229 = vmatprep.mubr.msk.f32.mxu1 %vm1202_vm6, %v11669_v55  ;;  %v8129_v62 = vld [vmem:[%s14945_s3 + $0x438] sm:$0xff] }
 0x22c   : > { %9811 = vmatprep.subr.bf16.mxu1 %v9810_v39 }
 0x22e   : > { %9230 = vmatmul.mubr.msk.f32.gmra.mrb[6].mxu1 %vm1202_vm6, %v11879_v38 }
 0x22f   : > { %9813 = vmatpush3.bf16.msra.mxu1 %v9810_v39  ;;  %9248 = vmatprep.mubr.msk.f32.mxu1 %vm1202_vm6, %v11447_v7  ;;  %v8080_v7 = vld [vmem:[%s14945_s3 + $0x370] sm:$0xff]  ;;  %v8141_v39 = vld [vmem:[%s14945_s3 + $0x458] sm:$0xff] }
 0x230   : > { %9815 = vmatprep.subr.bf16.mxu1 %v9814_v48  ;;  %v9882_v24 = vpack.c.bf16 %v8141_v39, %v8140_v6  ;;  %v8171_v39 = vld [vmem:[%s14945_s3 + $0x4c8] sm:$0xff] }
 0x232   : > { %9249 = vmatmul.mubr.msk.f32.vlgmr.msra.gmra.mrb[0].mxu1 %vm1202_vm6, %v11451_v18  ;;  %v9826_v18 = vpack.c.bf16 %v8081_v42, %v8080_v7  ;;  %v12082_v7 = vld [vmem:[#allocation2 + $0x71] sm:$0xff] }
 0x233   : > { %9817 = vmatpush3.bf16.msra.mxu1 %v9814_v48  ;;  %9251 = vmatprep.mubr.msk.f32.mxu1 %vm1202_vm6, %v11461_v19  ;;  %v8090_v19 = vld [vmem:[%s14945_s3 + $0x380] sm:$0xff] }
 0x234   : > { %9819 = vmatprep.subr.bf16.mxu1 %v9818_v10  ;;  %v8142_v48 = vld [vmem:[%s14945_s3 + $0x460] sm:$0xff] }
 0x236   : > { %9252 = vmatmul.mubr.msk.f32.gmra.mrb[2].mxu1 %vm1202_vm6, %v11465_v14  ;;  %v9830_v14 = vpack.c.bf16 %v8091_v9, %v8090_v19  ;;  %v8155_v19 = vld [vmem:[%s14945_s3 + $0x488] sm:$0xff]  ;;  %v3841_v9 = vld [vmem:[#allocation2 + $0x32] sm:$0xff] }
 0x237   : > { %9821 = vmatpush3.bf16.msra.mxu1 %v9818_v10  ;;  %9254 = vmatprep.mubr.msk.f32.mxu1 %vm1202_vm6, %v11475_v59  ;;  %v11921_v59 = vld [vmem:[#allocation2 + $0x92] sm:$0xff]  ;;  %v9886_v10 = vpack.c.bf16 %v8143_v5, %v8142_v48  ;;  %v5546_v5 = vld [vmem:[%s14947_s5 + $0x80] sm:$0xff] }
 0x238   : > { %9823 = vmatprep.subr.bf16.mxu1 %v9822_v57 }
 0x23a   : > { %9255 = vmatmul.mubr.msk.f32.gmra.mrb[4].mxu1 %vm1202_vm6, %v11479_v27  ;;  %v9834_v27 = vpack.c.bf16 %v8093_v35, %v8092_v8  ;;  %v12096_v8 = vld [vmem:[#allocation2 + $0xa1] sm:$0xff]  ;;  %v8156_v35 = vld [vmem:[%s14945_s3 + $0x490] sm:$0xff] }
 0x23b   : > { %9825 = vmatpush3.bf16.msra.mxu1 %v9822_v57  ;;  %9257 = vmatprep.mubr.msk.f32.mxu1 %vm1202_vm6, %v11711_v47  ;;  %v8145_v57 = vld [vmem:[%s14945_s3 + $0x478] sm:$0xff] }
 0x23c   : > { %9827 = vmatprep.subr.bf16.mxu1 %v9826_v18  ;;  %v9890_v42 = vpack.c.bf16 %v8145_v57, %v8144_v3  ;;  %v12205_v3 = vld [vmem:[#allocation2 + $0xa2] sm:$0xff] }
 0x23e   : > { %9258 = vmatmul.mubr.msk.f32.gmra.mrb[6].mxu1 %vm1202_vm6, %v11921_v59 }
 0x23f   : > { %9829 = vmatpush3.bf16.msra.mxu1 %v9826_v18  ;;  %9276 = vmatprep.mubr.msk.f32.mxu1 %vm1202_vm6, %v11500_v60  ;;  %v8096_v60 = vld [vmem:[%s14945_s3 + $0x3b0] sm:$0xff]  ;;  %v8154_v18 = vld [vmem:[%s14945_s3 + $0x480] sm:$0xff] }
 0x240   : > { %9831 = vmatprep.subr.bf16.mxu1 %v9830_v14 }
 0x242   : > { %9277 = vmatmul.mubr.msk.f32.vlgmr.msra.gmra.mrb[0].mxu1 %vm1202_vm6, %v11504_v52  ;;  %v9842_v52 = vpack.c.bf16 %v8097_v44, %v8096_v60  ;;  %v5532_v44 = vld [vmem:[%s14947_s5 + $0x10] sm:$0xff] }
 0x243   : > { %9833 = vmatpush3.bf16.msra.mxu1 %v9830_v14  ;;  %9279 = vmatprep.mubr.msk.f32.mxu1 %vm1202_vm6, %v11514_v28  ;;  %v8106_v28 = vld [vmem:[%s14945_s3 + $0x3c0] sm:$0xff]  ;;  %v9894_v14 = vpack.c.bf16 %v8155_v19, %v8154_v18  ;;  %v8173_v18 = vld [vmem:[%s14945_s3 + $0x4d8] sm:$0xff]  ;;  %v5551_v19 = vld [vmem:[%s14947_s5 + $0xa8] sm:$0xff] }
 0x244   : > { %9835 = vmatprep.subr.bf16.mxu1 %v9834_v27 }
 0x246   : > { %9280 = vmatmul.mubr.msk.f32.gmra.mrb[2].mxu1 %vm1202_vm6, %v11518_v63  ;;  %v9846_v63 = vpack.c.bf16 %v8107_v11, %v8106_v28  ;;  %v5537_v28 = vld [vmem:[%s14947_s5 + $0x38] sm:$0xff] }
 0x247   : > { %9837 = vmatpush3.bf16.msra.mxu1 %v9834_v27  ;;  %9282 = vmatprep.mubr.msk.f32.mxu1 %vm1202_vm6, %v11528_v54  ;;  %v11963_v54 = vld [vmem:[#allocation2 + $0x93] sm:$0xff] }
 0x248   : > { %9839 = vmatprep.subr.bf16.mxu1 %v9838_v43  ;;  %v8157_v27 = vld [vmem:[%s14945_s3 + $0x498] sm:$0xff] }
 0x249   : > { %v9898_v11 = vpack.c.bf16 %v8157_v27, %v8156_v35  ;;  %v5550_v27 = vld [vmem:[%s14947_s5 + $0xa0] sm:$0xff] }
 0x24a   : > { %9283 = vmatmul.mubr.msk.f32.gmra.mrb[4].mxu1 %vm1202_vm6, %v11532_v46  ;;  %v9850_v46 = vpack.c.bf16 %v8109_v4, %v8108_v13  ;;  %v10008_v13 = vpack.c.bf16 %v5532_v44, %v5530_v61 }
 0x24b   : > { %9841 = vmatpush3.bf16.msra.mxu1 %v9838_v43  ;;  %9285 = vmatprep.mubr.msk.f32.mxu1 %vm1202_vm6, %v11753_v51  ;;  %v12116_v43 = vld [vmem:[#allocation2 + $0x42] sm:$0xff] }
 0x24c   : > { %9843 = vmatprep.subr.bf16.mxu1 %v9842_v52 }
 0x24e   : > { %9286 = vmatmul.mubr.msk.f32.gmra.mrb[6].mxu1 %vm1202_vm6, %v11963_v54 }
 0x24f   : > { %9845 = vmatpush3.bf16.msra.mxu1 %v9842_v52  ;;  %9304 = vmatprep.mubr.msk.f32.mxu1 %vm1202_vm6, %v11553_v17  ;;  %v8112_v17 = vld [vmem:[%s14945_s3 + $0x3f0] sm:$0xff]  ;;  %v5535_v52 = vld [vmem:[%s14947_s5 + $0x28] sm:$0xff] }
 0x250   : > { %9847 = vmatprep.subr.bf16.mxu1 %v9846_v63  ;;  %v10010_v4 = vpack.c.bf16 %v5537_v28, %v5535_v52  ;;  %v8175_v52 = vld [vmem:[%s14945_s3 + $0x4e8] sm:$0xff] }
 0x251   : > { %v5555_v28 = vld [vmem:[%s14947_s5 + $0xc8] sm:$0xff] }
 0x252   : > { %9305 = vmatmul.mubr.msk.f32.vlgmr.msra.gmra.mrb[0].mxu1 %vm1202_vm6, %v11557_v16  ;;  %v9858_v16 = vpack.c.bf16 %v8113_v29, %v8112_v17  ;;  %v5541_v17 = vld [vmem:[%s14947_s5 + $0x58] sm:$0xff] }
 0x253   : > { %9849 = vmatpush3.bf16.msra.mxu1 %v9846_v63  ;;  %9307 = vmatprep.mubr.msk.f32.mxu1 %vm1202_vm6, %v11567_v34  ;;  %v8122_v34 = vld [vmem:[%s14945_s3 + $0x400] sm:$0xff]  ;;  %v12147_v29 = vld [vmem:[#allocation2 + $0x52] sm:$0xff] }
 0x254   : > { %9851 = vmatprep.subr.bf16.mxu1 %v9850_v46  ;;  %v8158_v63 = vld [vmem:[%s14945_s3 + $0x4a0] sm:$0xff] }
 0x256   : > { %9308 = vmatmul.mubr.msk.f32.gmra.mrb[2].mxu1 %vm1202_vm6, %v11571_v41  ;;  %v9862_v41 = vpack.c.bf16 %v8123_v37, %v8122_v34  ;;  %v5538_v34 = vld [vmem:[%s14947_s5 + $0x40] sm:$0xff]  ;;  %v5540_v37 = vld [vmem:[%s14947_s5 + $0x50] sm:$0xff] }
 0x257   : > { %9853 = vmatpush3.bf16.msra.mxu1 %v9850_v46  ;;  %9310 = vmatprep.mubr.msk.f32.mxu1 %vm1202_vm6, %v11581_v25  ;;  %v12005_v25 = vld [vmem:[#allocation2 + $0x94] sm:$0xff]  ;;  %v5534_v46 = vld [vmem:[%s14947_s5 + $0x20] sm:$0xff] }
 0x258   : > { %9855 = vmatprep.subr.bf16.mxu1 %v9854_v12 }
 0x25a   : > { %9311 = vmatmul.mubr.msk.f32.gmra.mrb[4].mxu1 %vm1202_vm6, %v11585_v26  ;;  %v9866_v26 = vpack.c.bf16 %v8125_v30, %v8124_v1  ;;  %v9902_v1 = vpack.c.bf16 %v8159_v58, %v8158_v63  ;;  %v8160_v30 = vld [vmem:[%s14945_s3 + $0x4b0] sm:$0xff] }
 0x25b   : > { %9857 = vmatpush3.bf16.msra.mxu1 %v9854_v12  ;;  %9313 = vmatprep.mubr.msk.f32.mxu1 %vm1202_vm6, %v11795_v23  ;;  %v5539_v12 = vld [vmem:[%s14947_s5 + $0x48] sm:$0xff]  ;;  %v12244_v63 = vld [vmem:[#allocation2 + $0x53] sm:$0xff] }
 0x25c   : > { %9859 = vmatprep.subr.bf16.mxu1 %v9858_v16 }
 0x25e   : > { %9314 = vmatmul.mubr.msk.f32.gmra.mrb[6].mxu1 %vm1202_vm6, %v12005_v25 }
 0x25f   : > { %9861 = vmatpush3.bf16.msra.mxu1 %v9858_v16  ;;  %9332 = vmatprep.mubr.msk.f32.mxu1 %vm1202_vm6, %v11398_v15  ;;  %v8128_v15 = vld [vmem:[%s14945_s3 + $0x430] sm:$0xff]  ;;  %v10012_v16 = vpack.c.bf16 %v5536_v0, %v5534_v46 }
 0x260   : > { %9863 = vmatprep.subr.bf16.mxu1 %v9862_v41  ;;  %v5556_v46 = vld [vmem:[%s14947_s5 + $0xd0] sm:$0xff] }
 0x262   : > { %9333 = vmatmul.mubr.msk.f32.vlgmr.msra.gmra.mrb[0].mxu1 %vm1202_vm6, %v11408_v40  ;;  %v9874_v40 = vpack.c.bf16 %v8129_v62, %v8128_v15  ;;  %v12173_v15 = vld [vmem:[#allocation2 + $0x72] sm:$0xff]  ;;  %v10016_v62 = vpack.c.bf16 %v5540_v37, %v5538_v34 }
 0x263   : > { %9865 = vmatpush3.bf16.msra.mxu1 %v9862_v41  ;;  %9335 = vmatprep.mubr.msk.f32.mxu1 %vm1202_vm6, %v11412_v49  ;;  %v8138_v49 = vld [vmem:[%s14945_s3 + $0x440] sm:$0xff]  ;;  %v12264_v34 = vld [vmem:[#allocation2 + $0x73] sm:$0xff] }
 0x264   : > { %9867 = vmatprep.subr.bf16.mxu1 %v9866_v26  ;;  %v12157_v41 = vld [vmem:[#allocation2 + $0x62] sm:$0xff] }
 0x266   : > { %9336 = vmatmul.mubr.msk.f32.gmra.mrb[2].mxu1 %vm1202_vm6, %v11422_v21  ;;  %v9878_v21 = vpack.c.bf16 %v8139_v45, %v8138_v49  ;;  %v5544_v49 = vld [vmem:[%s14947_s5 + $0x70] sm:$0xff]  ;;  %v9906_v45 = vpack.c.bf16 %v8161_v31, %v8160_v30  ;;  %v8186_v30 = vld [vmem:[%s14945_s3 + $0x500] sm:$0xff] }
 0x267   : > { %9869 = vmatpush3.bf16.msra.mxu1 %v9866_v26  ;;  %9338 = vmatprep.mubr.msk.f32.mxu1 %vm1202_vm6, %v11426_v33  ;;  %v12047_v33 = vld [vmem:[#allocation2 + $0xa0] sm:$0xff]  ;;  %v10014_v26 = vpack.c.bf16 %v5541_v17, %v5539_v12  ;;  %v8176_v17 = vld [vmem:[%s14945_s3 + $0x4f0] sm:$0xff] }
 0x268   : > { %9871 = vmatprep.subr.bf16.mxu1 %v9870_v53  ;;  %v12254_v12 = vld [vmem:[#allocation2 + $0x63] sm:$0xff] }
 0x26a   : > { %9339 = vmatmul.mubr.msk.f32.gmra.mrb[4].mxu1 %vm1202_vm6, %v11627_v56  ;;  %v3687_v56 = vld [vmem:[#allocation2 + $0x31] sm:$0xff] }
 0x26b   : > { %9873 = vmatpush3.bf16.msra.mxu1 %v9870_v53  ;;  %9341 = vmatprep.mubr.msk.f32.mxu1 %vm1202_vm6, %v11837_v50  ;;  %v5545_v53 = vld [vmem:[%s14947_s5 + $0x78] sm:$0xff] }
 0x26c   : > { %9875 = vmatprep.subr.bf16.mxu1 %v9874_v40  ;;  %v10018_v6 = vpack.c.bf16 %v5545_v53, %v5543_v2  ;;  %v12278_v2 = vld [vmem:[#allocation2 + $0xa3] sm:$0xff]  ;;  %v8188_v53 = vld [vmem:[%s14945_s3 + $0x510] sm:$0xff] }
 0x26e   : > { %9342 = vmatmul.mubr.msk.f32.gmra.mrb[6].mxu1 %vm1202_vm6, %v12047_v33 }
 0x26f   : > { %9877 = vmatpush3.bf16.msra.mxu1 %v9874_v40  ;;  %9360 = vmatprep.mubr.msk.f32.mxu1 %vm1202_vm6, %v3687_v56  ;;  %v5542_v40 = vld [vmem:[%s14947_s5 + $0x60] sm:$0xff]  ;;  %v5547_v56 = vld [vmem:[%s14947_s5 + $0x88] sm:$0xff] }
 0x270   : > { %9879 = vmatprep.subr.bf16.mxu1 %v9878_v21  ;;  %v10020_v48 = vpack.c.bf16 %v5544_v49, %v5542_v40  ;;  %v12289_v49 = vld [vmem:[#allocation2 + $0x44] sm:$0xff] }
 0x272   : > { %9361 = vmatmul.mubr.msk.f32.vlgmr.msra.gmra.mrb[0].mxu1 %vm1202_vm6, %v12058_v32 }
 0x273   : > { %9881 = vmatpush3.bf16.msra.mxu1 %v9878_v21  ;;  %9363 = vmatprep.mubr.msk.f32.mxu1 %vm1202_vm6, %v12068_v20  ;;  %v8170_v21 = vld [vmem:[%s14945_s3 + $0x4c0] sm:$0xff] }
 0x274   : > { %9883 = vmatprep.subr.bf16.mxu1 %v9882_v24  ;;  %v9910_v57 = vpack.c.bf16 %v8171_v39, %v8170_v21  ;;  %v8191_v21 = vld [vmem:[%s14945_s3 + $0x528] sm:$0xff] }
 0x276   : > { %9364 = vmatmul.mubr.msk.f32.gmra.mrb[2].mxu1 %vm1202_vm6, %v12072_v22 }
 0x277   : > { %9885 = vmatpush3.bf16.msra.mxu1 %v9882_v24  ;;  %9366 = vmatprep.mubr.msk.f32.mxu1 %vm1202_vm6, %v12082_v7  ;;  %v5549_v24 = vld [vmem:[%s14947_s5 + $0x98] sm:$0xff] }
 0x278   : > { %9887 = vmatprep.subr.bf16.mxu1 %v9886_v10 }
 0x27a   : > { %9367 = vmatmul.mubr.msk.f32.gmra.mrb[4].mxu1 %vm1202_vm6, %v11669_v55  ;;  %v5531_v55 = vld [vmem:[%s14947_s5 + $0x8] sm:$0xff] }
 0x27b   : > { %9889 = vmatpush3.bf16.msra.mxu1 %v9886_v10  ;;  %9369 = vmatprep.mubr.msk.f32.mxu1 %vm1202_vm6, %v11879_v38  ;;  %v10006_v60 = vpack.c.bf16 %v5533_v36, %v5531_v55  ;;  %v5548_v10 = vld [vmem:[%s14947_s5 + $0x90] sm:$0xff]  ;;  %v12228_v36 = vld [vmem:[#allocation2 + $0x43] sm:$0xff] }
 0x27c   : > { %9891 = vmatprep.subr.bf16.mxu1 %v9890_v42  ;;  %v10024_v35 = vpack.c.bf16 %v5548_v10, %v5546_v5  ;;  %v5552_v55 = vld [vmem:[%s14947_s5 + $0xb0] sm:$0xff] }
 0x27d   : > { %10007 = vmatprep.subr.bf16.mxu0 %v10006_v60  ;;  %v8174_v60 = vld [vmem:[%s14945_s3 + $0x4e0] sm:$0xff]  ;;  %v12313_v5 = vld [vmem:[#allocation2 + $0x74] sm:$0xff] }
 0x27e   : > { %9370 = vmatmul.mubr.msk.f32.gmra.mrb[6].mxu1 %vm1202_vm6, %v12096_v8  ;;  %10009 = vmatpush1.bf16.msra.mxu0 %v10008_v13  ;;  %v10028_v13 = vpack.c.bf16 %v5552_v55, %v5550_v27  ;;  %v9918_v0 = vpack.c.bf16 %v8175_v52, %v8174_v60  ;;  %v8206_v27 = vld [vmem:[%s14945_s3 + $0x560] sm:$0xff]  ;;  %v8207_v55 = vld [vmem:[%s14945_s3 + $0x568] sm:$0xff]  ;;  %v8208_v52 = vld [vmem:[%s14945_s3 + $0x570] sm:$0xff] }
 0x27f   : > { %9893 = vmatpush3.bf16.msra.mxu1 %v9890_v42  ;;  %9388 = vmatprep.mubr.msk.f32.mxu1 %vm1202_vm6, %v3841_v9  ;;  %v10022_v42 = vpack.c.bf16 %v5549_v24, %v5547_v56  ;;  %v5553_v9 = vld [vmem:[%s14947_s5 + $0xb8] sm:$0xff]  ;;  %v12303_v56 = vld [vmem:[#allocation2 + $0x64] sm:$0xff]  ;;  %v8192_v24 = vld [vmem:[%s14945_s3 + $0x530] sm:$0xff]  ;;  %v9950_v60 = vpack.c.bf16 %v8207_v55, %v8206_v27 }
 0x280   : > { %9895 = vmatprep.subr.bf16.mxu1 %v9894_v14  ;;  %10011 = vmatprep.subr.bf16.mxu0 %v10010_v4  ;;  %v10026_v44 = vpack.c.bf16 %v5553_v9, %v5551_v19  ;;  %v5554_v4 = vld [vmem:[%s14947_s5 + $0xc0] sm:$0xff]  ;;  %v8204_v19 = vld [vmem:[%s14945_s3 + $0x550] sm:$0xff]  ;;  %v8205_v9 = vld [vmem:[%s14945_s3 + $0x558] sm:$0xff] }
 0x281   : > { %v10032_v37 = vpack.c.bf16 %v5556_v46, %v5554_v4  ;;  %v8218_v4 = vld [vmem:[%s14945_s3 + $0x580] sm:$0xff]  ;;  %v8219_v46 = vld [vmem:[%s14945_s3 + $0x588] sm:$0xff]  ;;  %v6634_v27 = vld [vmem:[%s14947_s5 + $0x930] sm:$0xff] }
 0x282   : > { %9389 = vmatmul.mubr.msk.f32.vlgmr.msra.gmra.mrb[0].mxu1 %vm1202_vm6, %v12116_v43  ;;  %10013 = vmatpush1.bf16.msra.mxu0 %v10012_v16  ;;  %v8177_v16 = vld [vmem:[%s14945_s3 + $0x4f8] sm:$0xff] }
 0x283   : > { %9897 = vmatpush3.bf16.msra.mxu1 %v9894_v14  ;;  %9391 = vmatprep.mubr.msk.f32.mxu1 %vm1202_vm6, %v12147_v29  ;;  %v3995_v14 = vld [vmem:[#allocation2 + $0x33] sm:$0xff] }
 0x284   : > { %9899 = vmatprep.subr.bf16.mxu1 %v9898_v11  ;;  %10015 = vmatprep.subr.bf16.mxu0 %v10014_v26  ;;  %v8187_v26 = vld [vmem:[%s14945_s3 + $0x508] sm:$0xff] }
 0x285   : > { %v9926_v31 = vpack.c.bf16 %v8187_v26, %v8186_v30  ;;  %v8225_v30 = vld [vmem:[%s14945_s3 + $0x5b8] sm:$0xff]  ;;  %v4461_v26 = vld [vmem:[#allocation2 + $0x81] sm:$0xff] }
 0x286   : > { %9392 = vmatmul.mubr.msk.f32.gmra.mrb[2].mxu1 %vm1202_vm6, %v12157_v41  ;;  %10017 = vmatpush1.bf16.msra.mxu0 %v10016_v62  ;;  %v8189_v62 = vld [vmem:[%s14945_s3 + $0x518] sm:$0xff] }
 0x287   : > { %9901 = vmatpush3.bf16.msra.mxu1 %v9898_v11  ;;  %9394 = vmatprep.mubr.msk.f32.mxu1 %vm1202_vm6, %v12173_v15  ;;  %v5557_v11 = vld [vmem:[%s14947_s5 + $0xd8] sm:$0xff]  ;;  %v9930_v40 = vpack.c.bf16 %v8189_v62, %v8188_v53  ;;  %v8236_v62 = vld [vmem:[%s14945_s3 + $0x5d0] sm:$0xff] }
 0x288   : > { %9903 = vmatprep.subr.bf16.mxu1 %v9902_v1  ;;  %10019 = vmatprep.subr.bf16.mxu0 %v10018_v6  ;;  %v10030_v58 = vpack.c.bf16 %v5557_v11, %v5555_v28  ;;  %v12299_v6 = vld [vmem:[#allocation2 + $0x54] sm:$0xff]  ;;  %v4307_v11 = vld [vmem:[#allocation2 + $0x80] sm:$0xff] }
 0x289   : > { %v8209_v28 = vld [vmem:[%s14945_s3 + $0x578] sm:$0xff] }
 0x28a   : > { %9395 = vmatmul.mubr.msk.f32.gmra.mrb[4].mxu1 %vm1202_vm6, %v11711_v47  ;;  %v8172_v47 = vld [vmem:[%s14945_s3 + $0x4d0] sm:$0xff]  ;;  %10021 = vmatpush1.bf16.msra.mxu0 %v10020_v48  ;;  %v8193_v48 = vld [vmem:[%s14945_s3 + $0x538] sm:$0xff] }
 0x28b   : > { %9905 = vmatpush3.bf16.msra.mxu1 %v9902_v1  ;;  %9397 = vmatprep.mubr.msk.f32.mxu1 %vm1202_vm6, %v11921_v59  ;;  %v9914_v61 = vpack.c.bf16 %v8173_v18, %v8172_v47  ;;  %v9922_v1 = vpack.c.bf16 %v8177_v16, %v8176_v17  ;;  %v9938_v10 = vpack.c.bf16 %v8193_v48, %v8192_v24  ;;  %v8203_v47 = vld [vmem:[%s14945_s3 + $0x548] sm:$0xff]  ;;  %v8220_v17 = vld [vmem:[%s14945_s3 + $0x590] sm:$0xff]  ;;  %v8221_v16 = vld [vmem:[%s14945_s3 + $0x598] sm:$0xff] }
 0x28c   : > { %9907 = vmatprep.subr.bf16.mxu1 %v9906_v45  ;;  %10023 = vmatprep.subr.bf16.mxu0 %v10022_v42  ;;  %v12327_v18 = vld [vmem:[#allocation2 + $0xa4] sm:$0xff]  ;;  %v4464_v53 = vld [vmem:[#allocation2 + $0xb1] sm:$0xff] }
 0x28d   : > { %v8251_v24 = vld [vmem:[%s14945_s3 + $0x608] sm:$0xff]  ;;  %v4618_v48 = vld [vmem:[#allocation2 + $0xb2] sm:$0xff] }
 0x28e   : > { %9398 = vmatmul.mubr.msk.f32.gmra.mrb[6].mxu1 %vm1202_vm6, %v12205_v3  ;;  %10025 = vmatpush1.bf16.msra.mxu0 %v10024_v35  ;;  %v4304_v35 = vld [vmem:[#allocation2 + $0x50] sm:$0xff] }
 0x28f   : > { %9909 = vmatpush3.bf16.msra.mxu1 %v9906_v45  ;;  %9416 = vmatprep.mubr.msk.f32.mxu1 %vm1202_vm6, %v3995_v14  ;;  %v8190_v45 = vld [vmem:[%s14945_s3 + $0x520] sm:$0xff]  ;;  %v9946_v14 = vpack.c.bf16 %v8205_v9, %v8204_v19  ;;  %v8257_v19 = vld [vmem:[%s14945_s3 + $0x638] sm:$0xff] }
 0x290   : > { %9911 = vmatprep.subr.bf16.mxu1 %v9910_v57  ;;  %10027 = vmatprep.subr.bf16.mxu0 %v10026_v44  ;;  %v9934_v39 = vpack.c.bf16 %v8191_v21, %v8190_v45  ;;  %v4306_v44 = vld [vmem:[#allocation2 + $0x70] sm:$0xff]  ;;  %v8241_v21 = vld [vmem:[%s14945_s3 + $0x5f8] sm:$0xff]  ;;  %v4769_v9 = vld [vmem:[#allocation2 + $0x83] sm:$0xff] }
 0x292   : > { %9417 = vmatmul.mubr.msk.f32.vlgmr.msra.gmra.mrb[0].mxu1 %vm1202_vm6, %v12228_v36  ;;  %10029 = vmatpush1.bf16.msra.mxu0 %v10028_v13  ;;  %v9954_v13 = vpack.c.bf16 %v8209_v28, %v8208_v52  ;;  %v5559_v52 = vld [vmem:[%s14947_s5 + $0xe8] sm:$0xff]  ;;  %v5561_v28 = vld [vmem:[%s14947_s5 + $0xf8] sm:$0xff] }
 0x293   : > { %9913 = vmatpush3.bf16.msra.mxu1 %v9910_v57  ;;  %9419 = vmatprep.mubr.msk.f32.mxu1 %vm1202_vm6, %v12244_v63  ;;  %v8202_v57 = vld [vmem:[%s14945_s3 + $0x540] sm:$0xff] }
 0x294   : > { %9915 = vmatprep.subr.bf16.mxu1 %v9914_v61  ;;  %10031 = vmatprep.subr.bf16.mxu0 %v10030_v58  ;;  %v9942_v42 = vpack.c.bf16 %v8203_v47, %v8202_v57  ;;  %v4310_v58 = vld [vmem:[#allocation2 + $0xb0] sm:$0xff]  ;;  %v8253_v57 = vld [vmem:[%s14945_s3 + $0x618] sm:$0xff]  ;;  %v8255_v47 = vld [vmem:[%s14945_s3 + $0x628] sm:$0xff] }
 0x296   : > { %9420 = vmatmul.mubr.msk.f32.gmra.mrb[2].mxu1 %vm1202_vm6, %v12254_v12  ;;  %10033 = vmatpush1.bf16.msra.mxu0 %v10032_v37  ;;  %v8223_v37 = vld [vmem:[%s14945_s3 + $0x5a8] sm:$0xff] }
 0x297   : > { %9917 = vmatpush3.bf16.msra.mxu1 %v9914_v61  ;;  %9422 = vmatprep.mubr.msk.f32.mxu1 %vm1202_vm6, %v12264_v34  ;;  %v4305_v61 = vld [vmem:[#allocation2 + $0x60] sm:$0xff] }
 0x298   : > { %9919 = vmatprep.subr.bf16.mxu1 %v9918_v0 }
 0x29a   : > { %9423 = vmatmul.mubr.msk.f32.gmra.mrb[4].mxu1 %vm1202_vm6, %v11753_v51  ;;  %v4149_v51 = vld [vmem:[#allocation2 + $0x34] sm:$0xff] }
 0x29b   : > { %9921 = vmatpush3.bf16.msra.mxu1 %v9918_v0  ;;  %9425 = vmatprep.mubr.msk.f32.mxu1 %vm1202_vm6, %v11963_v54  ;;  %v9958_v0 = vpack.c.bf16 %v8219_v46, %v8218_v4  ;;  %v5560_v4 = vld [vmem:[%s14947_s5 + $0xf0] sm:$0xff]  ;;  %v6636_v46 = vld [vmem:[%s14947_s5 + $0x940] sm:$0xff] }
 0x29c   : > { %9923 = vmatprep.subr.bf16.mxu1 %v9922_v1 }
 0x29e   : > { %9426 = vmatmul.mubr.msk.f32.gmra.mrb[6].mxu1 %vm1202_vm6, %v12278_v2 }
 0x29f   : > { %9925 = vmatpush3.bf16.msra.mxu1 %v9922_v1  ;;  %9444 = vmatprep.mubr.msk.f32.mxu1 %vm1202_vm6, %v4149_v51  ;;  %v8237_v51 = vld [vmem:[%s14945_s3 + $0x5d8] sm:$0xff] }
 0x2a0   : > { %9927 = vmatprep.subr.bf16.mxu1 %v9926_v31 }
 0x2a2   : > { %9445 = vmatmul.mubr.msk.f32.vlgmr.msra.gmra.mrb[0].mxu1 %vm1202_vm6, %v12289_v49 }
 0x2a3   : > { %9929 = vmatpush3.bf16.msra.mxu1 %v9926_v31  ;;  %9447 = vmatprep.mubr.msk.f32.mxu1 %vm1202_vm6, %v12299_v6  ;;  %v8235_v31 = vld [vmem:[%s14945_s3 + $0x5c8] sm:$0xff] }
 0x2a4   : > { %9931 = vmatprep.subr.bf16.mxu1 %v9930_v40 }
 0x2a6   : > { %9448 = vmatmul.mubr.msk.f32.gmra.mrb[2].mxu1 %vm1202_vm6, %v12303_v56 }
 0x2a7   : > { %9933 = vmatpush3.bf16.msra.mxu1 %v9930_v40  ;;  %9450 = vmatprep.mubr.msk.f32.mxu1 %vm1202_vm6, %v12313_v5  ;;  %v8239_v40 = vld [vmem:[%s14945_s3 + $0x5e8] sm:$0xff] }
 0x2a8   : > { %9935 = vmatprep.subr.bf16.mxu1 %v9934_v39 }
 0x2aa   : > { %9451 = vmatmul.mubr.msk.f32.gmra.mrb[4].mxu1 %vm1202_vm6, %v11795_v23  ;;  %v4303_v23 = vld [vmem:[#allocation2 + $0x40] sm:$0xff] }
 0x2ab   : > { %9937 = vmatpush3.bf16.msra.mxu1 %v9934_v39  ;;  %9453 = vmatprep.mubr.msk.f32.mxu1 %vm1202_vm6, %v12005_v25  ;;  %v4615_v39 = vld [vmem:[#allocation2 + $0x82] sm:$0xff] }
 0x2ac   : > { %9939 = vmatprep.subr.bf16.mxu1 %v9938_v10 }
 0x2ae   : > { %9454 = vmatmul.mubr.msk.f32.gmra.mrb[6].mxu1 %vm1202_vm6, %v12327_v18 }
 0x2af   : > { %9941 = vmatpush3.bf16.msra.mxu1 %v9938_v10  ;;  %9472 = vmatprep.mubr.msk.f32.mxu1 %vm1202_vm6, %v4303_v23  ;;  %v8252_v10 = vld [vmem:[%s14945_s3 + $0x610] sm:$0xff]  ;;  %v6635_v23 = vld [vmem:[%s14947_s5 + $0x938] sm:$0xff] }
 0x2b0   : > { %9943 = vmatprep.subr.bf16.mxu1 %v9942_v42 }
 0x2b2   : > { %9473 = vmatmul.mubr.msk.f32.vlgmr.msra.gmra.mrb[0].mxu1 %vm1202_vm6, %v4304_v35  ;;  %v6632_v35 = vld [vmem:[%s14947_s5 + $0x920] sm:$0xff] }
 0x2b3   : > { %9945 = vmatpush3.bf16.msra.mxu1 %v9942_v42  ;;  %9475 = vmatprep.mubr.msk.f32.mxu1 %vm1202_vm6, %v4305_v61  ;;  %v10300_v55 = vpack.c.bf16 %v6634_v27, %v6632_v35  ;;  %v6637_v61 = vld [vmem:[%s14947_s5 + $0x948] sm:$0xff] }
 0x2b4   : > { %9947 = vmatprep.subr.bf16.mxu1 %v9946_v14 }
 0x2b6   : > { %9476 = vmatmul.mubr.msk.f32.gmra.mrb[2].mxu1 %vm1202_vm6, %v4306_v44 }
 0x2b7   : > { %9949 = vmatpush3.bf16.msra.mxu1 %v9946_v14  ;;  %9478 = vmatprep.mubr.msk.f32.mxu1 %vm1202_vm6, %v4307_v11  ;;  %v10034_v11 = vpack.c.bf16 %v5561_v28, %v5559_v52 }
 0x2b8   : > { %9951 = vmatprep.subr.bf16.mxu1 %v9950_v60 }
 0x2b9   : > { %10035 = vmatprep.subr.bf16.mxu0 %v10034_v11 }
 0x2ba   : > { %9479 = vmatmul.mubr.msk.f32.gmra.mrb[4].mxu1 %vm1202_vm6, %v11837_v50  ;;  %v9962_v50 = vpack.c.bf16 %v8221_v16, %v8220_v17  ;;  %v6641_v16 = vld [vmem:[%s14947_s5 + $0x968] sm:$0xff] }
 0x2bb   : > { %9953 = vmatpush3.bf16.msra.mxu1 %v9950_v60  ;;  %9481 = vmatprep.mubr.msk.f32.mxu1 %vm1202_vm6, %v12047_v33  ;;  %v8222_v33 = vld [vmem:[%s14945_s3 + $0x5a0] sm:$0xff]  ;;  %v6639_v60 = vld [vmem:[%s14947_s5 + $0x958] sm:$0xff] }
 0x2bc   : > { %9955 = vmatprep.subr.bf16.mxu1 %v9954_v13  ;;  %v9966_v1 = vpack.c.bf16 %v8223_v37, %v8222_v33  ;;  %v10302_v44 = vpack.c.bf16 %v6639_v60, %v6637_v61  ;;  %v6640_v37 = vld [vmem:[%s14947_s5 + $0x960] sm:$0xff] }
 0x2be   : > { %9482 = vmatmul.mubr.msk.f32.gmra.mrb[6].mxu1 %vm1202_vm6, %v4310_v58  ;;  %v6638_v58 = vld [vmem:[%s14947_s5 + $0x950] sm:$0xff] }
 0x2bf   : > { %9957 = vmatpush3.bf16.msra.mxu1 %v9954_v13  ;;  %9500 = vmatprep.mubr.msk.f32.mxu1 %vm1202_vm6, %v12058_v32  ;;  %v8224_v32 = vld [vmem:[%s14945_s3 + $0x5b0] sm:$0xff]  ;;  %v5558_v13 = vld [vmem:[%s14947_s5 + $0xe0] sm:$0xff]  ;;  %v10304_v17 = vpack.c.bf16 %v6638_v58, %v6636_v46 }
 0x2c0   : > { %9959 = vmatprep.subr.bf16.mxu1 %v9958_v0 }
 0x2c2   : > { %9501 = vmatmul.mubr.msk.f32.vlgmr.msra.gmra.mrb[0].mxu1 %vm1202_vm6, %v12068_v20  ;;  %v9970_v20 = vpack.c.bf16 %v8225_v30, %v8224_v32  ;;  %v6645_v30 = vld [vmem:[%s14947_s5 + $0x988] sm:$0xff] }
 0x2c3   : > { %9961 = vmatpush3.bf16.msra.mxu1 %v9958_v0  ;;  %9503 = vmatprep.mubr.msk.f32.mxu1 %vm1202_vm6, %v12072_v22  ;;  %v8234_v22 = vld [vmem:[%s14945_s3 + $0x5c0] sm:$0xff]  ;;  %v10036_v0 = vpack.c.bf16 %v5560_v4, %v5558_v13 }
 0x2c4   : > { %9963 = vmatprep.subr.bf16.mxu1 %v9962_v50 }
 0x2c5   : > { %10037 = vmatpush1.bf16.msra.mxu0 %v10036_v0 }
 0x2c6   : > { %9504 = vmatmul.mubr.msk.f32.gmra.mrb[2].mxu1 %vm1202_vm6, %v12082_v7  ;;  %v9974_v7 = vpack.c.bf16 %v8235_v31, %v8234_v22  ;;  %v6644_v22 = vld [vmem:[%s14947_s5 + $0x980] sm:$0xff]  ;;  %v6646_v31 = vld [vmem:[%s14947_s5 + $0x990] sm:$0xff] }
 0x2c7   : > { %9965 = vmatpush3.bf16.msra.mxu1 %v9962_v50  ;;  %9506 = vmatprep.mubr.msk.f32.mxu1 %vm1202_vm6, %v4461_v26  ;;  %v6643_v50 = vld [vmem:[%s14947_s5 + $0x978] sm:$0xff] }
 0x2c8   : > { %9967 = vmatprep.subr.bf16.mxu1 %v9966_v1  ;;  %v10306_v33 = vpack.c.bf16 %v6643_v50, %v6641_v16  ;;  %v6647_v26 = vld [vmem:[%s14947_s5 + $0x998] sm:$0xff] }
 0x2ca   : > { %9507 = vmatmul.mubr.msk.f32.gmra.mrb[4].mxu1 %vm1202_vm6, %v11879_v38  ;;  %v9978_v38 = vpack.c.bf16 %v8237_v51, %v8236_v62  ;;  %v6651_v62 = vld [vmem:[%s14947_s5 + $0x9b8] sm:$0xff] }
 0x2cb   : > { %9969 = vmatpush3.bf16.msra.mxu1 %v9966_v1  ;;  %9509 = vmatprep.mubr.msk.f32.mxu1 %vm1202_vm6, %v12096_v8  ;;  %v8238_v8 = vld [vmem:[%s14945_s3 + $0x5e0] sm:$0xff]  ;;  %v6642_v1 = vld [vmem:[%s14947_s5 + $0x970] sm:$0xff] }
 0x2cc   : > { %9971 = vmatprep.subr.bf16.mxu1 %v9970_v20  ;;  %v9982_v45 = vpack.c.bf16 %v8239_v40, %v8238_v8  ;;  %v10308_v32 = vpack.c.bf16 %v6642_v1, %v6640_v37  ;;  %v6650_v8 = vld [vmem:[%s14947_s5 + $0x9b0] sm:$0xff] }
 0x2ce   : > { %9510 = vmatmul.mubr.msk.f32.gmra.mrb[6].mxu1 %vm1202_vm6, %v4464_v53  ;;  %v6649_v53 = vld [vmem:[%s14947_s5 + $0x9a8] sm:$0xff] }
 0x2cf   : > { %9973 = vmatpush3.bf16.msra.mxu1 %v9970_v20  ;;  %9528 = vmatprep.mubr.msk.f32.mxu1 %vm1202_vm6, %v12116_v43  ;;  %v8240_v43 = vld [vmem:[%s14945_s3 + $0x5f0] sm:$0xff]  ;;  %v10310_v20 = vpack.c.bf16 %v6647_v26, %v6645_v30  ;;  %v10314_v51 = vpack.c.bf16 %v6651_v62, %v6649_v53 }
 0x2d0   : > { %9975 = vmatprep.subr.bf16.mxu1 %v9974_v7 }
 0x2d2   : > { %9529 = vmatmul.mubr.msk.f32.vlgmr.msra.gmra.mrb[0].mxu1 %vm1202_vm6, %v12147_v29  ;;  %v9986_v29 = vpack.c.bf16 %v8241_v21, %v8240_v43  ;;  %v5655_v43 = vld [vmem:[%s14947_s5 + $0x118] sm:$0xff] }
 0x2d3   : > { %9977 = vmatpush3.bf16.msra.mxu1 %v9974_v7  ;;  %9531 = vmatprep.mubr.msk.f32.mxu1 %vm1202_vm6, %v12157_v41  ;;  %v8250_v41 = vld [vmem:[%s14945_s3 + $0x600] sm:$0xff]  ;;  %v10312_v7 = vpack.c.bf16 %v6646_v31, %v6644_v22 }
 0x2d4   : > { %9979 = vmatprep.subr.bf16.mxu1 %v9978_v38 }
 0x2d6   : > { %9532 = vmatmul.mubr.msk.f32.gmra.mrb[2].mxu1 %vm1202_vm6, %v12173_v15  ;;  %v9990_v15 = vpack.c.bf16 %v8251_v24, %v8250_v41  ;;  %v14958_v41 = vmov 0.0  }
 0x2d7   : > { %9981 = vmatpush3.bf16.msra.mxu1 %v9978_v38  ;;  %9534 = vmatprep.mubr.msk.f32.mxu1 %vm1202_vm6, %v4615_v39  ;;  %v6648_v38 = vld [vmem:[%s14947_s5 + $0x9a0] sm:$0xff]  ;;  %v6653_v39 = vld [vmem:[%s14947_s5 + $0x9c8] sm:$0xff] }
 0x2d8   : > { %9983 = vmatprep.subr.bf16.mxu1 %v9982_v45  ;;  %v10316_v40 = vpack.c.bf16 %v6650_v8, %v6648_v38  ;;  %5626 = vmatprep.mubr.f32.mxu0 %v14958_v41  ;;  %v12652_v8 = vld [vmem:[%s14947_s5 + $0x100] sm:$0xff] }
 0x2da   : > { %9535 = vmatmul.mubr.msk.f32.gmra.mrb[4].mxu1 %vm1202_vm6, %v11921_v59  ;;  %v9994_v59 = vpack.c.bf16 %v8253_v57, %v8252_v10  ;;  %v6657_v57 = vld [vmem:[%s14947_s5 + $0x9e8] sm:$0xff] }
 0x2db   : > { %9985 = vmatpush3.bf16.msra.mxu1 %v9982_v45  ;;  %9537 = vmatprep.mubr.msk.f32.mxu1 %vm1202_vm6, %v12205_v3  ;;  %v8254_v3 = vld [vmem:[%s14945_s3 + $0x620] sm:$0xff]  ;;  %v5653_v45 = vld [vmem:[%s14947_s5 + $0x108] sm:$0xff] }
 0x2dc   : > { %9987 = vmatprep.subr.bf16.mxu1 %v9986_v29  ;;  %v9998_v42 = vpack.c.bf16 %v8255_v47, %v8254_v3  ;;  %v10038_v21 = vpack.c.bf16 %v5655_v43, %v5653_v45  ;;  %v6656_v47 = vld [vmem:[%s14947_s5 + $0x9e0] sm:$0xff] }
 0x2de   : > { %9538 = vmatmul.mubr.msk.f32.gmra.mrb[6].mxu1 %vm1202_vm6, %v4618_v48  ;;  %10039 = vmatprep.subr.bf16.mxu0 %v10038_v21  ;;  %v6654_v48 = vld [vmem:[%s14947_s5 + $0x9d0] sm:$0xff] }
 0x2df   : > { %9989 = vmatpush3.bf16.msra.mxu1 %v9986_v29  ;;  %9556 = vmatprep.mubr.msk.f32.mxu1 %vm1202_vm6, %v12228_v36  ;;  %v8256_v36 = vld [vmem:[%s14945_s3 + $0x630] sm:$0xff]  ;;  %v6655_v29 = vld [vmem:[%s14947_s5 + $0x9d8] sm:$0xff] }
 0x2e0   : > { %9991 = vmatprep.subr.bf16.mxu1 %v9990_v15  ;;  %v10318_v24 = vpack.c.bf16 %v6655_v29, %v6653_v39  ;;  %v12665_v29 = vld [vmem:[%s14947_s5 + $0x128] sm:$0xff] }
 0x2e2   : > { %9557 = vmatmul.mubr.msk.f32.vlgmr.msra.gmra.mrb[0].mxu1 %vm1202_vm6, %v12244_v63  ;;  %v10002_v63 = vpack.c.bf16 %v8257_v19, %v8256_v36  ;;  %v6873_v19 = vld [vmem:[%s14947_s5 + $0xb08] sm:$0xff] }
 0x2e3   : > { %9993 = vmatpush3.bf16.msra.mxu1 %v9990_v15  ;;  %9559 = vmatprep.mubr.msk.f32.mxu1 %vm1202_vm6, %v12254_v12  ;;  %v4772_v12 = vld [vmem:[#allocation2 + $0xb3] sm:$0xff]  ;;  %v6652_v15 = vld [vmem:[%s14947_s5 + $0x9c0] sm:$0xff] }
 0x2e4   : > { %9995 = vmatprep.subr.bf16.mxu1 %v9994_v59  ;;  %v10320_v10 = vpack.c.bf16 %v6654_v48, %v6652_v15  ;;  %v12675_v15 = vld [vmem:[%s14947_s5 + $0x120] sm:$0xff]  ;;  %v12680_v48 = vld [vmem:[%s14947_s5 + $0x130] sm:$0xff] }
 0x2e6   : > { %9560 = vmatmul.mubr.msk.f32.gmra.mrb[2].mxu1 %vm1202_vm6, %v12264_v34  ;;  %v4926_v34 = vld [vmem:[#allocation2 + $0xb4] sm:$0xff] }
 0x2e7   : > { %9997 = vmatpush3.bf16.msra.mxu1 %v9994_v59  ;;  %9562 = vmatprep.mubr.msk.f32.mxu1 %vm1202_vm6, %v4769_v9  ;;  %v6659_v59 = vld [vmem:[%s14947_s5 + $0x9f8] sm:$0xff] }
 0x2e8   : > { %9999 = vmatprep.subr.bf16.mxu1 %v9998_v42  ;;  %v10322_v3 = vpack.c.bf16 %v6659_v59, %v6657_v57  ;;  %v6875_v9 = vld [vmem:[%s14947_s5 + $0xb18] sm:$0xff] }
 0x2e9   : > { %v12690_v57 = vld [vmem:[%s14947_s5 + $0x158] sm:$0xff] }
 0x2ea   : > { %9563 = vmatmul.mubr.msk.f32.gmra.mrb[4].mxu1 %vm1202_vm6, %v11963_v54  ;;  %v4923_v54 = vld [vmem:[#allocation2 + $0x84] sm:$0xff] }
 0x2eb   : > { %10001 = vmatpush3.bf16.msra.mxu1 %v9998_v42  ;;  %9565 = vmatprep.mubr.msk.f32.mxu1 %vm1202_vm6, %v12278_v2  ;;  %v6629_v2 = vld [vmem:[%s14947_s5 + $0x908] sm:$0xff]  ;;  %v6658_v42 = vld [vmem:[%s14947_s5 + $0x9f0] sm:$0xff] }
 0x2ec   : > { %10003 = vmatprep.subr.bf16.mxu1 %v10002_v63  ;;  %v10324_v36 = vpack.c.bf16 %v6658_v42, %v6656_v47 }
 0x2ee   : > { %9566 = vmatmul.mubr.msk.f32.gmra.mrb[6].mxu1 %vm1202_vm6, %v4772_v12  ;;  %v10829_v12 = vmov 1983009808  }
 0x2ef   : > { %10005 = vmatpush3.bf16.msra.mxu1 %v10002_v63  ;;  %9584 = vmatprep.mubr.msk.f32.mxu1 %vm1202_vm6, %v12289_v49  ;;  %v6631_v49 = vld [vmem:[%s14947_s5 + $0x918] sm:$0xff]  ;;  %v10358_v63 = vpack.c.bf16 %v6875_v9, %v6873_v19  ;;  %v12706_v19 = vld [vmem:[%s14947_s5 + $0x150] sm:$0xff]  ;;  %v12711_v9 = vld [vmem:[%s14947_s5 + $0xb00] sm:$0xff] }
 0x2f0   : > { %15040 = vst [vmem:[#allocation4_spill] sm:$0xff] %v12706_v19  ;;  %v12921_v19 = vld [vmem:[%s14947_s5 + $0xb80] sm:$0xff] }
 0x2f1   : > { %15067 = vst [vmem:[#allocation32_spill] sm:$0xff] %v12921_v19 }
 0x2f2   : > { %9585 = vmatmul.mubr.msk.f32.vlgmr.msra.gmra.mrb[0].mxu1 %vm1202_vm6, %v12299_v6  ;;  %v10294_v6 = vpack.c.bf16 %v6631_v49, %v6629_v2 }
 0x2f3   : > { %9587 = vmatprep.mubr.msk.f32.mxu1 %vm1202_vm6, %v12303_v56  ;;  %v6628_v56 = vld [vmem:[%s14947_s5 + $0x900] sm:$0xff] }
 0x2f4   : > { %10295 = vmatprep.subr.bf16.mxu1 %v10294_v6 }
 0x2f6   : > { %9588 = vmatmul.mubr.msk.f32.gmra.mrb[2].mxu1 %vm1202_vm6, %v12313_v5 }
 0x2f7   : > { %9590 = vmatprep.mubr.msk.f32.mxu1 %vm1202_vm6, %v4923_v54  ;;  %v5083_v54 = vunpack.c.l.s4 %v10829_v12  ;;  %v12721_v12 = vld [vmem:[%s14947_s5 + $0x168] sm:$0xff] }
 0x2f8   : > { %15041 = vst [vmem:[#allocation6_spill] sm:$0xff] %v12721_v12 }
 0x2f9   : > { %v5084_v2 = vunpack.c.0.s8 %v5083_v54  ;;  %v12726_v54 = vld [vmem:[%s14947_s5 + $0x178] sm:$0xff] }
 0x2fa   : > { %9591 = vmatmul.mubr.msk.f32.gmra.mrb[4].mxu1 %vm1202_vm6, %v12005_v25  ;;  %v6630_v25 = vld [vmem:[%s14947_s5 + $0x910] sm:$0xff]  ;;  %15042 = vst [vmem:[#allocation7_spill] sm:$0xff] %v12726_v54  ;;  %v12894_v54 = vld [vmem:[%s14947_s5 + $0x1c0] sm:$0xff] }
 0x2fb   : > { %9593 = vmatprep.mubr.msk.f32.mxu1 %vm1202_vm6, %v12327_v18  ;;  %v10296_v5 = vpack.c.bf16 %v6630_v25, %v6628_v56  ;;  %v6633_v18 = vld [vmem:[%s14947_s5 + $0x928] sm:$0xff]  ;;  %15063 = vst [vmem:[#allocation28_spill] sm:$0xff] %v12894_v54 }
 0x2fc   : > { %v10298_v14 = vpack.c.bf16 %v6635_v23, %v6633_v18 }
 0x2fd   : > { %10297 = vmatpush1.bf16.msra.mxu1 %v10296_v5 }
 0x2fe   : > { %9594 = vmatmul.mubr.msk.f32.gmra.mrb[6].mxu1 %vm1202_vm6, %v4926_v34  ;;  %10299 = vmatprep.subr.bf16.mxu1 %v10298_v14  ;;  %v5085_v34 = vlaneseq }
 0x2ff   : > { %6724 = vmatprep.mubr.f32.mxu1 %v14958_v41 }
 0x300   : > { %v12609_v49 = vshrl.u32 %v5085_v34, 7 }
 0x301   : > { %10301 = vmatpush1.bf16.msra.mxu1 %v10300_v55 }
 0x302   : > { %10303 = vmatprep.subr.bf16.mxu1 %v10302_v44  ;;  %15038 = vst [vmem:[#allocation3_spill] sm:$0xff] %v12609_v49  ;;  %v12612_v6 = vsub.s32 %v5084_v2, %v12609_v49  ;;  %v12996_v49 = vld [vmem:[%s14947_s5 + $0x208] sm:$0xff] }
 0x303   : > { %15077 = vst [vmem:[#allocation42_spill] sm:$0xff] %v12996_v49  ;;  %v13067_v49 = vld [vmem:[%s14947_s5 + $0x228] sm:$0xff] }
 0x304   : > { %15085 = vst [vmem:[#allocation50_spill] sm:$0xff] %v13067_v49 }
 0x305   : > { %10305 = vmatpush1.bf16.msra.mxu1 %v10304_v17 }
 0x306   : > { %10307 = vmatprep.subr.bf16.mxu1 %v10306_v33 }
 0x309   : > { %10309 = vmatpush1.bf16.msra.mxu1 %v10308_v32 }
 0x30a   : > { %10311 = vmatprep.subr.bf16.mxu1 %v10310_v20 }
 0x30d   : > { %10313 = vmatpush1.bf16.msra.mxu1 %v10312_v7 }
 0x30e   : > { %10315 = vmatprep.subr.bf16.mxu1 %v10314_v51 }
 0x311   : > { %10317 = vmatpush1.bf16.msra.mxu1 %v10316_v40  ;;  %v12657_v40 = vld [vmem:[%s14947_s5 + $0x110] sm:$0xff] }
 0x312   : > { %10319 = vmatprep.subr.bf16.mxu1 %v10318_v24  ;;  %v12670_v24 = vld [vmem:[%s14947_s5 + $0x138] sm:$0xff] }
 0x315   : > { %10321 = vmatpush1.bf16.msra.mxu1 %v10320_v10  ;;  %v12685_v10 = vld [vmem:[%s14947_s5 + $0x148] sm:$0xff] }
 0x316   : > { %10323 = vmatprep.subr.bf16.mxu1 %v10322_v3 }
 0x319   : > { %10325 = vmatpush1.bf16.msra.mxu1 %v10324_v36  ;;  %v12701_v36 = vld [vmem:[%s14947_s5 + $0x140] sm:$0xff] }
 0x31a   : > { %10359 = vmatprep.subr.bf16.mxu1 %v10358_v63  ;;  %15039 = vst [vmem:[#allocation5_spill] sm:$0xff] %v12701_v36  ;;  %v12716_v63 = vld [vmem:[%s14947_s5 + $0xb10] sm:$0xff] }
 0x31b   : > { %v12899_v36 = vld [vmem:[%s14947_s5 + $0x1d0] sm:$0xff] }
 0x31c   : > { %15064 = vst [vmem:[#allocation29_spill] sm:$0xff] %v12899_v36  ;;  %v13031_v36 = vld [vmem:[%s14947_s5 + $0xbd8] sm:$0xff] }
 0x31d   : > { %15082 = vst [vmem:[#allocation47_spill] sm:$0xff] %v13031_v36 }
 0x3c5   : > { %v9586_v56 = vpop.f32.mrb[0].mxu1 }
 0x3c6   : > { %v5098_v25 = vcombine.high %v9586_v56, %v9586_v56  ;;  %v5105_v5 = vrot.slane %v9586_v56, %v12612_v6  ;;  %v5026_v18 = vpop.f32.mrb[1].mxu1 }
 0x3c7   : > { %v5081_v23 = vcombine.high %v5026_v18, %v5026_v18  ;;  %v12616_v14 = vrot.slane %v5026_v18, %v12612_v6  ;;  %v12743_v18 = vld [vmem:[%s14947_s5 + $0xb28] sm:$0xff] }
 0x3c8   : > { %v5112_v35 = vrot.slane %v5098_v25, %v12612_v6  ;;  %v5278_v27 = vsel %vm5249_vm7, %v5105_v5, -inf  ;;  %v5113_v51 = vcombine.high %v5105_v5, %v5105_v5  ;;  %v12733_v25 = vld [vmem:[%s14947_s5 + $0x160] sm:$0xff]  ;;  %v12738_v5 = vld [vmem:[%s14947_s5 + $0x170] sm:$0xff] }
 0x3c9   : > { %v5279_v55 = vrot.slane %v5278_v27, 4  ;;  %v5095_v61 = vrot.slane %v5081_v23, %v12612_v6  ;;  %v5250_v60 = vsel %vm5249_vm7, %v12616_v14, -inf  ;;  %v9589_v44 = vpop.f32.mrb[2].mxu1  ;;  %15043 = vst [vmem:[#allocation8_spill] sm:$0xff] %v12733_v25  ;;  %15044 = vst [vmem:[#allocation9_spill] sm:$0xff] %v12738_v5  ;;  %v12748_v23 = vld [vmem:[%s14947_s5 + $0xb38] sm:$0xff] }
 0x3ca   : > { %v5114_v52 = vcombine.high %v5112_v35, %v5112_v35  ;;  %v12624_v28 = vsel %vm5249_vm7, %v5112_v35, -inf  ;;  %v5251_v11 = vrot.slane %v5250_v60, 4  ;;  %v5036_v13 = vpop.f32.mrb[3].mxu1  ;;  %v5132_v62 = vcombine.high %v9589_v44, %v9589_v44  ;;  %v12753_v35 = vld [vmem:[%s14947_s5 + $0xb20] sm:$0xff]  ;;  %v12916_v5 = vld [vmem:[%s14947_s5 + $0xb98] sm:$0xff] }
 0x3cb   : > { %v5280_v4 = vmax.f32 %v5278_v27, %v5279_v55  ;;  %v5097_v46 = vcombine.high %v5095_v61, %v5095_v61  ;;  %v12630_v17 = vsel %vm5249_vm7, %v5095_v61, -inf  ;;  %v5139_v45 = vrot.slane %v9589_v44, %v12612_v6  ;;  %v12758_v27 = vld [vmem:[%s14947_s5 + $0xb30] sm:$0xff]  ;;  %15066 = vst [vmem:[#allocation31_spill] sm:$0xff] %v12916_v5 }
 0x3cc   : > { %v12627_v0 = vsel %vm5249_vm7, %v5114_v52, -inf  ;;  %v5252_v58 = vmax.f32 %v5250_v60, %v5251_v11  ;;  %v5146_v43 = vrot.slane %v5132_v62, %v12612_v6  ;;  %v5115_v21 = vcombine.high %v5036_v13, %v5036_v13  ;;  %v12774_v52 = vld [vmem:[%s14947_s5 + $0x188] sm:$0xff]  ;;  %v12779_v11 = vld [vmem:[%s14947_s5 + $0x198] sm:$0xff]  ;;  %v12870_v44 = vld [vmem:[%s14947_s5 + $0xb70] sm:$0xff] }
 0x3cd   : > { %v5281_v16 = vrot.slane %v5280_v4, 2  ;;  %v12632_v50 = vpop.f32.mrb[4].mxu1  ;;  %v12635_v37 = vsel %vm5249_vm7, %v5097_v46, -inf  ;;  %v5122_v39 = vrot.slane %v5036_v13, %v12612_v6  ;;  %v5147_v59 = vcombine.high %v5139_v45, %v5139_v45  ;;  %15045 = vst [vmem:[#allocation10_spill] sm:$0xff] %v12774_v52  ;;  %15046 = vst [vmem:[#allocation11_spill] sm:$0xff] %v12779_v11  ;;  %v12784_v13 = vld [vmem:[%s14947_s5 + $0x180] sm:$0xff] }
 0x3ce   : > { %v5253_v33 = vrot.slane %v5252_v58, 2  ;;  %v12637_v1 = vpop.f32.mrb[5].mxu1  ;;  %v5148_v3 = vcombine.high %v5146_v43, %v5146_v43  ;;  %v12693_v47 = vsel %vm5249_vm7, %v5139_v45, -inf  ;;  %v12696_v42 = vsel %vm5249_vm7, %v5146_v43, -inf  ;;  %15047 = vst [vmem:[#allocation12_spill] sm:$0xff] %v12784_v13  ;;  %v12794_v46 = vld [vmem:[%s14947_s5 + $0xb48] sm:$0xff] }
 0x3cf   : > { %v5282_v32 = vmax.f32 %v5280_v4, %v5281_v16  ;;  %v5285_v34 = vsel %vm5249_vm7, %v5113_v51, -inf  ;;  %v5129_v2 = vrot.slane %v5115_v21, %v12612_v6  ;;  %v5130_v56 = vcombine.high %v5122_v39, %v5122_v39  ;;  %v12789_v4 = vld [vmem:[%s14947_s5 + $0x190] sm:$0xff]  ;;  %15049 = vst [vmem:[#allocation14_spill] sm:$0xff] %v12794_v46  ;;  %v12827_v62 = vld [vmem:[%s14947_s5 + $0x1b8] sm:$0xff]  ;;  %v12832_v51 = vld [vmem:[%s14947_s5 + $0x1a0] sm:$0xff] }
 0x3d0   : > { %v5254_v30 = vmax.f32 %v5252_v58, %v5253_v33  ;;  %v12761_v55 = vsel %vm5249_vm7, %v5147_v59, -inf  ;;  %v12764_v61 = vsel %vm5249_vm7, %v5148_v3, -inf  ;;  %v12767_v60 = vsel %vm5249_vm7, %v5122_v39, -inf  ;;  %15048 = vst [vmem:[#allocation13_spill] sm:$0xff] %v12789_v4  ;;  %v12799_v58 = vld [vmem:[%s14947_s5 + $0xb58] sm:$0xff]  ;;  %15054 = vst [vmem:[#allocation19_spill] sm:$0xff] %v12827_v62 }
 0x3d1   : > { %v5283_v26 = vrot.slane %v5282_v32, 1  ;;  %v12639_v20 = vpop.f32.mrb[6].mxu1  ;;  %15050 = vst [vmem:[#allocation15_spill] sm:$0xff] %v12799_v58  ;;  %v5096_v16 = vcombine.high %v12616_v14, %v12616_v14  ;;  %v12822_v14 = vld [vmem:[%s14947_s5 + $0x1a8] sm:$0xff]  ;;  %15055 = vst [vmem:[#allocation20_spill] sm:$0xff] %v12832_v51  ;;  %v5286_v45 = vrot.slane %v5285_v34, 4  ;;  %v5131_v43 = vcombine.high %v5129_v2, %v5129_v2 }
 0x3d2   : > { %v5255_v22 = vrot.slane %v5254_v30, 1  ;;  %v12641_v31 = vpop.f32.mrb[7].mxu1  ;;  %15053 = vst [vmem:[#allocation18_spill] sm:$0xff] %v12822_v14  ;;  %v12835_v21 = vsel %vm5249_vm7, %v5130_v56, -inf  ;;  %v12838_v39 = vsel %vm5249_vm7, %v5129_v2, -inf  ;;  %v12843_v59 = vld [vmem:[%s14947_s5 + $0x1b0] sm:$0xff]  ;;  %v5166_v13 = vcombine.high %v12632_v50, %v12632_v50 }
 0x3d3   : > { %v12643_v7 = vmax.f32 %v5282_v32, %v5283_v26  ;;  %v12812_v26 = vld [vmem:[%s14947_s5 + $0xb40] sm:$0xff]  ;;  %15056 = vst [vmem:[#allocation21_spill] sm:$0xff] %v12843_v59  ;;  %v12848_v3 = vld [vmem:[%s14947_s5 + $0xb68] sm:$0xff]  ;;  %v5293_v56 = vrot.slane %v12624_v28, 4  ;;  %15060 = vst [vmem:[#allocation25_spill] sm:$0xff] %v12870_v44  ;;  %v12883_v41 = vsel %vm5249_vm7, %v5131_v43, -inf  ;;  %v5287_v12 = vmax.f32 %v5285_v34, %v5286_v45 }
 0x3d4   : > { %v12645_v53 = vmax.f32 %v5254_v30, %v5255_v22  ;;  %15051 = vst [vmem:[#allocation16_spill] sm:$0xff] %v12812_v26  ;;  %v12817_v22 = vld [vmem:[%s14947_s5 + $0xb50] sm:$0xff]  ;;  %15057 = vst [vmem:[#allocation22_spill] sm:$0xff] %v12848_v3  ;;  %v12853_v30 = vld [vmem:[%s14947_s5 + $0xb78] sm:$0xff]  ;;  %v5257_v38 = vsel %vm5249_vm7, %v5096_v16, -inf  ;;  %v5173_v25 = vrot.slane %v12632_v50, %v12612_v6  ;;  %v5265_v50 = vrot.slane %v12630_v17, 4 }
 0x3d5   : > { %15052 = vst [vmem:[#allocation17_spill] sm:$0xff] %v12817_v22  ;;  %15058 = vst [vmem:[#allocation23_spill] sm:$0xff] %v12853_v30  ;;  %v12865_v33 = vld [vmem:[%s14947_s5 + $0xb60] sm:$0xff]  ;;  %v12875_v2 = vld [vmem:[%s14947_s5 + $0x1c8] sm:$0xff]  ;;  %v5294_v45 = vmax.f32 %v12624_v28, %v5293_v56  ;;  %v5258_v56 = vrot.slane %v5257_v38, 4  ;;  %v5300_v11 = vrot.slane %v12627_v0, 4  ;;  %v5180_v19 = vrot.slane %v5166_v13, %v12612_v6 }
 0x3d6   : > { %15059 = vst [vmem:[#allocation24_spill] sm:$0xff] %v12865_v33  ;;  %15061 = vst [vmem:[#allocation26_spill] sm:$0xff] %v12875_v2  ;;  %v12880_v32 = vld [vmem:[%s14947_s5 + $0x1d8] sm:$0xff]  ;;  %v12904_v43 = vld [vmem:[%s14947_s5 + $0xb88] sm:$0xff]  ;;  %v5288_v54 = vrot.slane %v5287_v12, 2  ;;  %v5200_v49 = vcombine.high %v12639_v20, %v12639_v20 }
 0x3d7   : > { %15062 = vst [vmem:[#allocation27_spill] sm:$0xff] %v12880_v32  ;;  %15065 = vst [vmem:[#allocation30_spill] sm:$0xff] %v12904_v43  ;;  %v12926_v16 = vld [vmem:[%s14947_s5 + $0xb90] sm:$0xff]  ;;  %v12937_v4 = vld [vmem:[%s14947_s5 + $0x1e8] sm:$0xff]  ;;  %v5295_v32 = vrot.slane %v5294_v45, 2  ;;  %v13016_v43 = vsel %vm5249_vm7, %v5173_v25, -inf  ;;  %v5259_v13 = vmax.f32 %v5257_v38, %v5258_v56  ;;  %v5301_v38 = vmax.f32 %v12627_v0, %v5300_v11 }
 0x3d8   : > { %15068 = vst [vmem:[#allocation33_spill] sm:$0xff] %v12926_v16  ;;  %15069 = vst [vmem:[#allocation34_spill] sm:$0xff] %v12937_v4  ;;  %v12942_v52 = vld [vmem:[%s14947_s5 + $0x1f8] sm:$0xff]  ;;  %v12947_v34 = vld [vmem:[%s14947_s5 + $0x1e0] sm:$0xff]  ;;  %v5181_v16 = vcombine.high %v5173_v25, %v5173_v25  ;;  %v5149_v0 = vcombine.high %v12637_v1, %v12637_v1 }
 0x3d9   : > { %15070 = vst [vmem:[#allocation35_spill] sm:$0xff] %v12942_v52  ;;  %15071 = vst [vmem:[#allocation36_spill] sm:$0xff] %v12947_v34  ;;  %v12959_v51 = vld [vmem:[%s14947_s5 + $0x1f0] sm:$0xff]  ;;  %v12964_v59 = vld [vmem:[%s14947_s5 + $0xba8] sm:$0xff]  ;;  %v5266_v34 = vmax.f32 %v12630_v17, %v5265_v50  ;;  %v5272_v17 = vrot.slane %v12635_v37, 4  ;;  %v13052_v50 = vsel %vm5249_vm7, %v5180_v19, -inf }
 0x3da   : > { %15072 = vst [vmem:[#allocation37_spill] sm:$0xff] %v12959_v51  ;;  %15073 = vst [vmem:[#allocation38_spill] sm:$0xff] %v12964_v59  ;;  %v12969_v28 = vld [vmem:[%s14947_s5 + $0xbb8] sm:$0xff]  ;;  %v12979_v62 = vld [vmem:[%s14947_s5 + $0xba0] sm:$0xff]  ;;  %v5397_v56 = vsel %vm5249_vm7, %v5181_v16, -inf  ;;  %v5182_v51 = vcombine.high %v5180_v19, %v5180_v19  ;;  %v5260_v16 = vrot.slane %v5259_v13, 2  ;;  %v5156_v19 = vrot.slane %v12637_v1, %v12612_v6 }
 0x3db   : > { %15074 = vst [vmem:[#allocation39_spill] sm:$0xff] %v12969_v28  ;;  %15075 = vst [vmem:[#allocation40_spill] sm:$0xff] %v12979_v62  ;;  %v12991_v14 = vld [vmem:[%s14947_s5 + $0xbb0] sm:$0xff]  ;;  %v13001_v3 = vld [vmem:[%s14947_s5 + $0x218] sm:$0xff]  ;;  %v5398_v25 = vrot.slane %v5397_v56, 4  ;;  %v5289_v62 = vmax.f32 %v5287_v12, %v5288_v54  ;;  %v5267_v59 = vrot.slane %v5266_v34, 2 }
 0x3dc   : > { %15076 = vst [vmem:[#allocation41_spill] sm:$0xff] %v12991_v14  ;;  %15078 = vst [vmem:[#allocation43_spill] sm:$0xff] %v13001_v3  ;;  %v13012_v2 = vld [vmem:[%s14947_s5 + $0x200] sm:$0xff]  ;;  %v13021_v30 = vld [vmem:[%s14947_s5 + $0x210] sm:$0xff]  ;;  %v5296_v14 = vmax.f32 %v5294_v45, %v5295_v32  ;;  %v5302_v54 = vrot.slane %v5301_v38, 2  ;;  %v5273_v32 = vmax.f32 %v12635_v37, %v5272_v17  ;;  %v5163_v45 = vrot.slane %v5149_v0, %v12612_v6 }
 0x3dd   : > { %15079 = vst [vmem:[#allocation44_spill] sm:$0xff] %v13012_v2  ;;  %15080 = vst [vmem:[#allocation45_spill] sm:$0xff] %v13021_v30  ;;  %v13026_v26 = vld [vmem:[%s14947_s5 + $0xbc8] sm:$0xff]  ;;  %v13041_v4 = vld [vmem:[%s14947_s5 + $0xbc0] sm:$0xff]  ;;  %v5399_v28 = vmax.f32 %v5397_v56, %v5398_v25  ;;  %v5207_v25 = vrot.slane %v12639_v20, %v12612_v6  ;;  %v5411_v1 = vsel %vm5249_vm7, %v5182_v51, -inf  ;;  %v5164_v11 = vcombine.high %v5156_v19, %v5156_v19 }
 0x3de   : > { %15081 = vst [vmem:[#allocation46_spill] sm:$0xff] %v13026_v26  ;;  %15083 = vst [vmem:[#allocation48_spill] sm:$0xff] %v13041_v4  ;;  %v13046_v52 = vld [vmem:[%s14947_s5 + $0xbd0] sm:$0xff]  ;;  %v13072_v12 = vld [vmem:[%s14947_s5 + $0x238] sm:$0xff]  ;;  %v13080_v3 = vsel %vm5249_vm7, %v5156_v19, -inf  ;;  %v5290_v2 = vrot.slane %v5289_v62, 1  ;;  %v5165_v4 = vcombine.high %v5163_v45, %v5163_v45  ;;  %v5261_v51 = vmax.f32 %v5259_v13, %v5260_v16 }
 0x3df   : > { %15084 = vst [vmem:[#allocation49_spill] sm:$0xff] %v13046_v52  ;;  %15086 = vst [vmem:[#allocation51_spill] sm:$0xff] %v13072_v12  ;;  %v5400_v56 = vrot.slane %v5399_v28, 2  ;;  %v5297_v30 = vrot.slane %v5296_v14, 1  ;;  %v13087_v37 = vld [vmem:[%s14947_s5 + $0xbe8] sm:$0xff]  ;;  %v13092_v17 = vld [vmem:[%s14947_s5 + $0xbf8] sm:$0xff]  ;;  %v5268_v0 = vmax.f32 %v5266_v34, %v5267_v59  ;;  %v13100_v12 = vmax.f32 %v5301_v38, %v5302_v54 }
 0x3e0   : > { %15087 = vst [vmem:[#allocation52_spill] sm:$0xff] %v13087_v37  ;;  %15088 = vst [vmem:[#allocation53_spill] sm:$0xff] %v13092_v17  ;;  %v5369_v19 = vsel %vm5249_vm7, %v5164_v11, -inf  ;;  %v13096_v26 = vsel %vm5249_vm7, %v5163_v45, -inf  ;;  %v5412_v5 = vrot.slane %v5411_v1, 4  ;;  %v5274_v33 = vrot.slane %v5273_v32, 2 }
 0x3e1   : > { %v5401_v36 = vmax.f32 %v5399_v28, %v5400_v56  ;;  %v5370_v52 = vrot.slane %v5369_v19, 4  ;;  %15089 = vst [vmem:[#allocation54_spill] sm:$0xff] %v13100_v12  ;;  %v5383_v44 = vsel %vm5249_vm7, %v5165_v4, -inf  ;;  %v13105_v59 = vmax.f32 %v5289_v62, %v5290_v2 }
 0x3e2   : > { %v13107_v34 = vmax.f32 %v5296_v14, %v5297_v30  ;;  %v5335_v11 = vrot.slane %v12693_v47, 4  ;;  %v5262_v16 = vrot.slane %v5261_v51, 1  ;;  %v5269_v45 = vrot.slane %v5268_v0, 1 }
 0x3e3   : > { %v5371_v28 = vmax.f32 %v5369_v19, %v5370_v52  ;;  %v5349_v56 = vrot.slane %v12696_v42, 4  ;;  %v5384_v20 = vrot.slane %v5383_v44, 4  ;;  %v5402_v38 = vrot.slane %v5401_v36, 1 }
 0x3e4   : > { %v5413_v54 = vmax.f32 %v5411_v1, %v5412_v5  ;;  %v5214_v4 = vrot.slane %v5200_v49, %v12612_v6  ;;  %v13112_v46 = vmax.f32 %v5273_v32, %v5274_v33  ;;  %v5215_v62 = vcombine.high %v5207_v25, %v5207_v25 }
 0x3e5   : > { %v5372_v22 = vrot.slane %v5371_v28, 2  ;;  %v5385_v13 = vmax.f32 %v5383_v44, %v5384_v20  ;;  %v13115_v30 = vsel %vm5249_vm7, %v5207_v25, -inf  ;;  %v5336_v14 = vmax.f32 %v12693_v47, %v5335_v11 }
 0x3e6   : > { %v5342_v52 = vrot.slane %v12761_v55, 4  ;;  %v5216_v19 = vcombine.high %v5214_v4, %v5214_v4  ;;  %v5350_v37 = vmax.f32 %v12696_v42, %v5349_v56  ;;  %v5356_v5 = vrot.slane %v12764_v61, 4 }
 0x3e7   : > { %v5373_v2 = vmax.f32 %v5371_v28, %v5372_v22  ;;  %v5453_v1 = vsel %vm5249_vm7, %v5215_v62, -inf  ;;  %v13123_v49 = vsel %vm5249_vm7, %v5214_v4, -inf  ;;  %v5403_v44 = vmax.f32 %v5401_v36, %v5402_v38 }
 0x3e8   : > { %v5414_v33 = vrot.slane %v5413_v54, 2  ;;  %v5454_v25 = vrot.slane %v5453_v1, 4  ;;  %v5307_v47 = vrot.slane %v12767_v60, 4  ;;  %v5386_v11 = vrot.slane %v5385_v13, 2 }
 0x3e9   : > { %v5374_v32 = vrot.slane %v5373_v2, 1  ;;  %v5467_v22 = vsel %vm5249_vm7, %v5216_v19, -inf  ;;  %v13128_v28 = vmax.f32 %v5261_v51, %v5262_v16  ;;  %v5337_v42 = vrot.slane %v5336_v14, 2  ;;  %v13142_v51 = vld [vmem:[%s14946_s4] ss:$0 sm:$0xff] }
 0x3ea   : > { %v5455_v17 = vmax.f32 %v5453_v1, %v5454_v25  ;;  %v13130_v62 = vmax.f32 %v5268_v0, %v5269_v45  ;;  %v5343_v36 = vmax.f32 %v12761_v55, %v5342_v52  ;;  %v5183_v38 = vcombine.high %v12641_v31, %v12641_v31 }
 0x3eb   : > { %v5375_v56 = vmax.f32 %v5373_v2, %v5374_v32  ;;  %v5351_v20 = vrot.slane %v5350_v37, 2  ;;  %v13137_v12 = vmax.f32 %v12764_v61, %v5356_v5  ;;  %v5415_v58 = vmax.f32 %v5413_v54, %v5414_v33 }
 0x3ec   : > { %v13145_v0 = vmax.f32 %v12767_v60, %v5307_v47  ;;  %v5387_v16 = vmax.f32 %v5385_v13, %v5386_v11  ;;  %v5190_v55 = vrot.slane %v12641_v31, %v12612_v6  ;;  %v5197_v45 = vrot.slane %v5183_v38, %v12612_v6 }
 0x3ed   : > { %v5483_v19 = vmax.f32 %v5375_v56, %v5403_v44  ;;  %v13150_v52 = vmax.f32 %v5336_v14, %v5337_v42  ;;  %v5314_v61 = vrot.slane %v12835_v21, 4  ;;  %v5321_v54 = vrot.slane %v12838_v39, 4 }
 0x3ee   : > { %v5456_v2 = vrot.slane %v5455_v17, 2  ;;  %v5198_v5 = vcombine.high %v5190_v55, %v5190_v55  ;;  %v5199_v1 = vcombine.high %v5197_v45, %v5197_v45  ;;  %v13155_v44 = vsel %vm5249_vm7, %v5190_v55, -inf }
 0x3ef   : > { %v15090_v60 = vmax.f32 %v12645_v53, %v12643_v7  ;;  %v5344_v31 = vrot.slane %v5343_v36, 2  ;;  %v13161_v33 = vmax.f32 %v5350_v37, %v5351_v20  ;;  %v5416_v6 = vrot.slane %v5415_v58, 1 }
 0x3f0   : > { %v5506_v14 = vadd.f32 %v13142_v51, %v5483_v19  ;;  %v5388_v32 = vrot.slane %v5387_v16, 1  ;;  %v5425_v25 = vsel %vm5249_vm7, %v5198_v5, -inf  ;;  %v13166_v47 = vsel %vm5249_vm7, %v5197_v45, -inf }
 0x3f1   : > { %v5497_v13 = vadd.f32 %v13142_v51, %v15090_v60  ;;  %v5439_v11 = vsel %vm5249_vm7, %v5199_v1, -inf  ;;  %v5358_v42 = vrot.slane %v13137_v12, 2  ;;  %v5309_v7 = vrot.slane %v13145_v0, 2 }
 0x3f2   : > { %v5457_v53 = vmax.f32 %v5455_v17, %v5456_v2  ;;  %v5426_v56 = vrot.slane %v5425_v25, 4  ;;  %v13172_v37 = vmax.f32 %v12835_v21, %v5314_v61  ;;  %v5468_v20 = vrot.slane %v5467_v22, 4 }
 0x3f3   : > { %v5440_v38 = vrot.slane %v5439_v11, 4  ;;  %v5513_v19 = vmax.f32 %v5497_v13, 0.0  ;;  %v13175_v55 = vmax.f32 %v12838_v39, %v5321_v54  ;;  %v5522_v45 = vmax.f32 %v5506_v14, 0.0 }
 0x3f4   : > { %v5427_v5 = vmax.f32 %v5425_v25, %v5426_v56  ;;  %v5475_v1 = vmax.f32 %v13128_v28, %v13105_v59  ;;  %v5339_v60 = vrot.slane %v13150_v52, 1  ;;  %v5328_v4 = vrot.slane %v12883_v41, 4  ;;  %v7121_v28 = vld [vmem:[%s14947_s5 + $0xd28] sm:$0xff] }
 0x3f5   : > { %5627 = vmatmul.mubr.f32.vlgmr.msra.gmra.mrb[72].mxu0 %v5513_v19  ;;  %v13181_v17 = vmax.f32 %v5387_v16, %v5388_v32  ;;  %v13183_v21 = vmax.f32 %v5415_v58, %v5416_v6  ;;  %v13185_v61 = vmax.f32 %v5343_v36, %v5344_v31  ;;  %v5458_v2 = vrot.slane %v5457_v53, 1  ;;  %6725 = vmatmul.mubr.f32.vlgmr.msra.gmra.mrb[8].mxu1 %v5522_v45 }
 0x3f6   : > { %v5428_v13 = vrot.slane %v5427_v5, 2  ;;  %v15091_v39 = vpack.c.bf16 %v12657_v40, %v12652_v8  ;;  %v5476_v54 = vmax.f32 %v13130_v62, %v13107_v34  ;;  %v5353_v14 = vrot.slane %v13161_v33, 1 }
 0x3f7   : > { %v5469_v25 = vmax.f32 %v5467_v22, %v5468_v20  ;;  %v5441_v56 = vmax.f32 %v5439_v11, %v5440_v38  ;;  %v15092_v58 = vpack.c.bf16 %v12670_v24, %v12665_v29  ;;  %v15093_v36 = vpack.c.bf16 %v12716_v63, %v12711_v9 }
 0x3f8   : > { %10041 = vmatpush1.bf16.msra.mxu0 %v15091_v39  ;;  %v5485_v8 = vmax.f32 %v13181_v17, %v13183_v21  ;;  %v5391_v40 = vrot.slane %v13016_v43, 4  ;;  %v5405_v16 = vrot.slane %v13052_v50, 4  ;;  %v5429_v34 = vmax.f32 %v5427_v5, %v5428_v13  ;;  %v15100_v13 = vld [vmem:[#allocation14_spill] sm:$0xff]  ;;  %v15165_v17 = vld [vmem:[#allocation37_spill] sm:$0xff]  ;;  %v15166_v21 = vld [vmem:[#allocation36_spill] sm:$0xff] }
 0x3f9   : > { %10043 = vmatprep.subr.bf16.mxu0 %v15092_v58  ;;  %10361 = vmatpush1.bf16.msra.mxu1 %v15093_v36  ;;  %v15094_v22 = vpack.c.bf16 %v12748_v23, %v12743_v18  ;;  %v15095_v62 = vmov 0.0   ;;  %v13208_v29 = vadd.f32 %v13142_v51, %v5476_v54  ;;  %v5363_v24 = vrot.slane %v13080_v3, 4 }
 0x3fa   : > { %5748 = vmatprep.mubr.f32.mxu0 %v15095_v62  ;;  %v5377_v9 = vrot.slane %v13096_v26, 4  ;;  %v5447_v63 = vrot.slane %v13115_v30, 4  ;;  %v5461_v31 = vrot.slane %v13123_v49, 4  ;;  %6968 = vmatprep.mubr.f32.mxu1 %v15095_v62  ;;  %v5459_v6 = vmax.f32 %v5457_v53, %v5458_v2 }
 0x3fb   : > { %10363 = vmatprep.subr.bf16.mxu1 %v15094_v22  ;;  %v5419_v32 = vrot.slane %v13155_v44, 4  ;;  %v5430_v18 = vrot.slane %v5429_v34, 1  ;;  %v5433_v23 = vrot.slane %v13166_v47, 4  ;;  %v15096_v11 = vpack.c.bf16 %v12680_v48, %v12675_v15 }
 0x3fc   : > { %v13221_v20 = vmax.f32 %v13137_v12, %v5358_v42  ;;  %v5310_v38 = vmax.f32 %v13145_v0, %v5309_v7  ;;  %v5470_v19 = vrot.slane %v5469_v25, 2  ;;  %v5442_v5 = vrot.slane %v5441_v56, 2  ;;  %v15099_v42 = vld [vmem:[#allocation15_spill] sm:$0xff] }
 0x3fd   : > { %10045 = vmatpush1.bf16.msra.mxu0 %v15096_v11  ;;  %v15097_v45 = vpack.c.bf16 %v12690_v57, %v12685_v10  ;;  %v15098_v53 = vpack.c.bf16 %v12758_v27, %v12753_v35  ;;  %v5316_v2 = vrot.slane %v13172_v37, 2  ;;  %v5329_v15 = vmax.f32 %v12883_v41, %v5328_v4  ;;  %v15103_v4 = vld [vmem:[#allocation5_spill] sm:$0xff] }
 0x3fe   : > { %v5392_v48 = vmax.f32 %v13016_v43, %v5391_v40  ;;  %v5431_v12 = vmax.f32 %v5429_v34, %v5430_v18  ;;  %v15101_v0 = vpack.c.bf16 %v15099_v42, %v15100_v13  ;;  %v5406_v7 = vmax.f32 %v13052_v50, %v5405_v16  ;;  %v15102_v43 = vld [vmem:[#allocation4_spill] sm:$0xff]  ;;  %v15105_v40 = vld [vmem:[#allocation7_spill] sm:$0xff]  ;;  %v15118_v42 = vld [vmem:[#allocation10_spill] sm:$0xff] }
 0x3ff   : > { %10047 = vmatprep.subr.bf16.mxu0 %v15097_v45  ;;  %10365 = vmatpush1.bf16.msra.mxu1 %v15098_v53  ;;  %v5364_v10 = vmax.f32 %v13080_v3, %v5363_v24  ;;  %v5378_v57 = vmax.f32 %v13096_v26, %v5377_v9  ;;  %v5448_v35 = vmax.f32 %v13115_v30, %v5447_v63  ;;  %v5323_v3 = vrot.slane %v13175_v55, 2  ;;  %v15106_v30 = vld [vmem:[#allocation6_spill] sm:$0xff] }
 0x400   : > { %10367 = vmatprep.subr.bf16.mxu1 %v15101_v0  ;;  %v5462_v27 = vmax.f32 %v13123_v49, %v5461_v31  ;;  %v5420_v39 = vmax.f32 %v13155_v44, %v5419_v32  ;;  %v5434_v41 = vmax.f32 %v13166_v47, %v5433_v23  ;;  %v15104_v54 = vpack.c.bf16 %v15102_v43, %v15103_v4  ;;  %v15108_v49 = vld [vmem:[#allocation17_spill] sm:$0xff]  ;;  %v15109_v44 = vld [vmem:[#allocation16_spill] sm:$0xff] }
 0x401   : > { %v5487_v58 = vmax.f32 %v5431_v12, %v5459_v6  ;;  %v13247_v36 = vmax.f32 %v13150_v52, %v5339_v60  ;;  %v5471_v50 = vmax.f32 %v5469_v25, %v5470_v19  ;;  %v5443_v26 = vmax.f32 %v5441_v56, %v5442_v5  ;;  %v15111_v52 = vld [vmem:[#allocation23_spill] sm:$0xff]  ;;  %v15112_v60 = vld [vmem:[#allocation22_spill] sm:$0xff]  ;;  %v15114_v19 = vld [vmem:[#allocation9_spill] sm:$0xff] }
 0x402   : > { %10049 = vmatpush1.bf16.msra.mxu0 %v15104_v54  ;;  %v15107_v16 = vpack.c.bf16 %v15105_v40, %v15106_v30  ;;  %v15110_v34 = vpack.c.bf16 %v15108_v49, %v15109_v44  ;;  %v5346_v47 = vrot.slane %v13185_v61, 1  ;;  %v13258_v22 = vmax.f32 %v13161_v33, %v5353_v14  ;;  %v15115_v5 = vld [vmem:[#allocation8_spill] sm:$0xff]  ;;  %v15117_v12 = vld [vmem:[#allocation11_spill] sm:$0xff]  ;;  %v15120_v0 = vld [vmem:[#allocation25_spill] sm:$0xff] }
 0x403   : > { %v5393_v24 = vrot.slane %v5392_v48, 2  ;;  %v15113_v9 = vpack.c.bf16 %v15111_v52, %v15112_v60  ;;  %v13264_v25 = vadd.f32 %v13142_v51, %v5487_v58  ;;  %v5407_v56 = vrot.slane %v5406_v7, 2  ;;  %v15121_v43 = vld [vmem:[#allocation24_spill] sm:$0xff]  ;;  %v15124_v49 = vld [vmem:[#allocation31_spill] sm:$0xff]  ;;  %v15127_v44 = vld [vmem:[#allocation54_spill] sm:$0xff] }
 0x404   : > { %10051 = vmatprep.subr.bf16.mxu0 %v15107_v16  ;;  %10369 = vmatpush1.bf16.msra.mxu1 %v15110_v34  ;;  %v5365_v63 = vrot.slane %v5364_v10, 2  ;;  %v5379_v31 = vrot.slane %v5378_v57, 2  ;;  %v5449_v6 = vrot.slane %v5448_v35, 2  ;;  %v5311_v32 = vrot.slane %v5310_v38, 1 }
 0x405   : > { %10371 = vmatprep.subr.bf16.mxu1 %v15113_v9  ;;  %v5463_v18 = vrot.slane %v5462_v27, 2  ;;  %v5421_v23 = vrot.slane %v5420_v39, 2  ;;  %v5435_v11 = vrot.slane %v5434_v41, 2  ;;  %v15116_v33 = vpack.c.bf16 %v15114_v19, %v15115_v5 }
 0x406   : > { %v5317_v14 = vmax.f32 %v13172_v37, %v5316_v2  ;;  %v5472_v45 = vrot.slane %v5471_v50, 1  ;;  %v5444_v53 = vrot.slane %v5443_v26, 1  ;;  %v15119_v13 = vpack.c.bf16 %v15117_v12, %v15118_v42  ;;  %v15125_v37 = vld [vmem:[#allocation30_spill] sm:$0xff] }
 0x407   : > { %10053 = vmatpush1.bf16.msra.mxu0 %v15116_v33  ;;  %v15122_v4 = vpack.c.bf16 %v15120_v0, %v15121_v43  ;;  %v15123_v54 = vrot.slane %v13112_v46, 1  ;;  %v5324_v40 = vmax.f32 %v13175_v55, %v5323_v3  ;;  %v5330_v30 = vrot.slane %v5329_v15, 2  ;;  %v15132_v0 = vld [vmem:[#allocation19_spill] sm:$0xff]  ;;  %v15133_v43 = vld [vmem:[#allocation18_spill] sm:$0xff] }
 0x408   : > { %10055 = vmatprep.subr.bf16.mxu0 %v15119_v13  ;;  %v5394_v16 = vmax.f32 %v5392_v48, %v5393_v24  ;;  %v15126_v2 = vpack.c.bf16 %v15124_v49, %v15125_v37  ;;  %v15128_v34 = vrot.slane %v15127_v44, 1  ;;  %v5408_v60 = vmax.f32 %v5406_v7, %v5407_v56  ;;  %v15130_v13 = vld [vmem:[#allocation12_spill] sm:$0xff]  ;;  %v15139_v56 = vld [vmem:[#allocation38_spill] sm:$0xff] }
 0x409   : > { %10373 = vmatpush1.bf16.msra.mxu1 %v15122_v4  ;;  %v5277_v58 = vmax.f32 %v13112_v46, %v15123_v54  ;;  %v5366_v9 = vmax.f32 %v5364_v10, %v5365_v63  ;;  %v5380_v19 = vmax.f32 %v5378_v57, %v5379_v31  ;;  %v5450_v5 = vmax.f32 %v5448_v35, %v5449_v6  ;;  %v15129_v46 = vld [vmem:[#allocation13_spill] sm:$0xff]  ;;  %v15136_v49 = vld [vmem:[#allocation32_spill] sm:$0xff] }
 0x40a   : > { %10375 = vmatprep.subr.bf16.mxu1 %v15126_v2  ;;  %v5305_v52 = vmax.f32 %v15127_v44, %v15128_v34  ;;  %v5464_v33 = vmax.f32 %v5462_v27, %v5463_v18  ;;  %v5422_v12 = vmax.f32 %v5420_v39, %v5421_v23  ;;  %v5436_v42 = vmax.f32 %v5434_v41, %v5435_v11  ;;  %v15135_v54 = vld [vmem:[#allocation33_spill] sm:$0xff]  ;;  %v15138_v41 = vld [vmem:[#allocation39_spill] sm:$0xff]  ;;  %v15145_v2 = vld [vmem:[#allocation26_spill] sm:$0xff] }
 0x40b   : > { %v15131_v55 = vpack.c.bf16 %v15129_v46, %v15130_v13  ;;  %v5312_v3 = vmax.f32 %v5310_v38, %v5311_v32  ;;  %v5318_v24 = vrot.slane %v5317_v14, 1  ;;  %v15134_v4 = vpack.c.bf16 %v15132_v0, %v15133_v43  ;;  %v15147_v34 = vld [vmem:[#allocation41_spill] sm:$0xff]  ;;  %v6900_v13 = vld [vmem:[%s14947_s5 + $0xbe0] sm:$0xff] }
 0x40c   : > { %v5477_v48 = vmax.f32 %v5277_v58, %v5305_v52  ;;  %v15137_v7 = vpack.c.bf16 %v15135_v54, %v15136_v49  ;;  %v5445_v10 = vmax.f32 %v5443_v26, %v5444_v53  ;;  %v5473_v57 = vmax.f32 %v5471_v50, %v5472_v45  ;;  %v15141_v26 = vld [vmem:[#allocation21_spill] sm:$0xff]  ;;  %v15142_v50 = vld [vmem:[#allocation20_spill] sm:$0xff]  ;;  %v15151_v54 = vld [vmem:[#allocation46_spill] sm:$0xff] }
 0x40d   : > { %10057 = vmatpush1.bf16.msra.mxu0 %v15131_v55  ;;  %v5325_v35 = vrot.slane %v5324_v40, 1  ;;  %v5331_v27 = vmax.f32 %v5329_v15, %v5330_v30  ;;  %v5395_v39 = vrot.slane %v5394_v16, 1  ;;  %v15140_v63 = vpack.c.bf16 %v15138_v41, %v15139_v56  ;;  %v15144_v30 = vld [vmem:[#allocation27_spill] sm:$0xff]  ;;  %v15148_v52 = vld [vmem:[#allocation40_spill] sm:$0xff] }
 0x40e   : > { %10059 = vmatprep.subr.bf16.mxu0 %v15134_v4  ;;  %10377 = vmatpush1.bf16.msra.mxu1 %v15137_v7  ;;  %v13299_v38 = vadd.f32 %v13142_v51, %v5477_v48  ;;  %v5409_v31 = vrot.slane %v5408_v60, 1  ;;  %v5367_v6 = vrot.slane %v5366_v9, 1  ;;  %v5381_v32 = vrot.slane %v5380_v19, 1  ;;  %v15150_v4 = vld [vmem:[#allocation47_spill] sm:$0xff]  ;;  %v6902_v7 = vld [vmem:[%s14947_s5 + $0xbf0] sm:$0xff] }
 0x40f   : > { %10379 = vmatprep.subr.bf16.mxu1 %v15140_v63  ;;  %v5489_v18 = vmax.f32 %v5445_v10, %v5473_v57  ;;  %v5451_v23 = vrot.slane %v5450_v5, 1  ;;  %v5465_v11 = vrot.slane %v5464_v33, 1  ;;  %v5423_v58 = vrot.slane %v5422_v12, 1  ;;  %v7117_v10 = vld [vmem:[%s14947_s5 + $0xd08] sm:$0xff]  ;;  %v15153_v63 = vld [vmem:[#allocation29_spill] sm:$0xff] }
 0x410   : > { %v5437_v37 = vrot.slane %v5436_v42, 1  ;;  %v15143_v45 = vpack.c.bf16 %v15141_v26, %v15142_v50  ;;  %v5347_v15 = vmax.f32 %v13185_v61, %v5346_v47  ;;  %v5360_v53 = vrot.slane %v13221_v20, 1  ;;  %v15160_v26 = vld [vmem:[#allocation48_spill] sm:$0xff] }
 0x411   : > { %v15146_v44 = vpack.c.bf16 %v15144_v30, %v15145_v2  ;;  %v15149_v46 = vpack.c.bf16 %v15147_v34, %v15148_v52  ;;  %v13316_v55 = vadd.f32 %v13142_v51, %v5489_v18  ;;  %v5478_v48 = vmax.f32 %v5312_v3, %v13247_v36  ;;  %v7119_v36 = vld [vmem:[%s14947_s5 + $0xd18] sm:$0xff]  ;;  %v15154_v18 = vld [vmem:[#allocation28_spill] sm:$0xff] }
 0x412   : > { %10061 = vmatpush1.bf16.msra.mxu0 %v15143_v45  ;;  %v5319_v61 = vmax.f32 %v5317_v14, %v5318_v24  ;;  %v5326_v47 = vmax.f32 %v5324_v40, %v5325_v35  ;;  %v5332_v0 = vrot.slane %v5331_v27, 1  ;;  %v5396_v43 = vmax.f32 %v5394_v16, %v5395_v39  ;;  %v7116_v16 = vld [vmem:[%s14947_s5 + $0xd00] sm:$0xff]  ;;  %v7118_v24 = vld [vmem:[%s14947_s5 + $0xd10] sm:$0xff] }
 0x413   : > { %10063 = vmatprep.subr.bf16.mxu0 %v15146_v44  ;;  %10381 = vmatpush1.bf16.msra.mxu1 %v15149_v46  ;;  %v15152_v49 = vpack.c.bf16 %v15150_v4, %v15151_v54  ;;  %v5410_v14 = vmax.f32 %v5408_v60, %v5409_v31  ;;  %v5368_v40 = vmax.f32 %v5366_v9, %v5367_v6  ;;  %v15156_v9 = vld [vmem:[#allocation35_spill] sm:$0xff]  ;;  %v5785_v4 = vld [vmem:[%s14947_s5 + $0x258] sm:$0xff] }
 0x414   : > { %v5382_v3 = vmax.f32 %v5380_v19, %v5381_v32  ;;  %v13338_v57 = vadd.f32 %v13142_v51, %v5478_v48  ;;  %v5452_v35 = vmax.f32 %v5450_v5, %v5451_v23  ;;  %v5466_v39 = vmax.f32 %v5464_v33, %v5465_v11  ;;  %v15157_v19 = vld [vmem:[#allocation34_spill] sm:$0xff]  ;;  %v15159_v32 = vld [vmem:[#allocation49_spill] sm:$0xff] }
 0x415   : > { %10383 = vmatprep.subr.bf16.mxu1 %v15152_v49  ;;  %v5424_v41 = vmax.f32 %v5422_v12, %v5423_v58  ;;  %v5438_v56 = vmax.f32 %v5436_v42, %v5437_v37  ;;  %v15155_v60 = vpack.c.bf16 %v15153_v63, %v15154_v18  ;;  %v15158_v31 = vpack.c.bf16 %v15156_v9, %v15157_v19  ;;  %v15162_v12 = vld [vmem:[#allocation53_spill] sm:$0xff]  ;;  %v15163_v42 = vld [vmem:[#allocation52_spill] sm:$0xff]  ;;  %v15169_v48 = vld [vmem:[#allocation42_spill] sm:$0xff] }
 0x416   : > { %v5498_v6 = vadd.f32 %v13142_v51, %v5475_v1  ;;  %v15161_v50 = vpack.c.bf16 %v15159_v32, %v15160_v26  ;;  %v10388_v5 = vpack.c.bf16 %v6902_v7, %v6900_v13  ;;  %v10422_v33 = vpack.c.bf16 %v7119_v36, %v7117_v10  ;;  %v7123_v1 = vld [vmem:[%s14947_s5 + $0xd38] sm:$0xff]  ;;  %v15168_v13 = vld [vmem:[#allocation43_spill] sm:$0xff]  ;;  %v7122_v10 = vld [vmem:[%s14947_s5 + $0xd30] sm:$0xff] }
 0x417   : > { %10065 = vmatpush1.bf16.msra.mxu0 %v15155_v60  ;;  %v15164_v23 = vpack.c.bf16 %v15162_v12, %v15163_v42  ;;  %v5508_v11 = vadd.f32 %v13142_v51, %v5485_v8  ;;  %v10424_v58 = vpack.c.bf16 %v7118_v24, %v7116_v16  ;;  %v5479_v37 = vmax.f32 %v5319_v61, %v5347_v15  ;;  %v5783_v61 = vld [vmem:[%s14947_s5 + $0x248] sm:$0xff]  ;;  %v7120_v7 = vld [vmem:[%s14947_s5 + $0xd20] sm:$0xff]  ;;  %v15171_v24 = vld [vmem:[#allocation45_spill] sm:$0xff] }
 0x418   : > { %10067 = vmatprep.subr.bf16.mxu0 %v15158_v31  ;;  %10385 = vmatpush1.bf16.msra.mxu1 %v15161_v50  ;;  %v5480_v59 = vmax.f32 %v5326_v47, %v13258_v22  ;;  %v5333_v45 = vmax.f32 %v5331_v27, %v5332_v0  ;;  %v5361_v30 = vmax.f32 %v13221_v20, %v5360_v53  ;;  %v5514_v46 = vmax.f32 %v5498_v6, 0.0  ;;  %v5778_v20 = vld [vmem:[%s14947_s5 + $0x220] sm:$0xff]  ;;  %v5780_v53 = vld [vmem:[%s14947_s5 + $0x230] sm:$0xff]  ;;  %v15175_v63 = vld [vmem:[#allocation50_spill] sm:$0xff] }
 0x419   : > { %10387 = vmatprep.subr.bf16.mxu1 %v15164_v23  ;;  %v5482_v2 = vmax.f32 %v5368_v40, %v5396_v43  ;;  %v5484_v44 = vmax.f32 %v5382_v3, %v5410_v14  ;;  %v15167_v8 = vpack.c.bf16 %v15165_v17, %v15166_v21  ;;  %v13372_v15 = vadd.f32 %v13142_v51, %v5479_v37  ;;  %v7125_v40 = vld [vmem:[%s14947_s5 + $0xd48] sm:$0xff]  ;;  %v7127_v3 = vld [vmem:[%s14947_s5 + $0xd58] sm:$0xff]  ;;  %v5782_v9 = vld [vmem:[%s14947_s5 + $0x240] sm:$0xff] }
 0x41a   : > { %v13375_v22 = vadd.f32 %v13142_v51, %v5480_v59  ;;  %v5486_v34 = vmax.f32 %v5424_v41, %v5452_v35  ;;  %v5488_v52 = vmax.f32 %v5438_v56, %v5466_v39  ;;  %v15170_v27 = vpack.c.bf16 %v15168_v13, %v15169_v48  ;;  %v15172_v35 = vld [vmem:[#allocation44_spill] sm:$0xff]  ;;  %v15174_v56 = vld [vmem:[#allocation51_spill] sm:$0xff]  ;;  %v5789_v6 = vld [vmem:[%s14947_s5 + $0x278] sm:$0xff] }
 0x41b   : > { %10069 = vmatpush1.bf16.msra.mxu0 %v15167_v8  ;;  %v5481_v47 = vmax.f32 %v5333_v45, %v5361_v30  ;;  %v13390_v0 = vadd.f32 %v13142_v51, %v5482_v2  ;;  %v13393_v43 = vadd.f32 %v13142_v51, %v5484_v44  ;;  %v5524_v54 = vmax.f32 %v5508_v11, 0.0  ;;  %v5787_v19 = vld [vmem:[%s14947_s5 + $0x268] sm:$0xff]  ;;  %v7124_v26 = vld [vmem:[%s14947_s5 + $0xd40] sm:$0xff]  ;;  %v7126_v50 = vld [vmem:[%s14947_s5 + $0xd50] sm:$0xff] }
 0x41c   : > { %10071 = vmatprep.subr.bf16.mxu0 %v15170_v27  ;;  %10389 = vmatpush1.bf16.msra.mxu1 %v10388_v5  ;;  %v10426_v49 = vpack.c.bf16 %v7123_v1, %v7121_v28  ;;  %v13405_v36 = vadd.f32 %v13142_v51, %v5486_v34  ;;  %v13408_v14 = vadd.f32 %v13142_v51, %v5488_v52  ;;  %v7129_v5 = vld [vmem:[%s14947_s5 + $0xd68] sm:$0xff]  ;;  %v5786_v23 = vld [vmem:[%s14947_s5 + $0x260] sm:$0xff]  ;;  %v5788_v11 = vld [vmem:[%s14947_s5 + $0x270] sm:$0xff] }
 0x41d   : > { %10423 = vmatprep.subr.bf16.mxu1 %v10422_v33  ;;  %v13417_v16 = vadd.f32 %v13142_v51, %v5481_v47  ;;  %v15173_v39 = vpack.c.bf16 %v15171_v24, %v15172_v35  ;;  %v10076_v41 = vpack.c.bf16 %v5780_v53, %v5778_v20  ;;  %v15176_v18 = vpack.c.bf16 %v15174_v56, %v15175_v63  ;;  %v5784_v51 = vld [vmem:[%s14947_s5 + $0x250] sm:$0xff]  ;;  %v7131_v33 = vld [vmem:[%s14947_s5 + $0xd78] sm:$0xff]  ;;  %v7128_v1 = vld [vmem:[%s14947_s5 + $0xd60] sm:$0xff] }
 0x41e   : > { %5749 = vmatmul.mubr.f32.vlgmr.msra.gmra.mrb[74].mxu0 %v5514_v46  ;;  %v10078_v60 = vpack.c.bf16 %v5785_v4, %v5783_v61  ;;  %v10428_v31 = vpack.c.bf16 %v7122_v10, %v7120_v7  ;;  %v10430_v32 = vpack.c.bf16 %v7127_v3, %v7125_v40  ;;  %v10080_v12 = vpack.c.bf16 %v5784_v51, %v5782_v9  ;;  %v5793_v59 = vld [vmem:[%s14947_s5 + $0x298] sm:$0xff]  ;;  %v7130_v45 = vld [vmem:[%s14947_s5 + $0xd70] sm:$0xff]  ;;  %v7133_v30 = vld [vmem:[%s14947_s5 + $0xd88] sm:$0xff] }
 0x41f   : > { %10073 = vmatpush1.bf16.msra.mxu0 %v15173_v39  ;;  %6969 = vmatmul.mubr.f32.vlgmr.msra.gmra.mrb[10].mxu1 %v5524_v54  ;;  %v10082_v42 = vpack.c.bf16 %v5789_v6, %v5787_v19  ;;  %v10432_v37 = vpack.c.bf16 %v7126_v50, %v7124_v26  ;;  %v10434_v28 = vpack.c.bf16 %v7131_v33, %v7129_v5  ;;  %v7135_v2 = vld [vmem:[%s14947_s5 + $0xd98] sm:$0xff]  ;;  %v5790_v21 = vld [vmem:[%s14947_s5 + $0x280] sm:$0xff]  ;;  %v5792_v8 = vld [vmem:[%s14947_s5 + $0x290] sm:$0xff] }
 0x420   : > { %10075 = vmatprep.subr.bf16.mxu0 %v15176_v18  ;;  %10425 = vmatpush1.bf16.msra.mxu1 %v10424_v58  ;;  %v5791_v58 = vld [vmem:[%s14947_s5 + $0x288] sm:$0xff]  ;;  %v10084_v44 = vpack.c.bf16 %v5788_v11, %v5786_v23  ;;  %v10436_v52 = vpack.c.bf16 %v7130_v45, %v7128_v1  ;;  %v5797_v46 = vld [vmem:[%s14947_s5 + $0x2b8] sm:$0xff]  ;;  %v10438_v13 = vpack.c.bf16 %v7135_v2, %v7133_v30  ;;  %v7132_v48 = vld [vmem:[%s14947_s5 + $0xd80] sm:$0xff] }
 0x421   : > { %10427 = vmatprep.subr.bf16.mxu1 %v10426_v49  ;;  %5870 = vmatprep.mubr.f32.mxu0 %v15095_v62  ;;  %v10086_v17 = vpack.c.bf16 %v5793_v59, %v5791_v58  ;;  %v5795_v34 = vld [vmem:[%s14947_s5 + $0x2a8] sm:$0xff]  ;;  %v7134_v27 = vld [vmem:[%s14947_s5 + $0xd90] sm:$0xff]  ;;  %v7139_v53 = vld [vmem:[%s14947_s5 + $0xdb8] sm:$0xff]  ;;  %v10088_v61 = vpack.c.bf16 %v5792_v8, %v5790_v21 }
 0x422   : > { %7212 = vmatprep.mubr.f32.mxu1 %v15095_v62  ;;  %v7137_v20 = vld [vmem:[%s14947_s5 + $0xda8] sm:$0xff]  ;;  %v10090_v47 = vpack.c.bf16 %v5797_v46, %v5795_v34  ;;  %v5794_v4 = vld [vmem:[%s14947_s5 + $0x2a0] sm:$0xff]  ;;  %v5796_v54 = vld [vmem:[%s14947_s5 + $0x2b0] sm:$0xff]  ;;  %v10440_v7 = vpack.c.bf16 %v7134_v27, %v7132_v48 }
 0x423   : > { %10077 = vmatpush1.bf16.msra.mxu0 %v10076_v41  ;;  %v5799_v49 = vld [vmem:[%s14947_s5 + $0x2c8] sm:$0xff]  ;;  %v5801_v10 = vld [vmem:[%s14947_s5 + $0x2d8] sm:$0xff]  ;;  %v10442_v40 = vpack.c.bf16 %v7139_v53, %v7137_v20  ;;  %v7136_v3 = vld [vmem:[%s14947_s5 + $0xda0] sm:$0xff]  ;;  %v10092_v41 = vpack.c.bf16 %v5796_v54, %v5794_v4  ;;  %v5515_v20 = vmax.f32 %v13208_v29, 0.0 }
 0x424   : > { %10079 = vmatprep.subr.bf16.mxu0 %v10078_v60  ;;  %10429 = vmatpush1.bf16.msra.mxu1 %v10428_v31  ;;  %v7138_v24 = vld [vmem:[%s14947_s5 + $0xdb0] sm:$0xff]  ;;  %v7141_v35 = vld [vmem:[%s14947_s5 + $0xdc8] sm:$0xff]  ;;  %v7143_v39 = vld [vmem:[%s14947_s5 + $0xdd8] sm:$0xff]  ;;  %v10094_v56 = vpack.c.bf16 %v5801_v10, %v5799_v49  ;;  %v5526_v49 = vmax.f32 %v13264_v25, 0.0 }
 0x425   : > { %10431 = vmatprep.subr.bf16.mxu1 %v10430_v32  ;;  %v5798_v63 = vld [vmem:[%s14947_s5 + $0x2c0] sm:$0xff]  ;;  %v5800_v18 = vld [vmem:[%s14947_s5 + $0x2d0] sm:$0xff]  ;;  %v5803_v60 = vld [vmem:[%s14947_s5 + $0x2e8] sm:$0xff]  ;;  %v10444_v9 = vpack.c.bf16 %v7138_v24, %v7136_v3  ;;  %v10446_v19 = vpack.c.bf16 %v7143_v39, %v7141_v35 }
 0x426   : > { %v5805_v51 = vld [vmem:[%s14947_s5 + $0x2f8] sm:$0xff]  ;;  %v7140_v31 = vld [vmem:[%s14947_s5 + $0xdc0] sm:$0xff]  ;;  %v7142_v6 = vld [vmem:[%s14947_s5 + $0xdd0] sm:$0xff]  ;;  %v10096_v50 = vpack.c.bf16 %v5800_v18, %v5798_v63 }
 0x427   : > { %10081 = vmatpush1.bf16.msra.mxu0 %v10080_v12  ;;  %v7145_v32 = vld [vmem:[%s14947_s5 + $0xde8] sm:$0xff]  ;;  %v7147_v26 = vld [vmem:[%s14947_s5 + $0xdf8] sm:$0xff]  ;;  %v10098_v5 = vpack.c.bf16 %v5805_v51, %v5803_v60  ;;  %v5802_v33 = vld [vmem:[%s14947_s5 + $0x2e0] sm:$0xff]  ;;  %v10448_v23 = vpack.c.bf16 %v7142_v6, %v7140_v31 }
 0x428   : > { %10083 = vmatprep.subr.bf16.mxu0 %v10082_v42  ;;  %10433 = vmatpush1.bf16.msra.mxu1 %v10432_v37  ;;  %v5804_v12 = vld [vmem:[%s14947_s5 + $0x2f0] sm:$0xff]  ;;  %v5897_v42 = vld [vmem:[%s14947_s5 + $0x308] sm:$0xff]  ;;  %v5899_v11 = vld [vmem:[%s14947_s5 + $0x318] sm:$0xff]  ;;  %v10450_v58 = vpack.c.bf16 %v7147_v26, %v7145_v32 }
 0x429   : > { %10435 = vmatprep.subr.bf16.mxu1 %v10434_v28  ;;  %v7144_v37 = vld [vmem:[%s14947_s5 + $0xde0] sm:$0xff]  ;;  %v7146_v59 = vld [vmem:[%s14947_s5 + $0xdf0] sm:$0xff]  ;;  %v7361_v28 = vld [vmem:[%s14947_s5 + $0xf08] sm:$0xff]  ;;  %v10100_v45 = vpack.c.bf16 %v5804_v12, %v5802_v33  ;;  %v10102_v30 = vpack.c.bf16 %v5899_v11, %v5897_v42 }
 0x42a   : > { %v7363_v1 = vld [vmem:[%s14947_s5 + $0xf18] sm:$0xff]  ;;  %v5896_v2 = vld [vmem:[%s14947_s5 + $0x300] sm:$0xff]  ;;  %v10452_v21 = vpack.c.bf16 %v7146_v59, %v7144_v37  ;;  %v7362_v46 = vld [vmem:[%s14947_s5 + $0xf10] sm:$0xff] }
 0x42b   : > { %10085 = vmatpush1.bf16.msra.mxu0 %v10084_v44  ;;  %v5898_v44 = vld [vmem:[%s14947_s5 + $0x310] sm:$0xff]  ;;  %v5903_v8 = vld [vmem:[%s14947_s5 + $0x338] sm:$0xff]  ;;  %v10486_v34 = vpack.c.bf16 %v7363_v1, %v7361_v28  ;;  %v5905_v4 = vld [vmem:[%s14947_s5 + $0x348] sm:$0xff] }
 0x42c   : > { %10087 = vmatprep.subr.bf16.mxu0 %v10086_v17  ;;  %10437 = vmatpush1.bf16.msra.mxu1 %v10436_v52  ;;  %v5901_v17 = vld [vmem:[%s14947_s5 + $0x328] sm:$0xff]  ;;  %v7360_v52 = vld [vmem:[%s14947_s5 + $0xf00] sm:$0xff]  ;;  %v7367_v48 = vld [vmem:[%s14947_s5 + $0xf38] sm:$0xff]  ;;  %v10104_v27 = vpack.c.bf16 %v5898_v44, %v5896_v2 }
 0x42d   : > { %10439 = vmatprep.subr.bf16.mxu1 %v10438_v13  ;;  %v7365_v13 = vld [vmem:[%s14947_s5 + $0xf28] sm:$0xff]  ;;  %v10106_v53 = vpack.c.bf16 %v5903_v8, %v5901_v17  ;;  %v10488_v54 = vpack.c.bf16 %v7362_v46, %v7360_v52  ;;  %v5907_v29 = vld [vmem:[%s14947_s5 + $0x358] sm:$0xff]  ;;  %v7364_v10 = vld [vmem:[%s14947_s5 + $0xf20] sm:$0xff] }
 0x42e   : > { %v7369_v3 = vld [vmem:[%s14947_s5 + $0xf48] sm:$0xff]  ;;  %v7371_v24 = vld [vmem:[%s14947_s5 + $0xf58] sm:$0xff]  ;;  %v10110_v35 = vpack.c.bf16 %v5907_v29, %v5905_v4  ;;  %v5904_v39 = vld [vmem:[%s14947_s5 + $0x340] sm:$0xff] }
 0x42f   : > { %10089 = vmatpush1.bf16.msra.mxu0 %v10088_v61  ;;  %v5900_v61 = vld [vmem:[%s14947_s5 + $0x320] sm:$0xff]  ;;  %v5911_v18 = vld [vmem:[%s14947_s5 + $0x378] sm:$0xff]  ;;  %v10494_v60 = vpack.c.bf16 %v7371_v24, %v7369_v3  ;;  %v7370_v51 = vld [vmem:[%s14947_s5 + $0xf50] sm:$0xff] }
 0x430   : > { %10091 = vmatprep.subr.bf16.mxu0 %v10090_v47  ;;  %10441 = vmatpush1.bf16.msra.mxu1 %v10440_v7  ;;  %v5902_v47 = vld [vmem:[%s14947_s5 + $0x330] sm:$0xff]  ;;  %v10490_v7 = vpack.c.bf16 %v7367_v48, %v7365_v13  ;;  %v7375_v31 = vld [vmem:[%s14947_s5 + $0xf78] sm:$0xff]  ;;  %v5908_v26 = vld [vmem:[%s14947_s5 + $0x360] sm:$0xff] }
 0x431   : > { %10443 = vmatprep.subr.bf16.mxu1 %v10442_v40  ;;  %v7366_v40 = vld [vmem:[%s14947_s5 + $0xf30] sm:$0xff]  ;;  %v10108_v25 = vpack.c.bf16 %v5902_v47, %v5900_v61  ;;  %v5915_v12 = vld [vmem:[%s14947_s5 + $0x398] sm:$0xff]  ;;  %v5912_v1 = vld [vmem:[%s14947_s5 + $0x380] sm:$0xff] }
 0x432   : > { %v10492_v63 = vpack.c.bf16 %v7366_v40, %v7364_v10  ;;  %v7374_v11 = vld [vmem:[%s14947_s5 + $0xf70] sm:$0xff]  ;;  %v7379_v37 = vld [vmem:[%s14947_s5 + $0xf98] sm:$0xff]  ;;  %v5916_v48 = vld [vmem:[%s14947_s5 + $0x3a0] sm:$0xff] }
 0x433   : > { %10093 = vmatpush1.bf16.msra.mxu0 %v10092_v41  ;;  %v5906_v41 = vld [vmem:[%s14947_s5 + $0x350] sm:$0xff]  ;;  %v5919_v44 = vld [vmem:[%s14947_s5 + $0x3b8] sm:$0xff]  ;;  %v7380_v4 = vld [vmem:[%s14947_s5 + $0xfa0] sm:$0xff] }
 0x434   : > { %10095 = vmatprep.subr.bf16.mxu0 %v10094_v56  ;;  %10445 = vmatpush1.bf16.msra.mxu1 %v10444_v9  ;;  %v5909_v56 = vld [vmem:[%s14947_s5 + $0x368] sm:$0xff]  ;;  %v7368_v9 = vld [vmem:[%s14947_s5 + $0xf40] sm:$0xff]  ;;  %v10112_v6 = vpack.c.bf16 %v5906_v41, %v5904_v39  ;;  %v7378_v8 = vld [vmem:[%s14947_s5 + $0xf90] sm:$0xff] }
 0x435   : > { %10447 = vmatprep.subr.bf16.mxu1 %v10446_v19  ;;  %v7373_v19 = vld [vmem:[%s14947_s5 + $0xf68] sm:$0xff]  ;;  %v10114_v32 = vpack.c.bf16 %v5911_v18, %v5909_v56  ;;  %v10496_v33 = vpack.c.bf16 %v7370_v51, %v7368_v9  ;;  %v7383_v52 = vld [vmem:[%s14947_s5 + $0xfb8] sm:$0xff]  ;;  %v5920_v40 = vld [vmem:[%s14947_s5 + $0x3c0] sm:$0xff] }
 0x436   : > { %v10498_v42 = vpack.c.bf16 %v7375_v31, %v7373_v19  ;;  %v5923_v61 = vld [vmem:[%s14947_s5 + $0x3d8] sm:$0xff]  ;;  %v7385_v29 = vld [vmem:[%s14947_s5 + $0xfc8] sm:$0xff]  ;;  %v5922_v3 = vld [vmem:[%s14947_s5 + $0x3d0] sm:$0xff] }
 0x437   : > { %10097 = vmatpush1.bf16.msra.mxu0 %v10096_v50  ;;  %v5910_v50 = vld [vmem:[%s14947_s5 + $0x370] sm:$0xff]  ;;  %v5925_v24 = vld [vmem:[%s14947_s5 + $0x3e8] sm:$0xff]  ;;  %v7384_v41 = vld [vmem:[%s14947_s5 + $0xfc0] sm:$0xff] }
 0x438   : > { %10099 = vmatprep.subr.bf16.mxu0 %v10098_v5  ;;  %10449 = vmatpush1.bf16.msra.mxu1 %v10448_v23  ;;  %v5913_v5 = vld [vmem:[%s14947_s5 + $0x388] sm:$0xff]  ;;  %v7372_v23 = vld [vmem:[%s14947_s5 + $0xf60] sm:$0xff]  ;;  %v10116_v59 = vpack.c.bf16 %v5910_v50, %v5908_v26  ;;  %v7386_v56 = vld [vmem:[%s14947_s5 + $0xfd0] sm:$0xff] }
 0x439   : > { %10451 = vmatprep.subr.bf16.mxu1 %v10450_v58  ;;  %v7377_v58 = vld [vmem:[%s14947_s5 + $0xf88] sm:$0xff]  ;;  %v10118_v28 = vpack.c.bf16 %v5915_v12, %v5913_v5  ;;  %v10500_v2 = vpack.c.bf16 %v7374_v11, %v7372_v23  ;;  %v7391_v18 = vld [vmem:[%s14947_s5 + $0xff8] sm:$0xff]  ;;  %v5924_v51 = vld [vmem:[%s14947_s5 + $0x3e0] sm:$0xff] }
 0x43a   : > { %v10502_v17 = vpack.c.bf16 %v7379_v37, %v7377_v58  ;;  %v5926_v19 = vld [vmem:[%s14947_s5 + $0x3f0] sm:$0xff]  ;;  %v6019_v31 = vld [vmem:[%s14947_s5 + $0x408] sm:$0xff]  ;;  %v7388_v50 = vld [vmem:[%s14947_s5 + $0xfe0] sm:$0xff] }
 0x43b   : > { %10101 = vmatpush1.bf16.msra.mxu0 %v10100_v45  ;;  %v5914_v45 = vld [vmem:[%s14947_s5 + $0x390] sm:$0xff]  ;;  %v6023_v58 = vld [vmem:[%s14947_s5 + $0x428] sm:$0xff]  ;;  %v6025_v37 = vld [vmem:[%s14947_s5 + $0x438] sm:$0xff] }
 0x43c   : > { %10103 = vmatprep.subr.bf16.mxu0 %v10102_v30  ;;  %10453 = vmatpush1.bf16.msra.mxu1 %v10452_v21  ;;  %v5917_v30 = vld [vmem:[%s14947_s5 + $0x3a8] sm:$0xff]  ;;  %v7376_v21 = vld [vmem:[%s14947_s5 + $0xf80] sm:$0xff]  ;;  %v10120_v46 = vpack.c.bf16 %v5914_v45, %v5912_v1  ;;  %v7390_v5 = vld [vmem:[%s14947_s5 + $0xff0] sm:$0xff]  ;;  %v10138_v1 = vpack.c.bf16 %v6025_v37, %v6023_v58 }
 0x43d   : > { %10487 = vmatprep.subr.bf16.mxu1 %v10486_v34  ;;  %v7381_v34 = vld [vmem:[%s14947_s5 + $0xfa8] sm:$0xff]  ;;  %v10122_v13 = vpack.c.bf16 %v5919_v44, %v5917_v30  ;;  %v6020_v23 = vld [vmem:[%s14947_s5 + $0x410] sm:$0xff]  ;;  %v10516_v11 = vpack.c.bf16 %v7390_v5, %v7388_v50  ;;  %v6022_v45 = vld [vmem:[%s14947_s5 + $0x420] sm:$0xff] }
 0x43e   : > { %5871 = vmatmul.mubr.f32.vlgmr.msra.gmra.mrb[76].mxu0 %v5515_v20  ;;  %v5921_v20 = vld [vmem:[%s14947_s5 + $0x3c8] sm:$0xff]  ;;  %v10506_v47 = vpack.c.bf16 %v7383_v52, %v7381_v34  ;;  %v6024_v30 = vld [vmem:[%s14947_s5 + $0x430] sm:$0xff]  ;;  %v6029_v44 = vld [vmem:[%s14947_s5 + $0x458] sm:$0xff] }
 0x43f   : > { %10105 = vmatpush1.bf16.msra.mxu0 %v10104_v27  ;;  %7213 = vmatmul.mubr.f32.vlgmr.msra.gmra.mrb[12].mxu1 %v5526_v49  ;;  %v5918_v27 = vld [vmem:[%s14947_s5 + $0x3b0] sm:$0xff]  ;;  %v7387_v49 = vld [vmem:[%s14947_s5 + $0xfd8] sm:$0xff]  ;;  %v10126_v10 = vpack.c.bf16 %v5923_v61, %v5921_v20  ;;  %v6035_v20 = vld [vmem:[%s14947_s5 + $0x488] sm:$0xff] }
 0x440   : > { %10107 = vmatprep.subr.bf16.mxu0 %v10106_v53  ;;  %10489 = vmatpush1.bf16.msra.mxu1 %v10488_v54  ;;  %v10504_v53 = vpack.c.bf16 %v7378_v8, %v7376_v21  ;;  %v7382_v54 = vld [vmem:[%s14947_s5 + $0xfb0] sm:$0xff]  ;;  %v10510_v39 = vpack.c.bf16 %v7387_v49, %v7385_v29  ;;  %v6026_v8 = vld [vmem:[%s14947_s5 + $0x440] sm:$0xff]  ;;  %v6033_v52 = vld [vmem:[%s14947_s5 + $0x478] sm:$0xff] }
 0x441   : > { %10491 = vmatprep.subr.bf16.mxu1 %v10490_v7  ;;  %5992 = vmatprep.mubr.f32.mxu0 %v15095_v62  ;;  %v10124_v7 = vpack.c.bf16 %v5918_v27, %v5916_v48  ;;  %v6028_v34 = vld [vmem:[%s14947_s5 + $0x450] sm:$0xff]  ;;  %v6030_v48 = vld [vmem:[%s14947_s5 + $0x460] sm:$0xff]  ;;  %v6039_v29 = vld [vmem:[%s14947_s5 + $0x4a8] sm:$0xff] }
 0x442   : > { %7456 = vmatprep.mubr.f32.mxu1 %v15095_v62  ;;  %v6032_v27 = vld [vmem:[%s14947_s5 + $0x470] sm:$0xff]  ;;  %v6041_v49 = vld [vmem:[%s14947_s5 + $0x4b8] sm:$0xff]  ;;  %v6140_v50 = vld [vmem:[%s14947_s5 + $0x500] sm:$0xff] }
 0x443   : > { %10109 = vmatpush1.bf16.msra.mxu0 %v10108_v25  ;;  %v10508_v25 = vpack.c.bf16 %v7382_v54, %v7380_v4  ;;  %v10148_v61 = vpack.c.bf16 %v6032_v27, %v6030_v48  ;;  %v6034_v4 = vld [vmem:[%s14947_s5 + $0x480] sm:$0xff]  ;;  %v6036_v54 = vld [vmem:[%s14947_s5 + $0x490] sm:$0xff]  ;;  %v6161_v27 = vld [vmem:[%s14947_s5 + $0x5a8] sm:$0xff] }
 0x444   : > { %10111 = vmatprep.subr.bf16.mxu0 %v10110_v35  ;;  %10493 = vmatpush1.bf16.msra.mxu1 %v10492_v63  ;;  %v5927_v35 = vld [vmem:[%s14947_s5 + $0x3f8] sm:$0xff]  ;;  %v7389_v63 = vld [vmem:[%s14947_s5 + $0xfe8] sm:$0xff]  ;;  %v6142_v5 = vld [vmem:[%s14947_s5 + $0x510] sm:$0xff] }
 0x445   : > { %10495 = vmatprep.subr.bf16.mxu1 %v10494_v60  ;;  %v10128_v60 = vpack.c.bf16 %v5922_v3, %v5920_v40  ;;  %v10130_v9 = vpack.c.bf16 %v5927_v35, %v5925_v24  ;;  %v10514_v26 = vpack.c.bf16 %v7391_v18, %v7389_v63  ;;  %v6038_v40 = vld [vmem:[%s14947_s5 + $0x4a0] sm:$0xff]  ;;  %v6040_v3 = vld [vmem:[%s14947_s5 + $0x4b0] sm:$0xff]  ;;  %v6043_v24 = vld [vmem:[%s14947_s5 + $0x4c8] sm:$0xff] }
 0x446   : > { %v10156_v35 = vpack.c.bf16 %v6040_v3, %v6038_v40  ;;  %v6047_v63 = vld [vmem:[%s14947_s5 + $0x4e8] sm:$0xff]  ;;  %v6049_v18 = vld [vmem:[%s14947_s5 + $0x4f8] sm:$0xff]  ;;  %v6144_v58 = vld [vmem:[%s14947_s5 + $0x520] sm:$0xff] }
 0x447   : > { %10113 = vmatpush1.bf16.msra.mxu0 %v10112_v6  ;;  %v10512_v6 = vpack.c.bf16 %v7386_v56, %v7384_v41  ;;  %v6042_v41 = vld [vmem:[%s14947_s5 + $0x4c0] sm:$0xff]  ;;  %v6044_v56 = vld [vmem:[%s14947_s5 + $0x4d0] sm:$0xff]  ;;  %v6169_v3 = vld [vmem:[%s14947_s5 + $0x5e8] sm:$0xff] }
 0x448   : > { %10115 = vmatprep.subr.bf16.mxu0 %v10114_v32  ;;  %10497 = vmatpush1.bf16.msra.mxu1 %v10496_v33  ;;  %v6021_v32 = vld [vmem:[%s14947_s5 + $0x418] sm:$0xff]  ;;  %v10132_v33 = vpack.c.bf16 %v5926_v19, %v5924_v51  ;;  %v6046_v51 = vld [vmem:[%s14947_s5 + $0x4e0] sm:$0xff]  ;;  %v6048_v19 = vld [vmem:[%s14947_s5 + $0x4f0] sm:$0xff] }
 0x449   : > { %10499 = vmatprep.subr.bf16.mxu1 %v10498_v42  ;;  %v10134_v12 = vpack.c.bf16 %v6021_v32, %v6019_v31  ;;  %v6018_v42 = vld [vmem:[%s14947_s5 + $0x400] sm:$0xff]  ;;  %v6141_v31 = vld [vmem:[%s14947_s5 + $0x508] sm:$0xff]  ;;  %v10164_v32 = vpack.c.bf16 %v6048_v19, %v6046_v51  ;;  %v6146_v37 = vld [vmem:[%s14947_s5 + $0x530] sm:$0xff] }
 0x44a   : > { %v6158_v48 = vld [vmem:[%s14947_s5 + $0x590] sm:$0xff]  ;;  %v6267_v19 = vld [vmem:[%s14947_s5 + $0x628] sm:$0xff] }
 0x44b   : > { %10117 = vmatpush1.bf16.msra.mxu0 %v10116_v59  ;;  %v10136_v59 = vpack.c.bf16 %v6020_v23, %v6018_v42  ;;  %v10168_v42 = vpack.c.bf16 %v6142_v5, %v6140_v50  ;;  %v5517_v23 = vmax.f32 %v13338_v57, 0.0  ;;  %v10172_v57 = vpack.c.bf16 %v6146_v37, %v6144_v58  ;;  %v6166_v40 = vld [vmem:[%s14947_s5 + $0x5d0] sm:$0xff]  ;;  %v6266_v50 = vld [vmem:[%s14947_s5 + $0x620] sm:$0xff]  ;;  %v6275_v58 = vld [vmem:[%s14947_s5 + $0x668] sm:$0xff] }
 0x44c   : > { %10119 = vmatprep.subr.bf16.mxu0 %v10118_v28  ;;  %10501 = vmatpush1.bf16.msra.mxu1 %v10500_v2  ;;  %v5516_v28 = vmax.f32 %v13299_v38, 0.0  ;;  %v6027_v2 = vld [vmem:[%s14947_s5 + $0x448] sm:$0xff]  ;;  %v5528_v38 = vmax.f32 %v13316_v55, 0.0  ;;  %v6264_v51 = vld [vmem:[%s14947_s5 + $0x610] sm:$0xff]  ;;  %v6277_v37 = vld [vmem:[%s14947_s5 + $0x678] sm:$0xff] }
 0x44d   : > { %10503 = vmatprep.subr.bf16.mxu1 %v10502_v17  ;;  %v10140_v17 = vpack.c.bf16 %v6024_v30, %v6022_v45  ;;  %v10142_v21 = vpack.c.bf16 %v6029_v44, %v6027_v2  ;;  %v6031_v55 = vld [vmem:[%s14947_s5 + $0x468] sm:$0xff]  ;;  %v6148_v45 = vld [vmem:[%s14947_s5 + $0x540] sm:$0xff]  ;;  %v6150_v30 = vld [vmem:[%s14947_s5 + $0x550] sm:$0xff] }
 0x44e   : > { %v6153_v2 = vld [vmem:[%s14947_s5 + $0x568] sm:$0xff]  ;;  %v6155_v44 = vld [vmem:[%s14947_s5 + $0x578] sm:$0xff]  ;;  %v6268_v5 = vld [vmem:[%s14947_s5 + $0x630] sm:$0xff] }
 0x44f   : > { %10121 = vmatpush1.bf16.msra.mxu0 %v10120_v46  ;;  %v10144_v46 = vpack.c.bf16 %v6028_v34, %v6026_v8  ;;  %v6154_v8 = vld [vmem:[%s14947_s5 + $0x570] sm:$0xff]  ;;  %v6157_v34 = vld [vmem:[%s14947_s5 + $0x588] sm:$0xff] }
 0x450   : > { %10123 = vmatprep.subr.bf16.mxu0 %v10122_v13  ;;  %10505 = vmatpush1.bf16.msra.mxu1 %v10504_v53  ;;  %v10146_v13 = vpack.c.bf16 %v6033_v52, %v6031_v55  ;;  %v6037_v53 = vld [vmem:[%s14947_s5 + $0x498] sm:$0xff] }
 0x451   : > { %10507 = vmatprep.subr.bf16.mxu1 %v10506_v47  ;;  %v10150_v47 = vpack.c.bf16 %v6037_v53, %v6035_v20  ;;  %v6159_v55 = vld [vmem:[%s14947_s5 + $0x598] sm:$0xff] }
 0x452   : > { %v6163_v20 = vld [vmem:[%s14947_s5 + $0x5b8] sm:$0xff] }
 0x453   : > { %10125 = vmatpush1.bf16.msra.mxu0 %v10124_v7  ;;  %v10152_v7 = vpack.c.bf16 %v6036_v54, %v6034_v4  ;;  %v6162_v4 = vld [vmem:[%s14947_s5 + $0x5b0] sm:$0xff]  ;;  %v6165_v54 = vld [vmem:[%s14947_s5 + $0x5c8] sm:$0xff] }
 0x454   : > { %10127 = vmatprep.subr.bf16.mxu0 %v10126_v10  ;;  %10509 = vmatpush1.bf16.msra.mxu1 %v10508_v25  ;;  %v10154_v10 = vpack.c.bf16 %v6041_v49, %v6039_v29  ;;  %v6045_v25 = vld [vmem:[%s14947_s5 + $0x4d8] sm:$0xff] }
 0x455   : > { %10511 = vmatprep.subr.bf16.mxu1 %v10510_v39  ;;  %v10158_v39 = vpack.c.bf16 %v6045_v25, %v6043_v24  ;;  %v6167_v29 = vld [vmem:[%s14947_s5 + $0x5d8] sm:$0xff] }
 0x456   : > { %v6171_v24 = vld [vmem:[%s14947_s5 + $0x5f8] sm:$0xff] }
 0x457   : > { %10129 = vmatpush1.bf16.msra.mxu0 %v10128_v60  ;;  %v10160_v60 = vpack.c.bf16 %v6044_v56, %v6042_v41  ;;  %v6170_v41 = vld [vmem:[%s14947_s5 + $0x5f0] sm:$0xff]  ;;  %v6263_v56 = vld [vmem:[%s14947_s5 + $0x608] sm:$0xff] }
 0x458   : > { %10131 = vmatprep.subr.bf16.mxu0 %v10130_v9  ;;  %10513 = vmatpush1.bf16.msra.mxu1 %v10512_v6  ;;  %v10162_v9 = vpack.c.bf16 %v6049_v18, %v6047_v63  ;;  %v6143_v6 = vld [vmem:[%s14947_s5 + $0x518] sm:$0xff] }
 0x459   : > { %10515 = vmatprep.subr.bf16.mxu1 %v10514_v26  ;;  %v10166_v26 = vpack.c.bf16 %v6143_v6, %v6141_v31  ;;  %v6265_v63 = vld [vmem:[%s14947_s5 + $0x618] sm:$0xff] }
 0x45a   : > { %v6269_v31 = vld [vmem:[%s14947_s5 + $0x638] sm:$0xff] }
 0x45b   : > { %10133 = vmatpush1.bf16.msra.mxu0 %v10132_v33  ;;  %v6145_v33 = vld [vmem:[%s14947_s5 + $0x528] sm:$0xff] }
 0x45c   : > { %10135 = vmatprep.subr.bf16.mxu0 %v10134_v12  ;;  %10517 = vmatpush1.bf16.msra.mxu1 %v10516_v11  ;;  %v6147_v12 = vld [vmem:[%s14947_s5 + $0x538] sm:$0xff] }
 0x45d   : > { %v10170_v11 = vpack.c.bf16 %v6147_v12, %v6145_v33  ;;  %v6271_v33 = vld [vmem:[%s14947_s5 + $0x648] sm:$0xff]  ;;  %v6273_v12 = vld [vmem:[%s14947_s5 + $0x658] sm:$0xff] }
 0x45e   : > { %5993 = vmatmul.mubr.f32.vlgmr.msra.gmra.mrb[78].mxu0 %v5516_v28  ;;  %v6151_v28 = vld [vmem:[%s14947_s5 + $0x558] sm:$0xff] }
 0x45f   : > { %10137 = vmatpush1.bf16.msra.mxu0 %v10136_v59  ;;  %7457 = vmatmul.mubr.f32.vlgmr.msra.gmra.mrb[14].mxu1 %v5528_v38  ;;  %v6149_v59 = vld [vmem:[%s14947_s5 + $0x548] sm:$0xff]  ;;  %v10176_v38 = vpack.c.bf16 %v6150_v30, %v6148_v45  ;;  %v6281_v30 = vld [vmem:[%s14947_s5 + $0x698] sm:$0xff] }
 0x460   : > { %10139 = vmatprep.subr.bf16.mxu0 %v10138_v1  ;;  %6114 = vmatprep.mubr.f32.mxu0 %v15095_v62  ;;  %v10174_v1 = vpack.c.bf16 %v6151_v28, %v6149_v59  ;;  %v10210_v28 = vpack.c.bf16 %v6277_v37, %v6275_v58  ;;  %v6279_v45 = vld [vmem:[%s14947_s5 + $0x688] sm:$0xff]  ;;  %v6400_v37 = vld [vmem:[%s14947_s5 + $0x780] sm:$0xff] }
 0x463   : > { %10141 = vmatpush1.bf16.msra.mxu0 %v10140_v17  ;;  %v10178_v17 = vpack.c.bf16 %v6155_v44, %v6153_v2  ;;  %v10214_v44 = vpack.c.bf16 %v6281_v30, %v6279_v45  ;;  %v6404_v30 = vld [vmem:[%s14947_s5 + $0x7a0] sm:$0xff] }
 0x464   : > { %10143 = vmatprep.subr.bf16.mxu0 %v10142_v21  ;;  %v6152_v21 = vld [vmem:[%s14947_s5 + $0x560] sm:$0xff] }
 0x465   : > { %v10180_v52 = vpack.c.bf16 %v6154_v8, %v6152_v21  ;;  %v6283_v21 = vld [vmem:[%s14947_s5 + $0x6a8] sm:$0xff]  ;;  %v6285_v8 = vld [vmem:[%s14947_s5 + $0x6b8] sm:$0xff] }
 0x467   : > { %10145 = vmatpush1.bf16.msra.mxu0 %v10144_v46  ;;  %v10182_v46 = vpack.c.bf16 %v6159_v55, %v6157_v34  ;;  %v10218_v55 = vpack.c.bf16 %v6285_v8, %v6283_v21  ;;  %v6408_v8 = vld [vmem:[%s14947_s5 + $0x7c0] sm:$0xff] }
 0x468   : > { %10147 = vmatprep.subr.bf16.mxu0 %v10146_v13  ;;  %v6156_v13 = vld [vmem:[%s14947_s5 + $0x580] sm:$0xff] }
 0x469   : > { %v10184_v53 = vpack.c.bf16 %v6158_v48, %v6156_v13  ;;  %v6287_v13 = vld [vmem:[%s14947_s5 + $0x6c8] sm:$0xff]  ;;  %v6289_v48 = vld [vmem:[%s14947_s5 + $0x6d8] sm:$0xff] }
 0x46b   : > { %10149 = vmatpush1.bf16.msra.mxu0 %v10148_v61  ;;  %v10186_v61 = vpack.c.bf16 %v6163_v20, %v6161_v27  ;;  %v10222_v20 = vpack.c.bf16 %v6289_v48, %v6287_v13 }
 0x46c   : > { %10151 = vmatprep.subr.bf16.mxu0 %v10150_v47  ;;  %v6160_v47 = vld [vmem:[%s14947_s5 + $0x5a0] sm:$0xff] }
 0x46d   : > { %v10188_v49 = vpack.c.bf16 %v6162_v4, %v6160_v47  ;;  %v6291_v47 = vld [vmem:[%s14947_s5 + $0x6e8] sm:$0xff]  ;;  %v6293_v4 = vld [vmem:[%s14947_s5 + $0x6f8] sm:$0xff] }
 0x46f   : > { %10153 = vmatpush1.bf16.msra.mxu0 %v10152_v7  ;;  %v10190_v7 = vpack.c.bf16 %v6167_v29, %v6165_v54  ;;  %v10226_v29 = vpack.c.bf16 %v6293_v4, %v6291_v47  ;;  %v6412_v47 = vld [vmem:[%s14947_s5 + $0x7e0] sm:$0xff]  ;;  %v6414_v4 = vld [vmem:[%s14947_s5 + $0x7f0] sm:$0xff] }
 0x470   : > { %10155 = vmatprep.subr.bf16.mxu0 %v10154_v10  ;;  %v6164_v10 = vld [vmem:[%s14947_s5 + $0x5c0] sm:$0xff] }
 0x471   : > { %v10192_v25 = vpack.c.bf16 %v6166_v40, %v6164_v10  ;;  %v6385_v10 = vld [vmem:[%s14947_s5 + $0x708] sm:$0xff]  ;;  %v6387_v40 = vld [vmem:[%s14947_s5 + $0x718] sm:$0xff] }
 0x473   : > { %10157 = vmatpush1.bf16.msra.mxu0 %v10156_v35  ;;  %v10194_v35 = vpack.c.bf16 %v6171_v24, %v6169_v3  ;;  %v10230_v24 = vpack.c.bf16 %v6387_v40, %v6385_v10  ;;  %v6506_v40 = vld [vmem:[%s14947_s5 + $0x800] sm:$0xff] }
 0x474   : > { %10159 = vmatprep.subr.bf16.mxu0 %v10158_v39  ;;  %v6168_v39 = vld [vmem:[%s14947_s5 + $0x5e0] sm:$0xff] }
 0x475   : > { %v10196_v18 = vpack.c.bf16 %v6170_v41, %v6168_v39  ;;  %v6389_v39 = vld [vmem:[%s14947_s5 + $0x728] sm:$0xff]  ;;  %v6391_v41 = vld [vmem:[%s14947_s5 + $0x738] sm:$0xff] }
 0x477   : > { %10161 = vmatpush1.bf16.msra.mxu0 %v10160_v60  ;;  %v10198_v60 = vpack.c.bf16 %v6265_v63, %v6263_v56  ;;  %v5519_v63 = vmax.f32 %v13375_v22, 0.0 }
 0x478   : > { %10163 = vmatprep.subr.bf16.mxu0 %v10162_v9  ;;  %v6262_v9 = vld [vmem:[%s14947_s5 + $0x600] sm:$0xff] }
 0x479   : > { %v10200_v6 = vpack.c.bf16 %v6264_v51, %v6262_v9  ;;  %v6390_v9 = vld [vmem:[%s14947_s5 + $0x730] sm:$0xff]  ;;  %v6393_v51 = vld [vmem:[%s14947_s5 + $0x748] sm:$0xff] }
 0x47b   : > { %10165 = vmatpush1.bf16.msra.mxu0 %v10164_v32  ;;  %v5518_v32 = vmax.f32 %v13372_v15, 0.0  ;;  %v10204_v15 = vpack.c.bf16 %v6268_v5, %v6266_v50  ;;  %v6399_v50 = vld [vmem:[%s14947_s5 + $0x778] sm:$0xff] }
 0x47c   : > { %10167 = vmatprep.subr.bf16.mxu0 %v10166_v26  ;;  %v10202_v26 = vpack.c.bf16 %v6269_v31, %v6267_v19  ;;  %v6395_v19 = vld [vmem:[%s14947_s5 + $0x758] sm:$0xff] }
 0x47d   : > { %v10238_v31 = vpack.c.bf16 %v6395_v19, %v6393_v51  ;;  %v6514_v51 = vld [vmem:[%s14947_s5 + $0x840] sm:$0xff]  ;;  %v6516_v19 = vld [vmem:[%s14947_s5 + $0x850] sm:$0xff] }
 0x47e   : > { %6115 = vmatmul.mubr.f32.vlgmr.msra.gmra.mrb[80].mxu0 %v5517_v23  ;;  %v6270_v23 = vld [vmem:[%s14947_s5 + $0x640] sm:$0xff] }
 0x47f   : > { %10169 = vmatpush1.bf16.msra.mxu0 %v10168_v42  ;;  %6236 = vmatprep.mubr.f32.mxu0 %v15095_v62  ;;  %v10206_v42 = vpack.c.bf16 %v6273_v12, %v6271_v33  ;;  %v6396_v12 = vld [vmem:[%s14947_s5 + $0x760] sm:$0xff] }
 0x480   : > { %10171 = vmatprep.subr.bf16.mxu0 %v10170_v11  ;;  %v6272_v11 = vld [vmem:[%s14947_s5 + $0x650] sm:$0xff] }
 0x481   : > { %v10208_v59 = vpack.c.bf16 %v6272_v11, %v6270_v23  ;;  %v6403_v23 = vld [vmem:[%s14947_s5 + $0x798] sm:$0xff] }
 0x483   : > { %10173 = vmatpush1.bf16.msra.mxu0 %v10172_v57  ;;  %v6274_v57 = vld [vmem:[%s14947_s5 + $0x660] sm:$0xff] }
 0x484   : > { %10175 = vmatprep.subr.bf16.mxu0 %v10174_v1  ;;  %v6276_v1 = vld [vmem:[%s14947_s5 + $0x670] sm:$0xff] }
 0x485   : > { %v10212_v2 = vpack.c.bf16 %v6276_v1, %v6274_v57  ;;  %v6407_v57 = vld [vmem:[%s14947_s5 + $0x7b8] sm:$0xff] }
 0x487   : > { %10177 = vmatpush1.bf16.msra.mxu0 %v10176_v38  ;;  %v6278_v38 = vld [vmem:[%s14947_s5 + $0x680] sm:$0xff] }
 0x488   : > { %10179 = vmatprep.subr.bf16.mxu0 %v10178_v17  ;;  %v6280_v17 = vld [vmem:[%s14947_s5 + $0x690] sm:$0xff] }
 0x489   : > { %v10216_v34 = vpack.c.bf16 %v6280_v17, %v6278_v38  ;;  %v6411_v38 = vld [vmem:[%s14947_s5 + $0x7d8] sm:$0xff] }
 0x48b   : > { %10181 = vmatpush1.bf16.msra.mxu0 %v10180_v52  ;;  %v6282_v52 = vld [vmem:[%s14947_s5 + $0x6a0] sm:$0xff] }
 0x48c   : > { %10183 = vmatprep.subr.bf16.mxu0 %v10182_v46  ;;  %v6284_v46 = vld [vmem:[%s14947_s5 + $0x6b0] sm:$0xff] }
 0x48d   : > { %v10220_v27 = vpack.c.bf16 %v6284_v46, %v6282_v52  ;;  %v6413_v52 = vld [vmem:[%s14947_s5 + $0x7e8] sm:$0xff]  ;;  %v6415_v46 = vld [vmem:[%s14947_s5 + $0x7f8] sm:$0xff] }
 0x48f   : > { %10185 = vmatpush1.bf16.msra.mxu0 %v10184_v53  ;;  %v6286_v53 = vld [vmem:[%s14947_s5 + $0x6c0] sm:$0xff] }
 0x490   : > { %10187 = vmatprep.subr.bf16.mxu0 %v10186_v61  ;;  %v6288_v61 = vld [vmem:[%s14947_s5 + $0x6d0] sm:$0xff] }
 0x491   : > { %v10224_v54 = vpack.c.bf16 %v6288_v61, %v6286_v53  ;;  %v10258_v61 = vpack.c.bf16 %v6415_v46, %v6413_v52  ;;  %v6530_v52 = vld [vmem:[%s14947_s5 + $0x8c0] sm:$0xff]  ;;  %v6532_v46 = vld [vmem:[%s14947_s5 + $0x8d0] sm:$0xff] }
 0x493   : > { %10189 = vmatpush1.bf16.msra.mxu0 %v10188_v49  ;;  %v6290_v49 = vld [vmem:[%s14947_s5 + $0x6e0] sm:$0xff] }
 0x494   : > { %10191 = vmatprep.subr.bf16.mxu0 %v10190_v7  ;;  %v6292_v7 = vld [vmem:[%s14947_s5 + $0x6f0] sm:$0xff] }
 0x495   : > { %v10228_v3 = vpack.c.bf16 %v6292_v7, %v6290_v49  ;;  %v6509_v49 = vld [vmem:[%s14947_s5 + $0x818] sm:$0xff]  ;;  %v10260_v7 = vpack.c.bf16 %v6414_v4, %v6412_v47 }
 0x497   : > { %10193 = vmatpush1.bf16.msra.mxu0 %v10192_v25  ;;  %v6384_v25 = vld [vmem:[%s14947_s5 + $0x700] sm:$0xff] }
 0x498   : > { %10195 = vmatprep.subr.bf16.mxu0 %v10194_v35  ;;  %v6386_v35 = vld [vmem:[%s14947_s5 + $0x710] sm:$0xff] }
 0x499   : > { %v10232_v56 = vpack.c.bf16 %v6386_v35, %v6384_v25  ;;  %v6513_v25 = vld [vmem:[%s14947_s5 + $0x838] sm:$0xff] }
 0x49b   : > { %10197 = vmatpush1.bf16.msra.mxu0 %v10196_v18  ;;  %v10234_v18 = vpack.c.bf16 %v6391_v41, %v6389_v39  ;;  %v5520_v39 = vmax.f32 %v13417_v16, 0.0 }
 0x49c   : > { %10199 = vmatprep.subr.bf16.mxu0 %v10198_v60  ;;  %v6388_v60 = vld [vmem:[%s14947_s5 + $0x720] sm:$0xff] }
 0x49d   : > { %v10236_v22 = vpack.c.bf16 %v6390_v9, %v6388_v60  ;;  %v6517_v60 = vld [vmem:[%s14947_s5 + $0x858] sm:$0xff] }
 0x49e   : > { %6237 = vmatmul.mubr.f32.vlgmr.msra.gmra.mrb[82].mxu0 %v5518_v32  ;;  %v6394_v32 = vld [vmem:[%s14947_s5 + $0x750] sm:$0xff] }
 0x49f   : > { %10201 = vmatpush1.bf16.msra.mxu0 %v10200_v6  ;;  %6358 = vmatprep.mubr.f32.mxu0 %v15095_v62  ;;  %v6392_v6 = vld [vmem:[%s14947_s5 + $0x740] sm:$0xff] }
 0x4a0   : > { %10203 = vmatprep.subr.bf16.mxu0 %v10202_v26  ;;  %v6397_v26 = vld [vmem:[%s14947_s5 + $0x768] sm:$0xff]  ;;  %v10240_v5 = vpack.c.bf16 %v6394_v32, %v6392_v6  ;;  %v10830_v6 = vmov 1966171168  }
 0x4a1   : > { %v10242_v33 = vpack.c.bf16 %v6399_v50, %v6397_v26  ;;  %v5637_v32 = vunpack.c.l.s4 %v10830_v6  ;;  %v10272_v26 = vpack.c.bf16 %v6516_v19, %v6514_v51  ;;  %v6755_v51 = vld [vmem:[%s14947_s5 + $0xa28] sm:$0xff]  ;;  %v6757_v19 = vld [vmem:[%s14947_s5 + $0xa38] sm:$0xff] }
 0x4a2   : > { %v10330_v6 = vpack.c.bf16 %v6757_v19, %v6755_v51  ;;  %v6997_v51 = vld [vmem:[%s14947_s5 + $0xc18] sm:$0xff] }
 0x4a3   : > { %10205 = vmatpush1.bf16.msra.mxu0 %v10204_v15  ;;  %v6398_v15 = vld [vmem:[%s14947_s5 + $0x770] sm:$0xff] }
 0x4a4   : > { %10207 = vmatprep.subr.bf16.mxu0 %v10206_v42  ;;  %v6401_v42 = vld [vmem:[%s14947_s5 + $0x788] sm:$0xff]  ;;  %v10244_v11 = vpack.c.bf16 %v6398_v15, %v6396_v12  ;;  %v6525_v15 = vld [vmem:[%s14947_s5 + $0x898] sm:$0xff] }
 0x4a5   : > { %v10246_v58 = vpack.c.bf16 %v6403_v23, %v6401_v42  ;;  %v6523_v12 = vld [vmem:[%s14947_s5 + $0x888] sm:$0xff]  ;;  %v5638_v42 = vunpack.c.0.s8 %v5637_v32  ;;  %v6754_v32 = vld [vmem:[%s14947_s5 + $0xa20] sm:$0xff] }
 0x4a7   : > { %10209 = vmatpush1.bf16.msra.mxu0 %v10208_v59  ;;  %v6402_v59 = vld [vmem:[%s14947_s5 + $0x790] sm:$0xff] }
 0x4a8   : > { %10211 = vmatprep.subr.bf16.mxu0 %v10210_v28  ;;  %v6405_v28 = vld [vmem:[%s14947_s5 + $0x7a8] sm:$0xff]  ;;  %v10248_v1 = vpack.c.bf16 %v6402_v59, %v6400_v37  ;;  %v6524_v37 = vld [vmem:[%s14947_s5 + $0x890] sm:$0xff] }
 0x4a9   : > { %v10250_v45 = vpack.c.bf16 %v6407_v57, %v6405_v28  ;;  %v6527_v59 = vld [vmem:[%s14947_s5 + $0x8a8] sm:$0xff]  ;;  %v6529_v28 = vld [vmem:[%s14947_s5 + $0x8b8] sm:$0xff]  ;;  %v15177_v57 = vld [vmem:[#allocation3_spill] sm:$0xff] }
 0x4ab   : > { %10213 = vmatpush1.bf16.msra.mxu0 %v10212_v2  ;;  %v6406_v2 = vld [vmem:[%s14947_s5 + $0x7b0] sm:$0xff] }
 0x4ac   : > { %10215 = vmatprep.subr.bf16.mxu0 %v10214_v44  ;;  %v6409_v44 = vld [vmem:[%s14947_s5 + $0x7c8] sm:$0xff]  ;;  %v10252_v17 = vpack.c.bf16 %v6406_v2, %v6404_v30  ;;  %v10282_v30 = vpack.c.bf16 %v6529_v28, %v6527_v59  ;;  %v6526_v2 = vld [vmem:[%s14947_s5 + $0x8a0] sm:$0xff]  ;;  %v6764_v59 = vld [vmem:[%s14947_s5 + $0xa70] sm:$0xff] }
 0x4ad   : > { %v10254_v21 = vpack.c.bf16 %v6411_v38, %v6409_v44  ;;  %v6528_v44 = vld [vmem:[%s14947_s5 + $0x8b0] sm:$0xff]  ;;  %v6531_v38 = vld [vmem:[%s14947_s5 + $0x8c8] sm:$0xff] }
 0x4ae   : > { %v6767_v28 = vld [vmem:[%s14947_s5 + $0xa88] sm:$0xff] }
 0x4af   : > { %10217 = vmatpush1.bf16.msra.mxu0 %v10216_v34  ;;  %v6410_v34 = vld [vmem:[%s14947_s5 + $0x7d0] sm:$0xff] }
 0x4b0   : > { %10219 = vmatprep.subr.bf16.mxu0 %v10218_v55 }
 0x4b3   : > { %10221 = vmatpush1.bf16.msra.mxu0 %v10220_v27 }
 0x4b4   : > { %10223 = vmatprep.subr.bf16.mxu0 %v10222_v20  ;;  %v10256_v20 = vpack.c.bf16 %v6410_v34, %v6408_v8  ;;  %v10284_v8 = vpack.c.bf16 %v6528_v44, %v6526_v2  ;;  %v6766_v44 = vld [vmem:[%s14947_s5 + $0xa80] sm:$0xff] }
 0x4b7   : > { %10225 = vmatpush1.bf16.msra.mxu0 %v10224_v54 }
 0x4b8   : > { %10227 = vmatprep.subr.bf16.mxu0 %v10226_v29  ;;  %v6507_v29 = vld [vmem:[%s14947_s5 + $0x808] sm:$0xff] }
 0x4b9   : > { %v10262_v10 = vpack.c.bf16 %v6509_v49, %v6507_v29  ;;  %v10288_v29 = vpack.c.bf16 %v6532_v46, %v6530_v52  ;;  %v6770_v52 = vld [vmem:[%s14947_s5 + $0xaa0] sm:$0xff]  ;;  %v6772_v46 = vld [vmem:[%s14947_s5 + $0xab0] sm:$0xff] }
 0x4bb   : > { %10229 = vmatpush1.bf16.msra.mxu0 %v10228_v3  ;;  %v6508_v3 = vld [vmem:[%s14947_s5 + $0x810] sm:$0xff] }
 0x4bc   : > { %10231 = vmatprep.subr.bf16.mxu0 %v10230_v24  ;;  %v6511_v24 = vld [vmem:[%s14947_s5 + $0x828] sm:$0xff]  ;;  %v10264_v35 = vpack.c.bf16 %v6508_v3, %v6506_v40  ;;  %v6534_v40 = vld [vmem:[%s14947_s5 + $0x8e0] sm:$0xff]  ;;  %v6536_v3 = vld [vmem:[%s14947_s5 + $0x8f0] sm:$0xff] }
 0x4bd   : > { %v10266_v41 = vpack.c.bf16 %v6513_v25, %v6511_v24 }
 0x4be   : > { %6359 = vmatmul.mubr.f32.vlgmr.msra.gmra.mrb[84].mxu0 %v5519_v63  ;;  %v6512_v63 = vld [vmem:[%s14947_s5 + $0x830] sm:$0xff] }
 0x4bf   : > { %10233 = vmatpush1.bf16.msra.mxu0 %v10232_v56  ;;  %6480 = vmatprep.mubr.f32.mxu0 %v15095_v62  ;;  %v6510_v56 = vld [vmem:[%s14947_s5 + $0x820] sm:$0xff] }
 0x4c0   : > { %10235 = vmatprep.subr.bf16.mxu0 %v10234_v18  ;;  %v6515_v18 = vld [vmem:[%s14947_s5 + $0x848] sm:$0xff]  ;;  %v10268_v16 = vpack.c.bf16 %v6512_v63, %v6510_v56  ;;  %v10292_v63 = vpack.c.bf16 %v6536_v3, %v6534_v40 }
 0x4c1   : > { %v10270_v9 = vpack.c.bf16 %v6517_v60, %v6515_v18  ;;  %v6750_v60 = vld [vmem:[%s14947_s5 + $0xa00] sm:$0xff] }
 0x4c3   : > { %10237 = vmatpush1.bf16.msra.mxu0 %v10236_v22  ;;  %v6519_v22 = vld [vmem:[%s14947_s5 + $0x868] sm:$0xff] }
 0x4c4   : > { %10239 = vmatprep.subr.bf16.mxu0 %v10238_v31  ;;  %v6521_v31 = vld [vmem:[%s14947_s5 + $0x878] sm:$0xff] }
 0x4c5   : > { %v10274_v50 = vpack.c.bf16 %v6521_v31, %v6519_v22  ;;  %v5521_v31 = vmax.f32 %v13390_v0, 0.0 }
 0x4c7   : > { %10241 = vmatpush1.bf16.msra.mxu0 %v10240_v5  ;;  %v6518_v5 = vld [vmem:[%s14947_s5 + $0x860] sm:$0xff] }
 0x4c8   : > { %10243 = vmatprep.subr.bf16.mxu0 %v10242_v33  ;;  %v14136_v55 = vpop.f32.mrb[72].mxu0  ;;  %v14146_v48 = vpop.f32.mrb[8].mxu1  ;;  %v6520_v33 = vld [vmem:[%s14947_s5 + $0x870] sm:$0xff] }
 0x4c9   : > { %v14144_v13 = vpop.f32.mrb[73].mxu0  ;;  %v14150_v53 = vpop.f32.mrb[9].mxu1  ;;  %v10276_v23 = vpack.c.bf16 %v6520_v33, %v6518_v5  ;;  %v6761_v5 = vld [vmem:[%s14947_s5 + $0xa58] sm:$0xff] }
 0x4ca   : > { %v5635_v27 = vcombine.low %v14136_v55, %v14144_v13  ;;  %v6733_v54 = vcombine.low %v14146_v48, %v14150_v53  ;;  %v6537_v55 = vld [vmem:[%s14947_s5 + $0x8f8] sm:$0xff] }
 0x4cb   : > { %10245 = vmatpush1.bf16.msra.mxu0 %v10244_v11  ;;  %v10278_v11 = vpack.c.bf16 %v6525_v15, %v6523_v12  ;;  %v6758_v12 = vld [vmem:[%s14947_s5 + $0xa40] sm:$0xff]  ;;  %v6760_v15 = vld [vmem:[%s14947_s5 + $0xa50] sm:$0xff] }
 0x4cc   : > { %10247 = vmatprep.subr.bf16.mxu0 %v10246_v58  ;;  %v6522_v58 = vld [vmem:[%s14947_s5 + $0x880] sm:$0xff] }
 0x4cf   : > { %10249 = vmatpush1.bf16.msra.mxu0 %v10248_v1  ;;  %v14229_v1 = vsub.s32 %v5638_v42, %v15177_v57  ;;  %v6763_v42 = vld [vmem:[%s14947_s5 + $0xa68] sm:$0xff] }
 0x4d0   : > { %10251 = vmatprep.subr.bf16.mxu0 %v10250_v45  ;;  %v10280_v45 = vpack.c.bf16 %v6524_v37, %v6522_v58  ;;  %v6762_v37 = vld [vmem:[%s14947_s5 + $0xa60] sm:$0xff] }
 0x4d3   : > { %10253 = vmatpush1.bf16.msra.mxu0 %v10252_v17  ;;  %v6533_v17 = vld [vmem:[%s14947_s5 + $0x8d8] sm:$0xff] }
 0x4d4   : > { %10255 = vmatprep.subr.bf16.mxu0 %v10254_v21  ;;  %v5642_v21 = vrot.slane %v5635_v27, %v14229_v1  ;;  %v10286_v34 = vpack.c.bf16 %v6533_v17, %v6531_v38  ;;  %v6768_v38 = vld [vmem:[%s14947_s5 + $0xa90] sm:$0xff]  ;;  %v6771_v17 = vld [vmem:[%s14947_s5 + $0xaa8] sm:$0xff] }
 0x4d6   : > { %v5649_v47 = vrot.slane %v5642_v21, %v14229_v1  ;;  %v6773_v21 = vld [vmem:[%s14947_s5 + $0xab8] sm:$0xff] }
 0x4d7   : > { %10257 = vmatpush1.bf16.msra.mxu0 %v10256_v20 }
 0x4d8   : > { %10259 = vmatprep.subr.bf16.mxu0 %v10258_v61  ;;  %v6535_v61 = vld [vmem:[%s14947_s5 + $0x8e8] sm:$0xff] }
 0x4db   : > { %10261 = vmatpush1.bf16.msra.mxu0 %v10260_v7  ;;  %v5529_v7 = vld [vmem:[%s14948_s6] sm:$0x3] }
 0x4dc   : > { %10263 = vmatprep.subr.bf16.mxu0 %v10262_v10  ;;  %v10290_v10 = vpack.c.bf16 %v6537_v55, %v6535_v61  ;;  %v6777_v61 = vld [vmem:[%s14947_s5 + $0xad8] sm:$0xff]  ;;  %v10348_v55 = vpack.c.bf16 %v6772_v46, %v6770_v52  ;;  %v7012_v52 = vld [vmem:[%s14947_s5 + $0xc90] sm:$0xff]  ;;  %v7015_v46 = vld [vmem:[%s14947_s5 + $0xca8] sm:$0xff] }
 0x4de   : > { %6481 = vmatmul.mubr.f32.vlgmr.msra.gmra.mrb[86].mxu0 %v5520_v39  ;;  %v6753_v39 = vld [vmem:[%s14947_s5 + $0xa18] sm:$0xff] }
 0x4df   : > { %10265 = vmatpush1.bf16.msra.mxu0 %v10264_v35  ;;  %6602 = vmatprep.mubr.f32.mxu0 %v15095_v62  ;;  %v6751_v35 = vld [vmem:[%s14947_s5 + $0xa08] sm:$0xff] }
 0x4e0   : > { %10267 = vmatprep.subr.bf16.mxu0 %v10266_v41  ;;  %v5651_v41 = vadd.f32 %v5649_v47, %v5529_v7  ;;  %v10326_v18 = vpack.c.bf16 %v6753_v39, %v6751_v35  ;;  %v6774_v47 = vld [vmem:[%s14947_s5 + $0xac0] sm:$0xff]  ;;  %v6779_v7 = vld [vmem:[%s14947_s5 + $0xae8] sm:$0xff] }
 0x4e3   : > { %10269 = vmatpush1.bf16.msra.mxu0 %v10268_v16  ;;  %v6752_v16 = vld [vmem:[%s14947_s5 + $0xa10] sm:$0xff] }
 0x4e4   : > { %10271 = vmatprep.subr.bf16.mxu0 %v10270_v9  ;;  %v10328_v22 = vpack.c.bf16 %v6752_v16, %v6750_v60  ;;  %v6995_v16 = vld [vmem:[%s14947_s5 + $0xc08] sm:$0xff] }
 0x4e7   : > { %10273 = vmatpush1.bf16.msra.mxu0 %v10272_v26  ;;  %v6756_v26 = vld [vmem:[%s14947_s5 + $0xa30] sm:$0xff] }
 0x4e8   : > { %10275 = vmatprep.subr.bf16.mxu0 %v10274_v50  ;;  %v6759_v50 = vld [vmem:[%s14947_s5 + $0xa48] sm:$0xff]  ;;  %v10332_v0 = vpack.c.bf16 %v6756_v26, %v6754_v32  ;;  %v6996_v32 = vld [vmem:[%s14947_s5 + $0xc10] sm:$0xff] }
 0x4e9   : > { %v10334_v33 = vpack.c.bf16 %v6761_v5, %v6759_v50  ;;  %v6999_v50 = vld [vmem:[%s14947_s5 + $0xc28] sm:$0xff]  ;;  %v7001_v5 = vld [vmem:[%s14947_s5 + $0xc38] sm:$0xff] }
 0x4eb   : > { %10277 = vmatpush1.bf16.msra.mxu0 %v10276_v23  ;;  %v6765_v23 = vld [vmem:[%s14947_s5 + $0xa78] sm:$0xff] }
 0x4ec   : > { %10279 = vmatprep.subr.bf16.mxu0 %v10278_v11  ;;  %v10336_v11 = vpack.c.bf16 %v6760_v15, %v6758_v12  ;;  %v10338_v58 = vpack.c.bf16 %v6765_v23, %v6763_v42  ;;  %v10394_v12 = vpack.c.bf16 %v7001_v5, %v6999_v50  ;;  %v6998_v15 = vld [vmem:[%s14947_s5 + $0xc20] sm:$0xff]  ;;  %v7003_v42 = vld [vmem:[%s14947_s5 + $0xc48] sm:$0xff]  ;;  %v7005_v23 = vld [vmem:[%s14947_s5 + $0xc58] sm:$0xff] }
 0x4ed   : > { %v7239_v5 = vld [vmem:[%s14947_s5 + $0xe08] sm:$0xff] }
 0x4ef   : > { %10281 = vmatpush1.bf16.msra.mxu0 %v10280_v45  ;;  %v6769_v45 = vld [vmem:[%s14947_s5 + $0xa98] sm:$0xff] }
 0x4f0   : > { %10283 = vmatprep.subr.bf16.mxu0 %v10282_v30  ;;  %v10340_v30 = vpack.c.bf16 %v6764_v59, %v6762_v37  ;;  %v10342_v2 = vpack.c.bf16 %v6769_v45, %v6767_v28  ;;  %v7004_v37 = vld [vmem:[%s14947_s5 + $0xc50] sm:$0xff]  ;;  %v7007_v59 = vld [vmem:[%s14947_s5 + $0xc68] sm:$0xff]  ;;  %v7009_v28 = vld [vmem:[%s14947_s5 + $0xc78] sm:$0xff] }
 0x4f1   : > { %v5750_v20 = vpop.f32.mrb[74].mxu0 }
 0x4f2   : > { %v5752_v13 = vpop.f32.mrb[75].mxu0  ;;  %v14259_v27 = vpop.f32.mrb[10].mxu1 }
 0x4f3   : > { %v5757_v4 = vcombine.low %v5750_v20, %v5752_v13  ;;  %10285 = vmatpush1.bf16.msra.mxu0 %v10284_v8  ;;  %v14262_v49 = vpop.f32.mrb[11].mxu1  ;;  %v10344_v8 = vpack.c.bf16 %v6768_v38, %v6766_v44  ;;  %v6775_v20 = vld [vmem:[%s14947_s5 + $0xac8] sm:$0xff]  ;;  %v7008_v44 = vld [vmem:[%s14947_s5 + $0xc70] sm:$0xff] }
 0x4f4   : > { %10287 = vmatprep.subr.bf16.mxu0 %v10286_v34  ;;  %v6977_v24 = vcombine.low %v14259_v27, %v14262_v49  ;;  %v10346_v34 = vpack.c.bf16 %v6773_v21, %v6771_v17  ;;  %v10350_v13 = vpack.c.bf16 %v6777_v61, %v6775_v20  ;;  %v7011_v38 = vld [vmem:[%s14947_s5 + $0xc88] sm:$0xff]  ;;  %v7013_v17 = vld [vmem:[%s14947_s5 + $0xc98] sm:$0xff] }
 0x4f5   : > { %v5764_v25 = vrot.slane %v5757_v4, %v14229_v1  ;;  %v6776_v4 = vld [vmem:[%s14947_s5 + $0xad0] sm:$0xff]  ;;  %v7017_v20 = vld [vmem:[%s14947_s5 + $0xcb8] sm:$0xff] }
 0x4f6   : > { %v10352_v35 = vpack.c.bf16 %v6776_v4, %v6774_v47  ;;  %v7016_v47 = vld [vmem:[%s14947_s5 + $0xcb0] sm:$0xff]  ;;  %v7019_v4 = vld [vmem:[%s14947_s5 + $0xcc8] sm:$0xff]  ;;  %v6984_v48 = vrot.slane %v6977_v24, %v14229_v1 }
 0x4f7   : > { %v5771_v56 = vrot.slane %v5764_v25, %v14229_v1  ;;  %10289 = vmatpush1.bf16.msra.mxu0 %v10288_v29 }
 0x4f8   : > { %10291 = vmatprep.subr.bf16.mxu0 %v10290_v10  ;;  %v6781_v10 = vld [vmem:[%s14947_s5 + $0xaf8] sm:$0xff] }
 0x4f9   : > { %v14289_v9 = vadd.f32 %v5771_v56, %v5651_v41  ;;  %v10354_v41 = vpack.c.bf16 %v6781_v10, %v6779_v7  ;;  %v6778_v56 = vld [vmem:[%s14947_s5 + $0xae0] sm:$0xff] }
 0x4fb   : > { %10293 = vmatpush1.bf16.msra.mxu0 %v10292_v63  ;;  %v6780_v63 = vld [vmem:[%s14947_s5 + $0xaf0] sm:$0xff] }
 0x4fc   : > { %10327 = vmatprep.subr.bf16.mxu0 %v10326_v18 }
 0x4fe   : > { %6603 = vmatmul.mubr.f32.vlgmr.msra.gmra.mrb[88].mxu0 %v5521_v31  ;;  %v10390_v31 = vpack.c.bf16 %v6997_v51, %v6995_v16 }
 0x4ff   : > { %10329 = vmatpush1.bf16.msra.mxu0 %v10328_v22  ;;  %6846 = vmatprep.mubr.f32.mxu0 %v15095_v62  ;;  %v10356_v22 = vpack.c.bf16 %v6780_v63, %v6778_v56  ;;  %v7025_v56 = vld [vmem:[%s14947_s5 + $0xcf8] sm:$0xff] }
 0x500   : > { %10331 = vmatprep.subr.bf16.mxu0 %v10330_v6  ;;  %v6994_v6 = vld [vmem:[%s14947_s5 + $0xc00] sm:$0xff] }
 0x503   : > { %10333 = vmatpush1.bf16.msra.mxu0 %v10332_v0  ;;  %v10392_v0 = vpack.c.bf16 %v6996_v32, %v6994_v6  ;;  %v7024_v6 = vld [vmem:[%s14947_s5 + $0xcf0] sm:$0xff] }
 0x504   : > { %10335 = vmatprep.subr.bf16.mxu0 %v10334_v33  ;;  %v5523_v33 = vmax.f32 %v13393_v43, 0.0 }
 0x507   : > { %10337 = vmatpush1.bf16.msra.mxu0 %v10336_v11  ;;  %v10398_v11 = vpack.c.bf16 %v7005_v23, %v7003_v42  ;;  %v7240_v42 = vld [vmem:[%s14947_s5 + $0xe10] sm:$0xff] }
 0x508   : > { %10339 = vmatprep.subr.bf16.mxu0 %v10338_v58  ;;  %v7002_v58 = vld [vmem:[%s14947_s5 + $0xc40] sm:$0xff] }
 0x509   : > { %v10400_v45 = vpack.c.bf16 %v7004_v37, %v7002_v58  ;;  %v5525_v37 = vmax.f32 %v13405_v36, 0.0 }
 0x50b   : > { %10341 = vmatpush1.bf16.msra.mxu0 %v10340_v30  ;;  %v10402_v30 = vpack.c.bf16 %v7009_v28, %v7007_v59  ;;  %v7242_v28 = vld [vmem:[%s14947_s5 + $0xe20] sm:$0xff] }
 0x50c   : > { %10343 = vmatprep.subr.bf16.mxu0 %v10342_v2  ;;  %v7006_v2 = vld [vmem:[%s14947_s5 + $0xc60] sm:$0xff] }
 0x50d   : > { %v10404_v21 = vpack.c.bf16 %v7008_v44, %v7006_v2  ;;  %v7246_v44 = vld [vmem:[%s14947_s5 + $0xe40] sm:$0xff] }
 0x50f   : > { %10345 = vmatpush1.bf16.msra.mxu0 %v10344_v8  ;;  %v10406_v8 = vpack.c.bf16 %v7013_v17, %v7011_v38  ;;  %v7248_v38 = vld [vmem:[%s14947_s5 + $0xe50] sm:$0xff]  ;;  %v7251_v17 = vld [vmem:[%s14947_s5 + $0xe68] sm:$0xff] }
 0x510   : > { %10347 = vmatprep.subr.bf16.mxu0 %v10346_v34  ;;  %v7010_v34 = vld [vmem:[%s14947_s5 + $0xc80] sm:$0xff] }
 0x511   : > { %v5872_v29 = vpop.f32.mrb[76].mxu0  ;;  %v10408_v61 = vpack.c.bf16 %v7012_v52, %v7010_v34  ;;  %v7250_v34 = vld [vmem:[%s14947_s5 + $0xe60] sm:$0xff]  ;;  %v7252_v52 = vld [vmem:[%s14947_s5 + $0xe70] sm:$0xff] }
 0x512   : > { %v5874_v40 = vpop.f32.mrb[77].mxu0  ;;  %v14371_v3 = vpop.f32.mrb[12].mxu1 }
 0x513   : > { %v5879_v25 = vcombine.low %v5872_v29, %v5874_v40  ;;  %10349 = vmatpush1.bf16.msra.mxu0 %v10348_v55  ;;  %v14373_v39 = vpop.f32.mrb[13].mxu1  ;;  %v10410_v55 = vpack.c.bf16 %v7017_v20, %v7015_v46  ;;  %v7021_v29 = vld [vmem:[%s14947_s5 + $0xcd8] sm:$0xff]  ;;  %v7018_v40 = vld [vmem:[%s14947_s5 + $0xcc0] sm:$0xff]  ;;  %v7255_v46 = vld [vmem:[%s14947_s5 + $0xe88] sm:$0xff] }
 0x514   : > { %10351 = vmatprep.subr.bf16.mxu0 %v10350_v13  ;;  %v7221_v18 = vcombine.low %v14371_v3, %v14373_v39  ;;  %v7014_v13 = vld [vmem:[%s14947_s5 + $0xca0] sm:$0xff]  ;;  %v10414_v10 = vpack.c.bf16 %v7021_v29, %v7019_v4  ;;  %v7257_v20 = vld [vmem:[%s14947_s5 + $0xe98] sm:$0xff]  ;;  %v7259_v4 = vld [vmem:[%s14947_s5 + $0xea8] sm:$0xff] }
 0x515   : > { %v5886_v60 = vrot.slane %v5879_v25, %v14229_v1  ;;  %v10412_v7 = vpack.c.bf16 %v7016_v47, %v7014_v13  ;;  %v7020_v25 = vld [vmem:[%s14947_s5 + $0xcd0] sm:$0xff]  ;;  %v7254_v13 = vld [vmem:[%s14947_s5 + $0xe80] sm:$0xff]  ;;  %v7261_v29 = vld [vmem:[%s14947_s5 + $0xeb8] sm:$0xff] }
 0x516   : > { %v10416_v51 = vpack.c.bf16 %v7020_v25, %v7018_v40  ;;  %v7256_v47 = vld [vmem:[%s14947_s5 + $0xe90] sm:$0xff]  ;;  %v7258_v40 = vld [vmem:[%s14947_s5 + $0xea0] sm:$0xff] }
 0x517   : > { %v5893_v19 = vrot.slane %v5886_v60, %v14229_v1  ;;  %10353 = vmatpush1.bf16.msra.mxu0 %v10352_v35  ;;  %v7260_v25 = vld [vmem:[%s14947_s5 + $0xeb0] sm:$0xff] }
 0x518   : > { %10355 = vmatprep.subr.bf16.mxu0 %v10354_v41  ;;  %v7023_v41 = vld [vmem:[%s14947_s5 + $0xce8] sm:$0xff] }
 0x519   : > { %v14398_v26 = vadd.f32 %v5893_v19, %v14289_v9  ;;  %v7000_v9 = vld [vmem:[%s14947_s5 + $0xc30] sm:$0xff] }
 0x51a   : > { %v10396_v43 = vpack.c.bf16 %v7000_v9, %v6998_v15  ;;  %v7238_v9 = vld [vmem:[%s14947_s5 + $0xe00] sm:$0xff] }
 0x51b   : > { %10357 = vmatpush1.bf16.msra.mxu0 %v10356_v22  ;;  %v10418_v22 = vpack.c.bf16 %v7025_v56, %v7023_v41  ;;  %v10456_v58 = vpack.c.bf16 %v7240_v42, %v7238_v9  ;;  %v7265_v41 = vld [vmem:[%s14947_s5 + $0xed8] sm:$0xff]  ;;  %v10476_v56 = vpack.c.bf16 %v7260_v25, %v7258_v40  ;;  %v7497_v40 = vld [vmem:[%s14949_s7 + $0x70] sm:$0xff] }
 0x51c   : > { %10391 = vmatprep.subr.bf16.mxu0 %v10390_v31  ;;  %v7022_v31 = vld [vmem:[%s14947_s5 + $0xce0] sm:$0xff] }
 0x51e   : > { %6847 = vmatmul.mubr.f32.vlgmr.msra.gmra.mrb[90].mxu0 %v5523_v33 }
 0x51f   : > { %10393 = vmatpush1.bf16.msra.mxu0 %v10392_v0  ;;  %7090 = vmatprep.mubr.f32.mxu0 %v15095_v62  ;;  %v7241_v0 = vld [vmem:[%s14947_s5 + $0xe18] sm:$0xff] }
 0x520   : > { %10395 = vmatprep.subr.bf16.mxu0 %v10394_v12  ;;  %v10420_v12 = vpack.c.bf16 %v7024_v6, %v7022_v31  ;;  %v10454_v15 = vpack.c.bf16 %v7241_v0, %v7239_v5  ;;  %v7267_v31 = vld [vmem:[%s14947_s5 + $0xee8] sm:$0xff]  ;;  %v7269_v6 = vld [vmem:[%s14947_s5 + $0xef8] sm:$0xff] }
 0x523   : > { %10397 = vmatpush1.bf16.msra.mxu0 %v10396_v43  ;;  %v7243_v43 = vld [vmem:[%s14947_s5 + $0xe28] sm:$0xff] }
 0x524   : > { %10399 = vmatprep.subr.bf16.mxu0 %v10398_v11  ;;  %v7245_v11 = vld [vmem:[%s14947_s5 + $0xe38] sm:$0xff] }
 0x525   : > { %v10458_v59 = vpack.c.bf16 %v7245_v11, %v7243_v43 }
 0x527   : > { %10401 = vmatpush1.bf16.msra.mxu0 %v10400_v45  ;;  %v7247_v45 = vld [vmem:[%s14947_s5 + $0xe48] sm:$0xff] }
 0x528   : > { %10403 = vmatprep.subr.bf16.mxu0 %v10402_v30  ;;  %v7249_v30 = vld [vmem:[%s14947_s5 + $0xe58] sm:$0xff] }
 0x529   : > { %v10462_v2 = vpack.c.bf16 %v7249_v30, %v7247_v45 }
 0x52b   : > { %10405 = vmatpush1.bf16.msra.mxu0 %v10404_v21  ;;  %v7253_v21 = vld [vmem:[%s14947_s5 + $0xe78] sm:$0xff] }
 0x52c   : > { %10407 = vmatprep.subr.bf16.mxu0 %v10406_v8  ;;  %v10466_v8 = vpack.c.bf16 %v7253_v21, %v7251_v17  ;;  %v7490_v17 = vld [vmem:[%s14949_s7 + $0x38] sm:$0xff] }
 0x52f   : > { %10409 = vmatpush1.bf16.msra.mxu0 %v10408_v61  ;;  %v10468_v61 = vpack.c.bf16 %v7252_v52, %v7250_v34  ;;  %v7489_v34 = vld [vmem:[%s14949_s7 + $0x30] sm:$0xff]  ;;  %v7492_v52 = vld [vmem:[%s14949_s7 + $0x48] sm:$0xff] }
 0x530   : > { %10411 = vmatprep.subr.bf16.mxu0 %v10410_v55  ;;  %v10470_v55 = vpack.c.bf16 %v7257_v20, %v7255_v46  ;;  %v7494_v46 = vld [vmem:[%s14949_s7 + $0x58] sm:$0xff] }
 0x531   : > { %v5994_v35 = vpop.f32.mrb[78].mxu0 }
 0x532   : > { %v5996_v63 = vpop.f32.mrb[79].mxu0  ;;  %v14480_v60 = vpop.f32.mrb[14].mxu1 }
 0x533   : > { %v6001_v16 = vcombine.low %v5994_v35, %v5996_v63  ;;  %10413 = vmatpush1.bf16.msra.mxu0 %v10412_v7  ;;  %v14482_v19 = vpop.f32.mrb[15].mxu1  ;;  %v10472_v7 = vpack.c.bf16 %v7256_v47, %v7254_v13  ;;  %v7263_v35 = vld [vmem:[%s14947_s5 + $0xec8] sm:$0xff]  ;;  %v7493_v13 = vld [vmem:[%s14949_s7 + $0x50] sm:$0xff] }
 0x534   : > { %10415 = vmatprep.subr.bf16.mxu0 %v10414_v10  ;;  %v7465_v32 = vcombine.low %v14480_v60, %v14482_v19  ;;  %v10474_v10 = vpack.c.bf16 %v7261_v29, %v7259_v4  ;;  %v10478_v63 = vpack.c.bf16 %v7265_v41, %v7263_v35  ;;  %v7496_v47 = vld [vmem:[%s14949_s7 + $0x68] sm:$0xff]  ;;  %v7498_v4 = vld [vmem:[%s14949_s7 + $0x78] sm:$0xff]  ;;  %v7655_v60 = vld [vmem:[%s14951_s9 + $0x60] sm:$0xff] }
 0x535   : > { %v6008_v50 = vrot.slane %v6001_v16, %v14229_v1  ;;  %v7262_v16 = vld [vmem:[%s14947_s5 + $0xec0] sm:$0xff]  ;;  %v7656_v19 = vld [vmem:[%s14951_s9 + $0x68] sm:$0xff] }
 0x537   : > { %v6015_v33 = vrot.slane %v6008_v50, %v14229_v1  ;;  %10417 = vmatpush1.bf16.msra.mxu0 %v10416_v51  ;;  %v7264_v51 = vld [vmem:[%s14947_s5 + $0xed0] sm:$0xff] }
 0x538   : > { %10419 = vmatprep.subr.bf16.mxu0 %v10418_v22  ;;  %v10480_v0 = vpack.c.bf16 %v7264_v51, %v7262_v16 }
 0x539   : > { %v14507_v23 = vadd.f32 %v6015_v33, %v14398_v26  ;;  %v7244_v26 = vld [vmem:[%s14947_s5 + $0xe30] sm:$0xff]  ;;  %v10482_v33 = vpack.c.bf16 %v7269_v6, %v7267_v31  ;;  %v7502_v31 = vld [vmem:[%s14949_s7 + $0x98] sm:$0xff]  ;;  %v7499_v6 = vld [vmem:[%s14949_s7 + $0x80] sm:$0xff] }
 0x53a   : > { %v10460_v36 = vpack.c.bf16 %v7244_v26, %v7242_v28 }
 0x53b   : > { %10421 = vmatpush1.bf16.msra.mxu0 %v10420_v12  ;;  %v7266_v12 = vld [vmem:[%s14947_s5 + $0xee0] sm:$0xff] }
 0x53c   : > { %10455 = vmatprep.subr.bf16.mxu0 %v10454_v15  ;;  %v7268_v15 = vld [vmem:[%s14947_s5 + $0xef0] sm:$0xff] }
 0x53d   : > { %v10484_v43 = vpack.c.bf16 %v7268_v15, %v7266_v12 }
 0x53e   : > { %7091 = vmatmul.mubr.f32.vlgmr.msra.gmra.mrb[92].mxu0 %v5525_v37 }
 0x53f   : > { %10457 = vmatpush1.bf16.msra.mxu0 %v10456_v58  ;;  %7334 = vmatprep.mubr.f32.mxu0 %v15095_v62  ;;  %v10464_v62 = vpack.c.bf16 %v7248_v38, %v7246_v44  ;;  %v5527_v58 = vmax.f32 %v13408_v14, 0.0  ;;  %v7483_v14 = vld [vmem:[%s14949_s7] sm:$0xff]  ;;  %v7485_v44 = vld [vmem:[%s14949_s7 + $0x10] sm:$0xff]  ;;  %v7488_v38 = vld [vmem:[%s14949_s7 + $0x28] sm:$0xff] }
 0x540   : > { %10459 = vmatprep.subr.bf16.mxu0 %v10458_v59  ;;  %v10520_v21 = vpack.c.bf16 %v7485_v44, %v7483_v14  ;;  %v7513_v14 = vld [vmem:[%s14949_s7 + $0xf0] sm:$0xff]  ;;  %v7518_v44 = vld [vmem:[%s14949_s7 + $0x118] sm:$0xff] }
 0x543   : > { %10461 = vmatpush1.bf16.msra.mxu0 %v10460_v36  ;;  %v7484_v36 = vld [vmem:[%s14949_s7 + $0x8] sm:$0xff] }
 0x544   : > { %10463 = vmatprep.subr.bf16.mxu0 %v10462_v2 }
 0x547   : > { %10465 = vmatpush1.bf16.msra.mxu0 %v10464_v62  ;;  %v10522_v62 = vpack.c.bf16 %v7490_v17, %v7488_v38 }
 0x548   : > { %10467 = vmatprep.subr.bf16.mxu0 %v10466_v8  ;;  %v7487_v8 = vld [vmem:[%s14949_s7 + $0x20] sm:$0xff] }
 0x549   : > { %v10524_v20 = vpack.c.bf16 %v7489_v34, %v7487_v8  ;;  %v7520_v8 = vld [vmem:[%s14949_s7 + $0x128] sm:$0xff]  ;;  %v7522_v34 = vld [vmem:[%s14949_s7 + $0x138] sm:$0xff] }
 0x54b   : > { %10469 = vmatpush1.bf16.msra.mxu0 %v10468_v61  ;;  %v10526_v61 = vpack.c.bf16 %v7494_v46, %v7492_v52  ;;  %v10554_v46 = vpack.c.bf16 %v7522_v34, %v7520_v8  ;;  %v7643_v8 = vld [vmem:[%s14951_s9] sm:$0xff] }
 0x54c   : > { %10471 = vmatprep.subr.bf16.mxu0 %v10470_v55  ;;  %v7491_v55 = vld [vmem:[%s14949_s7 + $0x40] sm:$0xff] }
 0x54d   : > { %v10528_v29 = vpack.c.bf16 %v7493_v13, %v7491_v55  ;;  %v7524_v55 = vld [vmem:[%s14949_s7 + $0x148] sm:$0xff]  ;;  %v7526_v13 = vld [vmem:[%s14949_s7 + $0x158] sm:$0xff] }
 0x54f   : > { %10473 = vmatpush1.bf16.msra.mxu0 %v10472_v7  ;;  %v10530_v7 = vpack.c.bf16 %v7498_v4, %v7496_v47  ;;  %v10558_v4 = vpack.c.bf16 %v7526_v13, %v7524_v55  ;;  %v7645_v13 = vld [vmem:[%s14951_s9 + $0x10] sm:$0xff] }
 0x550   : > { %10475 = vmatprep.subr.bf16.mxu0 %v10474_v10  ;;  %v7495_v10 = vld [vmem:[%s14949_s7 + $0x60] sm:$0xff] }
 0x551   : > { %v6116_v22 = vpop.f32.mrb[80].mxu0  ;;  %v10532_v25 = vpack.c.bf16 %v7497_v40, %v7495_v10  ;;  %v7528_v10 = vld [vmem:[%s14949_s7 + $0x168] sm:$0xff]  ;;  %v7530_v40 = vld [vmem:[%s14949_s7 + $0x178] sm:$0xff] }
 0x552   : > { %v6118_v50 = vpop.f32.mrb[81].mxu0 }
 0x553   : > { %v6123_v5 = vcombine.low %v6116_v22, %v6118_v50  ;;  %10477 = vmatpush1.bf16.msra.mxu0 %v10476_v56  ;;  %v7500_v22 = vld [vmem:[%s14949_s7 + $0x88] sm:$0xff] }
 0x554   : > { %10479 = vmatprep.subr.bf16.mxu0 %v10478_v63  ;;  %v10534_v50 = vpack.c.bf16 %v7502_v31, %v7500_v22 }
 0x555   : > { %v6130_v9 = vrot.slane %v6123_v5, %v14229_v1  ;;  %v7501_v5 = vld [vmem:[%s14949_s7 + $0x90] sm:$0xff] }
 0x556   : > { %v10536_v12 = vpack.c.bf16 %v7501_v5, %v7499_v6 }
 0x557   : > { %v6137_v42 = vrot.slane %v6130_v9, %v14229_v1  ;;  %10481 = vmatpush1.bf16.msra.mxu0 %v10480_v0  ;;  %v7504_v0 = vld [vmem:[%s14949_s7 + $0xa8] sm:$0xff]  ;;  %v7503_v9 = vld [vmem:[%s14949_s7 + $0xa0] sm:$0xff] }
 0x558   : > { %10483 = vmatprep.subr.bf16.mxu0 %v10482_v33  ;;  %v7506_v33 = vld [vmem:[%s14949_s7 + $0xb8] sm:$0xff] }
 0x559   : > { %v6139_v11 = vadd.f32 %v6137_v42, %v14507_v23  ;;  %v7486_v23 = vld [vmem:[%s14949_s7 + $0x18] sm:$0xff]  ;;  %v10538_v15 = vpack.c.bf16 %v7506_v33, %v7504_v0  ;;  %v7505_v42 = vld [vmem:[%s14949_s7 + $0xb0] sm:$0xff]  ;;  %v7532_v0 = vld [vmem:[%s14949_s7 + $0x188] sm:$0xff] }
 0x55a   : > { %v10518_v2 = vpack.c.bf16 %v7486_v23, %v7484_v36  ;;  %v7511_v23 = vld [vmem:[%s14949_s7 + $0xe0] sm:$0xff]  ;;  %v7534_v33 = vld [vmem:[%s14949_s7 + $0x198] sm:$0xff] }
 0x55b   : > { %10485 = vmatpush1.bf16.msra.mxu0 %v10484_v43  ;;  %v7508_v43 = vld [vmem:[%s14949_s7 + $0xc8] sm:$0xff]  ;;  %v10548_v38 = vpack.c.bf16 %v7513_v14, %v7511_v23  ;;  %v7546_v14 = vld [vmem:[%s14949_s7 + $0x1f8] sm:$0xff] }
 0x55c   : > { %10519 = vmatprep.subr.bf16.mxu0 %v10518_v2  ;;  %v7516_v2 = vld [vmem:[%s14949_s7 + $0x108] sm:$0xff] }
 0x55d   : > { %v10550_v17 = vpack.c.bf16 %v7518_v44, %v7516_v2  ;;  %v7544_v23 = vld [vmem:[%s14949_s7 + $0x1e8] sm:$0xff]  ;;  %v7543_v44 = vld [vmem:[%s14949_s7 + $0x1e0] sm:$0xff] }
 0x55e   : > { %7335 = vmatmul.mubr.f32.vlgmr.msra.gmra.mrb[94].mxu0 %v5527_v58  ;;  %v10540_v58 = vpack.c.bf16 %v7505_v42, %v7503_v9  ;;  %v7533_v9 = vld [vmem:[%s14949_s7 + $0x190] sm:$0xff]  ;;  %v7538_v42 = vld [vmem:[%s14949_s7 + $0x1b8] sm:$0xff] }
 0x55f   : > { %10521 = vmatpush1.bf16.msra.mxu0 %v10520_v21  ;;  %v7515_v21 = vld [vmem:[%s14949_s7 + $0x100] sm:$0xff] }
 0x560   : > { %10523 = vmatprep.subr.bf16.mxu0 %v10522_v62  ;;  %v7517_v62 = vld [vmem:[%s14949_s7 + $0x110] sm:$0xff] }
 0x561   : > { %v10552_v52 = vpack.c.bf16 %v7517_v62, %v7515_v21  ;;  %v7659_v21 = vld [vmem:[%s14951_s9 + $0x80] sm:$0xff]  ;;  %v7660_v62 = vld [vmem:[%s14951_s9 + $0x88] sm:$0xff] }
 0x562   : > { %v10582_v34 = vpack.c.bf16 %v7660_v62, %v7659_v21 }
 0x563   : > { %10525 = vmatpush1.bf16.msra.mxu0 %v10524_v20  ;;  %v7519_v20 = vld [vmem:[%s14949_s7 + $0x120] sm:$0xff] }
 0x564   : > { %10527 = vmatprep.subr.bf16.mxu0 %v10526_v61  ;;  %v7521_v61 = vld [vmem:[%s14949_s7 + $0x130] sm:$0xff]  ;;  %10583 = vmatprep.subr.bf16.mxu1 %v10582_v34  ;;  %v6991_v34 = vrot.slane %v6984_v48, %v14229_v1 }
 0x565   : > { %v10556_v47 = vpack.c.bf16 %v7521_v61, %v7519_v20  ;;  %v7662_v20 = vld [vmem:[%s14951_s9 + $0x98] sm:$0xff] }
 0x567   : > { %10529 = vmatpush1.bf16.msra.mxu0 %v10528_v29  ;;  %v7523_v29 = vld [vmem:[%s14949_s7 + $0x140] sm:$0xff] }
 0x568   : > { %10531 = vmatprep.subr.bf16.mxu0 %v10530_v7  ;;  %v7525_v7 = vld [vmem:[%s14949_s7 + $0x150] sm:$0xff] }
 0x56b   : > { %10533 = vmatpush1.bf16.msra.mxu0 %v10532_v25 }
 0x56c   : > { %10535 = vmatprep.subr.bf16.mxu0 %v10534_v50 }
 0x56f   : > { %10537 = vmatpush1.bf16.msra.mxu0 %v10536_v12  ;;  %v7531_v12 = vld [vmem:[%s14949_s7 + $0x180] sm:$0xff] }
 0x570   : > { %10539 = vmatprep.subr.bf16.mxu0 %v10538_v15  ;;  %v10566_v15 = vpack.c.bf16 %v7534_v33, %v7532_v0 }
 0x571   : > { %v6238_v37 = vpop.f32.mrb[82].mxu0 }
 0x572   : > { %v6240_v59 = vpop.f32.mrb[83].mxu0 }
 0x573   : > { %v6245_v28 = vcombine.low %v6238_v37, %v6240_v59  ;;  %v7507_v59 = vld [vmem:[%s14949_s7 + $0xc0] sm:$0xff]  ;;  %10541 = vmatpush1.bf16.msra.mxu0 %v10540_v58 }
 0x574   : > { %v7535_v58 = vld [vmem:[%s14949_s7 + $0x1a0] sm:$0xff] }
 0x575   : > { %v6252_v26 = vrot.slane %v6245_v28, %v14229_v1  ;;  %v7509_v28 = vld [vmem:[%s14949_s7 + $0xd0] sm:$0xff] }
 0x577   : > { %v6259_v45 = vrot.slane %v6252_v26, %v14229_v1  ;;  %v7512_v26 = vld [vmem:[%s14949_s7 + $0xe8] sm:$0xff] }
 0x579   : > { %v6261_v30 = vadd.f32 %v6259_v45, %v6139_v11  ;;  %v7510_v11 = vld [vmem:[%s14949_s7 + $0xd8] sm:$0xff] }
 0x57a   : > { %v10542_v37 = vpack.c.bf16 %v7510_v11, %v7508_v43  ;;  %v7514_v45 = vld [vmem:[%s14949_s7 + $0xf8] sm:$0xff]  ;;  %v10568_v43 = vpack.c.bf16 %v7533_v9, %v7531_v12  ;;  %v7651_v12 = vld [vmem:[%s14951_s9 + $0x40] sm:$0xff]  ;;  %v7669_v9 = vld [vmem:[%s14951_s9 + $0xd0] sm:$0xff] }
 0x57b   : > { %v10546_v36 = vpack.c.bf16 %v7514_v45, %v7512_v26 }
 0x57c   : > { %10543 = vmatprep.subr.bf16.mxu0 %v10542_v37  ;;  %v7537_v37 = vld [vmem:[%s14949_s7 + $0x1b0] sm:$0xff] }
 0x57d   : > { %v10572_v26 = vpack.c.bf16 %v7537_v37, %v7535_v58 }
 0x591   : > { %v6360_v35 = vpop.f32.mrb[84].mxu0 }
 0x592   : > { %v6362_v41 = vpop.f32.mrb[85].mxu0 }
 0x593   : > { %v6367_v56 = vcombine.low %v6360_v35, %v6362_v41  ;;  %v10560_v35 = vpack.c.bf16 %v7525_v7, %v7523_v29  ;;  %v7664_v7 = vld [vmem:[%s14951_s9 + $0xa8] sm:$0xff] }
 0x595   : > { %v6374_v63 = vrot.slane %v6367_v56, %v14229_v1  ;;  %v10562_v56 = vpack.c.bf16 %v7530_v40, %v7528_v10 }
 0x597   : > { %v6381_v16 = vrot.slane %v6374_v63, %v14229_v1  ;;  %v7527_v63 = vld [vmem:[%s14949_s7 + $0x160] sm:$0xff] }
 0x599   : > { %v14651_v51 = vadd.f32 %v6381_v16, %v6261_v30  ;;  %v10544_v30 = vpack.c.bf16 %v7509_v28, %v7507_v59  ;;  %v7529_v16 = vld [vmem:[%s14949_s7 + $0x170] sm:$0xff]  ;;  %v7540_v59 = vld [vmem:[%s14949_s7 + $0x1c8] sm:$0xff]  ;;  %v7542_v28 = vld [vmem:[%s14949_s7 + $0x1d8] sm:$0xff] }
 0x59a   : > { %v10564_v6 = vpack.c.bf16 %v7529_v16, %v7527_v63  ;;  %v10574_v45 = vpack.c.bf16 %v7542_v28, %v7540_v59  ;;  %v7653_v59 = vld [vmem:[%s14951_s9 + $0x50] sm:$0xff]  ;;  %v7654_v28 = vld [vmem:[%s14951_s9 + $0x58] sm:$0xff] }
 0x59b   : > { %10545 = vmatpush1.bf16.msra.mxu0 %v10544_v30  ;;  %v7539_v30 = vld [vmem:[%s14949_s7 + $0x1c0] sm:$0xff] }
 0x59c   : > { %10547 = vmatprep.subr.bf16.mxu0 %v10546_v36  ;;  %v7541_v36 = vld [vmem:[%s14949_s7 + $0x1d0] sm:$0xff] }
 0x59d   : > { %v10576_v2 = vpack.c.bf16 %v7541_v36, %v7539_v30  ;;  %v6740_v30 = vrot.slane %v6733_v54, %v14229_v1 }
 0x59f   : > { %10549 = vmatpush1.bf16.msra.mxu0 %v10548_v38  ;;  %v7545_v38 = vld [vmem:[%s14949_s7 + $0x1f0] sm:$0xff] }
 0x5a0   : > { %10551 = vmatprep.subr.bf16.mxu0 %v10550_v17  ;;  %v10578_v17 = vpack.c.bf16 %v7546_v14, %v7544_v23  ;;  %v10580_v29 = vpack.c.bf16 %v7545_v38, %v7543_v44  ;;  %v10604_v23 = vpack.c.bf16 %v7654_v28, %v7653_v59  ;;  %v6747_v44 = vrot.slane %v6740_v30, %v14229_v1 }
 0x5a3   : > { %10553 = vmatpush1.bf16.msra.mxu0 %v10552_v52  ;;  %v7644_v52 = vld [vmem:[%s14951_s9 + $0x8] sm:$0xff] }
 0x5a4   : > { %10555 = vmatprep.subr.bf16.mxu0 %v10554_v46  ;;  %v7661_v46 = vld [vmem:[%s14951_s9 + $0x90] sm:$0xff]  ;;  %v10584_v61 = vpack.c.bf16 %v7644_v52, %v7643_v8 }
 0x5a5   : > { %v10586_v55 = vpack.c.bf16 %v7662_v20, %v7661_v46 }
 0x5a6   : > { %10585 = vmatpush3.bf16.msra.mxu1 %v10584_v61 }
 0x5a7   : > { %10557 = vmatpush1.bf16.msra.mxu0 %v10556_v47  ;;  %v7646_v47 = vld [vmem:[%s14951_s9 + $0x18] sm:$0xff]  ;;  %10587 = vmatprep.subr.bf16.mxu1 %v10586_v55  ;;  %v7228_v55 = vrot.slane %v7221_v18, %v14229_v1 }
 0x5a8   : > { %10559 = vmatprep.subr.bf16.mxu0 %v10558_v4  ;;  %v7663_v4 = vld [vmem:[%s14951_s9 + $0xa0] sm:$0xff]  ;;  %v10588_v10 = vpack.c.bf16 %v7646_v47, %v7645_v13 }
 0x5a9   : > { %v10590_v40 = vpack.c.bf16 %v7664_v7, %v7663_v4  ;;  %v7235_v49 = vrot.slane %v7228_v55, %v14229_v1 }
 0x5aa   : > { %10589 = vmatpush3.bf16.msra.mxu1 %v10588_v10  ;;  %v7472_v10 = vrot.slane %v7465_v32, %v14229_v1  ;;  %v7673_v32 = vld [vmem:[%s14951_s9 + $0xf0] sm:$0xff] }
 0x5ab   : > { %10561 = vmatpush1.bf16.msra.mxu0 %v10560_v35  ;;  %v7648_v35 = vld [vmem:[%s14951_s9 + $0x28] sm:$0xff]  ;;  %10591 = vmatprep.subr.bf16.mxu1 %v10590_v40 }
 0x5ac   : > { %10563 = vmatprep.subr.bf16.mxu0 %v10562_v56  ;;  %v7666_v56 = vld [vmem:[%s14951_s9 + $0xb8] sm:$0xff]  ;;  %v7479_v39 = vrot.slane %v7472_v10, %v14229_v1 }
 0x5af   : > { %10565 = vmatpush1.bf16.msra.mxu0 %v10564_v6  ;;  %v7667_v6 = vld [vmem:[%s14951_s9 + $0xc0] sm:$0xff] }
 0x5b0   : > { %10567 = vmatprep.subr.bf16.mxu0 %v10566_v15  ;;  %v7652_v15 = vld [vmem:[%s14951_s9 + $0x48] sm:$0xff] }
 0x5b1   : > { %v6482_v25 = vpop.f32.mrb[86].mxu0 }
 0x5b2   : > { %v6484_v41 = vpop.f32.mrb[87].mxu0 }
 0x5b3   : > { %v6489_v22 = vcombine.low %v6482_v25, %v6484_v41  ;;  %10569 = vmatpush1.bf16.msra.mxu0 %v10568_v43  ;;  %v7647_v25 = vld [vmem:[%s14951_s9 + $0x20] sm:$0xff]  ;;  %v7665_v41 = vld [vmem:[%s14951_s9 + $0xb0] sm:$0xff] }
 0x5b4   : > { %v10592_v63 = vpack.c.bf16 %v7648_v35, %v7647_v25  ;;  %v10594_v16 = vpack.c.bf16 %v7666_v56, %v7665_v41  ;;  %v7555_v35 = vsub.s32 1, %v15177_v57  ;;  %v7551_v41 = vsub.s32 0, %v15177_v57  ;;  %v7674_v57 = vld [vmem:[%s14951_s9 + $0xf8] sm:$0xff] }
 0x5b5   : > { %v6496_v31 = vrot.slane %v6489_v22, %v14229_v1  ;;  %v7649_v22 = vld [vmem:[%s14951_s9 + $0x30] sm:$0xff] }
 0x5b6   : > { %10593 = vmatpush3.bf16.msra.mxu1 %v10592_v63 }
 0x5b7   : > { %v6503_v50 = vrot.slane %v6496_v31, %v14229_v1  ;;  %v7650_v31 = vld [vmem:[%s14951_s9 + $0x38] sm:$0xff]  ;;  %10595 = vmatprep.subr.bf16.mxu1 %v10594_v16 }
 0x5b8   : > { %v10596_v0 = vpack.c.bf16 %v7650_v31, %v7649_v22  ;;  %v7657_v22 = vld [vmem:[%s14951_s9 + $0x70] sm:$0xff]  ;;  %v10610_v31 = vpack.c.bf16 %v7674_v57, %v7673_v32 }
 0x5b9   : > { %v14752_v5 = vadd.f32 %v6503_v50, %v14651_v51  ;;  %v7536_v51 = vld [vmem:[%s14949_s7 + $0x1a8] sm:$0xff] }
 0x5ba   : > { %v10570_v11 = vpack.c.bf16 %v7538_v42, %v7536_v51  ;;  %v7668_v50 = vld [vmem:[%s14951_s9 + $0xc8] sm:$0xff]  ;;  %v7670_v51 = vld [vmem:[%s14951_s9 + $0xd8] sm:$0xff]  ;;  %10597 = vmatpush3.bf16.msra.mxu1 %v10596_v0  ;;  %v7547_v0 = vld [vmem:[%s14950_s8] sm:$0x3] }
 0x5bb   : > { %v10598_v33 = vpack.c.bf16 %v7668_v50, %v7667_v6  ;;  %v10602_v37 = vpack.c.bf16 %v7670_v51, %v7669_v9  ;;  %v7658_v6 = vld [vmem:[%s14951_s9 + $0x78] sm:$0xff] }
 0x5bc   : > { %10571 = vmatprep.subr.bf16.mxu0 %v10570_v11  ;;  %v10600_v11 = vpack.c.bf16 %v7652_v15, %v7651_v12  ;;  %v10612_v50 = vpack.c.bf16 %v7658_v6, %v7657_v22  ;;  %v7567_v12 = vrot.slane %v7547_v0, %v7555_v35 }
 0x5bd   : > { %10573 = vmatpush1.bf16.msra.mxu0 %v10572_v26  ;;  %10599 = vmatprep.subr.bf16.mxu1 %v10598_v33  ;;  %v7671_v26 = vld [vmem:[%s14951_s9 + $0xe0] sm:$0xff]  ;;  %v7563_v33 = vrot.slane %v7547_v0, %v7551_v41 }
 0x5be   : > { %10575 = vmatprep.subr.bf16.mxu0 %v10574_v45  ;;  %v7672_v45 = vld [vmem:[%s14951_s9 + $0xe8] sm:$0xff]  ;;  %10601 = vmatpush3.bf16.msra.mxu1 %v10600_v11 }
 0x5bf   : > { %10603 = vmatprep.subr.bf16.mxu1 %v10602_v37  ;;  %v7675_v37 = vld [vmem:[%s14952_s10] sm:$0x1] }
 0x5c1   : > { %10577 = vmatpush1.bf16.msra.mxu0 %v10576_v2  ;;  %v10606_v2 = vpack.c.bf16 %v7672_v45, %v7671_v26 }
 0x5c2   : > { %10579 = vmatprep.subr.bf16.mxu0 %v10578_v17  ;;  %10605 = vmatpush3.bf16.msra.mxu1 %v10604_v23 }
 0x5c3   : > { %10607 = vmatprep.subr.bf16.mxu1 %v10606_v2 }
 0x5c5   : > { %10581 = vmatpush1.bf16.msra.mxu0 %v10580_v29 }
 0x5d1   : > { %v6604_v42 = vpop.f32.mrb[88].mxu0 }
 0x5d2   : > { %v6606_v43 = vpop.f32.mrb[89].mxu0 }
 0x5d3   : > { %v6611_v58 = vcombine.low %v6604_v42, %v6606_v43 }
 0x5d5   : > { %v6618_v36 = vrot.slane %v6611_v58, %v14229_v1 }
 0x5d7   : > { %v6625_v14 = vrot.slane %v6618_v36, %v14229_v1 }
 0x5d9   : > { %v6627_v38 = vadd.f32 %v6625_v14, %v14752_v5 }
 0x5db   : > { %v6749_v17 = vadd.f32 %v6747_v44, %v6627_v38 }
 0x5f1   : > { %v6848_v21 = vpop.f32.mrb[90].mxu0 }
 0x5f2   : > { %v6850_v62 = vpop.f32.mrb[91].mxu0 }
 0x5f3   : > { %v6855_v8 = vcombine.low %v6848_v21, %v6850_v62 }
 0x5f5   : > { %v6862_v53 = vrot.slane %v6855_v8, %v14229_v1 }
 0x5f7   : > { %v6869_v54 = vrot.slane %v6862_v53, %v14229_v1 }
 0x5f9   : > { %v6871_v52 = vadd.f32 %v6869_v54, %v6749_v17 }
 0x5fb   : > { %v6993_v46 = vadd.f32 %v6991_v34, %v6871_v52 }
 0x611   : > { %v7092_v5 = vpop.f32.mrb[92].mxu0 }
 0x612   : > { %v7094_v20 = vpop.f32.mrb[93].mxu0 }
 0x613   : > { %v7099_v61 = vcombine.low %v7092_v5, %v7094_v20 }
 0x615   : > { %v7106_v13 = vrot.slane %v7099_v61, %v14229_v1 }
 0x617   : > { %v7113_v27 = vrot.slane %v7106_v13, %v14229_v1 }
 0x619   : > { %v7115_v24 = vadd.f32 %v7113_v27, %v6993_v46 }
 0x61b   : > { %v7237_v47 = vadd.f32 %v7235_v49, %v7115_v24 }
 0x631   : > { %v7336_v4 = vpop.f32.mrb[94].mxu0 }
 0x632   : > { %v7338_v29 = vpop.f32.mrb[95].mxu0 }
 0x633   : > { %v7343_v7 = vcombine.low %v7336_v4, %v7338_v29 }
 0x635   : > { %v7350_v40 = vrot.slane %v7343_v7, %v14229_v1 }
 0x637   : > { %v7357_v3 = vrot.slane %v7350_v40, %v14229_v1  ;;  %v10608_v1 = vpack.c.bf16 %v7656_v19, %v7655_v60 }
 0x639   : > { %v7359_v18 = vadd.f32 %v7357_v3, %v7237_v47  ;;  %10609 = vmatpush3.bf16.msra.mxu1 %v10608_v1 }
 0x63a   : > { %10611 = vmatprep.subr.bf16.mxu1 %v10610_v31 }
 0x63b   : > { %v7481_v25 = vadd.f32 %v7479_v39, %v7359_v18 }
 0x63d   : > { %v7482_v56 = vmax.f32 %v7481_v25, 0.0  ;;  %10613 = vmatpush3.bf16.msra.mxu1 %v10612_v50 }
 0x63f   : > { %v7556_v63 = vrot.slane %v7482_v56, %v7555_v35  ;;  %v7552_v16 = vrot.slane %v7482_v56, %v7551_v41 }
 0x641   : > { %7634 = vmatprep.mubr.f32.mxu0 %v7556_v63 }
 0x642   : > { %7635 = vmatmul.mubr.f32.vlgmr.msra.gmra.mrb[96].mxu0 %v7552_v16 }
 0x715   : > { %v7636_v15 = vpop.f32.mrb[96].mxu0 }
 0x716   : > { %v7637_v9 = vadd.f32 %v7636_v15, %v7563_v33  ;;  %v7638_v51 = vpop.f32.mrb[97].mxu0 }
 0x717   : > { %v7639_v42 = vadd.f32 %v7638_v51, %v7567_v12 }
 0x718   : > { %v7641_v11 = vmax.f32 %v7637_v9, 0.0 }
 0x719   : > { %v7642_v43 = vmax.f32 %v7639_v42, 0.0 }
 0x71b   : > { %7740 = vmatprep.mubr.f32.mxu1 %v7642_v43 }
 0x71c   : > { %7741 = vmatmul.mubr.f32.vlgmr.msra.gmra.mrb[16].mxu1 %v7641_v11 }
 0x7ef   : > { %v8777_v58 = vpop.f32.mrb[16].mxu1 }
 0x7f0   : > { %v8778_v59 = vpop.f32.mrb[17].mxu1 }
 0x7f1   : > { %v8779_v28 = vadd.f32 %v8778_v59, %v8777_v58 }
 0x7f3   : > { %v7743_v26 = vadd.f32 %v8779_v28, %v7675_v37 }
 0x7f5   : > { %7746 = vst [vmem:[%s382_s27] sm:$0x1] %v7743_v26 }
 0x7f6 PF: > { %s21_s17 = sadd.s32 1, %s10825_s17  }
 0x7f7   : > { %p18_p4 = scmp.ge.s32.totalorder %s21_s17, 6  }
 0x7f9   :  { %20 = sbr.rel (!%p18_p4) target bundleno = 1 (0x1), region = 129 }

</bundles_post_ra>
